<compile_context>
chip_gen: v6e
topology: v6e:2x2x1
jax: 0.10.0
libtpu: 0.0.40
codegen_flags: <defaults>
</compile_context>

<pallas_src>
import functools

import jax
import jax.numpy as jnp
from jax import lax
from jax.experimental import pallas as pl
from jax.experimental.pallas import tpu as pltpu


def _pixel_view_weight_kernel(x_ref, w1_ref, b1_ref, w2_ref, b2_ref,
                              o_ref, m_acc, s_acc, rhs_ref,
                              *, tap_offs, Sp, Lpad, CH, TD, G):
    # x_ref:   (1, G, TD*Sp)  bf16  flattened zero-padded activations
    # w1_ref:  (16, 9G)       bf16  3x3 conv weights, K index = t*G + g
    # b1_ref:  (16, 1)        f32   conv1 bias (column)
    # w2_ref:  (16, 1)        f32   1x1 conv weights (column)
    # b2_ref:  (1, 1)         f32   1x1 conv bias
    # o_ref:   (1, 1, Lpad)   f32   output (flat spatial, stride W+2), lane dense
    # m_acc:   (1, Lpad)      f32   running max over depth        (VMEM scratch)
    # s_acc:   (1, Lpad)      f32   running sum of exp(l - m)     (VMEM scratch)
    # rhs_ref: (9G, CH)       bf16  stacked-tap RHS staging       (VMEM scratch)
    dt = pl.program_id(1)

    @pl.when(dt == 0)
    def _init():
        m_acc[...] = jnp.full(m_acc.shape, -jnp.inf, dtype=jnp.float32)
        s_acc[...] = jnp.zeros(s_acc.shape, dtype=jnp.float32)

    # Hoisted, loop-invariant parameter loads.
    w1s = w1_ref[...]          # (16, 9G) bf16
    b1v = b1_ref[...]          # (16, 1)  f32
    w2v = w2_ref[...]          # (16, 1)  f32
    b2v = b2_ref[...]          # (1, 1)   f32

    def chunk_body(c, carry):
        base = c * CH
        if not isinstance(base, int):
            base = pl.multiple_of(base, 128)      # CH is a multiple of 128

        rows = []
        for d in range(TD):
            plane = d * Sp                         # Sp is a multiple of 128
            # --- stage the 9 shifted tap slices as one K-stacked RHS --------
            for t in range(9):
                start = base + plane + tap_offs[t]
                rhs_ref[t * G:(t + 1) * G, :] = x_ref[0, :, pl.ds(start, CH)]
            # --- 3x3 conv = ONE (16, 9G) x (9G, CH) MXU matmul, f32 acc -----
            h = jnp.dot(w1s, rhs_ref[...], preferred_element_type=jnp.float32)
            h = jnp.maximum(h + b1v, 0.0)          # bias + ReLU
            # --- 1x1 conv on VPU/XLU: broadcast-mul + sublane reduce --------
            rows.append(jnp.sum(h * w2v, axis=0, keepdims=True) + b2v)

        # (TD, CH) logits with depth on sublanes -> dense exp + one XLU reduce.
        logits = rows[0] if TD == 1 else jnp.concatenate(rows, axis=0)

        m_old = m_acc[:, pl.ds(base, CH)]
        s_old = s_acc[:, pl.ds(base, CH)]
        m_new = jnp.maximum(m_old, jnp.max(logits, axis=0, keepdims=True))
        p_sum = jnp.sum(jnp.exp(logits - m_new), axis=0, keepdims=True)
        s_acc[:, pl.ds(base, CH)] = s_old * jnp.exp(m_old - m_new) + p_sum
        m_acc[:, pl.ds(base, CH)] = m_new
        return carry

    n_chunks = Lpad // CH
    if n_chunks <= 2:                    # tiny images: static, fully unrolled
        for c in range(n_chunks):
            chunk_body(c, 0)
    else:                                # bounded live ranges for large images
        lax.fori_loop(0, n_chunks, chunk_body, 0)

    @pl.when(dt == pl.num_programs(1) - 1)
    def _finalize():
        # max_d softmax(l)_d == 1 / sum_d exp(l_d - max_d l_d)
        o_ref[0] = pl.reciprocal(s_acc[...], approx=False).astype(o_ref.dtype)


def _vmem_capacity_bytes():
    try:
        info = pltpu.get_tpu_info()
        for name in ("vmem_capacity_bytes", "vmem_size_bytes", "vmem_bytes"):
            v = getattr(info, name, None)
            if v:
                return int(v)
    except Exception:
        pass
    return 64 * 1024 * 1024              # conservative default (v7x-sized)


def _pick_depth_tile(D, G, Sp, Lpad, CH, vmem_budget):
    """Largest divisor of D (<= 8, keeps softmax sublane-dense) fitting VMEM."""
    fixed = 2 * Lpad * 4                 # (m, s) scratch
    fixed += 2 * Lpad * 4                # output block (+ buffering headroom)
    fixed += 9 * G * CH * 2              # stacked-RHS staging (bf16)
    fixed += 64 * CH * 4                 # live intermediates (h, logits, exp)
    best = 1
    for td in range(1, min(D, 8) + 1):
        if D % td:
            continue
        need = fixed + 2 * G * td * Sp * 2     # double-buffered bf16 input block
        if need <= vmem_budget:
            best = td
    return best


def pixel_view_weight(x, w1, b1, w2, b2, *, depth_tile=None, chunk=None):
    """x: [B, G, D, H, W] float32. Returns [B, 1, H, W] = max_d softmax_d."""
    B, G, D, H, W = x.shape
    Hp, Wp = H + 2, W + 2
    L = H * Wp - 2                       # valid flat output span (p = y*Wp + x)

    # Lane chunk: multiple of 128, capped so intermediates stay a few 100 KB.
    CH = chunk if chunk is not None else min(4096, pl.cdiv(L, 128) * 128)
    assert CH % 128 == 0
    Lpad = pl.cdiv(L, CH) * CH           # lane-dense output / accumulator span
    S = Hp * Wp
    # Per-plane lane stride: large enough that the last chunk's taps stay
    # inside the plane's own padding (reads never cross into the next plane).
    Sp = pl.cdiv(max(S, Lpad + 2 * Wp + 2), 128) * 128

    # ---- per-generation VMEM budget, depth tile, compiler limit ------------
    cap = _vmem_capacity_bytes()
    vmem_limit = max(32 << 20, min(cap - (16 << 20), 112 << 20))
    if depth_tile is not None:
        TD = depth_tile
    else:
        TD = _pick_depth_tile(D, G, Sp, Lpad, CH, int(0.8 * vmem_limit))
    assert D % TD == 0, (D, TD)

    # ---- JAX glue: bf16 cast (halves HBM traffic), pad, flatten ------------
    xb = x.astype(jnp.bfloat16)
    xpad = jnp.pad(xb, ((0, 0), (0, 0), (0, 0), (1, 1), (1, 1)))  # [B,G,D,Hp,Wp]
    xflat = xpad.reshape(B, G, D, S)
    if Sp != S:
        xflat = jnp.pad(xflat, ((0, 0), (0, 0), (0, 0), (0, Sp - S)))
    xflat = xflat.reshape(B, G, D * Sp)

    # Weights: w1 [16, G, 3, 3] -> (16, 9G), K index = (ky*3 + kx)*G + g.
    w1s = jnp.transpose(w1, (0, 2, 3, 1)).reshape(16, 9 * G).astype(jnp.bfloat16)
    b1c = b1.reshape(16, 1).astype(jnp.float32)
    w2c = w2.reshape(16, 1).astype(jnp.float32)
    b2c = b2.reshape(1, 1).astype(jnp.float32)

    tap_offs = tuple(ky * Wp + kx for ky in range(3) for kx in range(3))

    kernel = functools.partial(_pixel_view_weight_kernel, tap_offs=tap_offs,
                               Sp=Sp, Lpad=Lpad, CH=CH, TD=TD, G=G)

    grid_spec = pltpu.PrefetchScalarGridSpec(
        num_scalar_prefetch=0,
        grid=(B, D // TD),
        in_specs=[
            pl.BlockSpec((1, G, TD * Sp), lambda b, dt: (b, 0, dt)),
            pl.BlockSpec((16, 9 * G), lambda b, dt: (0, 0)),
            pl.BlockSpec((16, 1), lambda b, dt: (0, 0)),
            pl.BlockSpec((16, 1), lambda b, dt: (0, 0)),
            pl.BlockSpec((1, 1), lambda b, dt: (0, 0)),
        ],
        out_specs=pl.BlockSpec((1, 1, Lpad), lambda b, dt: (b, 0, 0)),
        scratch_shapes=[
            pltpu.VMEM((1, Lpad), jnp.float32),      # running max over depth
            pltpu.VMEM((1, Lpad), jnp.float32),      # running sum of exp
            pltpu.VMEM((9 * G, CH), jnp.bfloat16),   # stacked-tap RHS staging
        ],
    )

    out_flat = pl.pallas_call(
        kernel,
        out_shape=jax.ShapeDtypeStruct((B, 1, Lpad), jnp.float32),
        grid_spec=grid_spec,
        compiler_params=pltpu.CompilerParams(
            dimension_semantics=("parallel", "arbitrary"),
            vmem_limit_bytes=int(vmem_limit)),
    )(xflat, w1s, b1c, w2c, b2c)

    # Un-flatten: flat index p = y*Wp + x, valid for x < W.
    need = H * Wp
    if Lpad >= need:
        of = out_flat[:, :, :need]
    else:
        of = jnp.pad(out_flat, ((0, 0), (0, 0), (0, need - Lpad)))
    return of.reshape(B, 1, H, Wp)[:, :, :, :W]


def pixel_view_weight_reference(x, w1, b1, w2, b2):
    """Pure-JAX f32 reference mirroring the PyTorch module."""
    B, G, D, H, W = x.shape
    xt = jnp.transpose(x, (0, 2, 1, 3, 4)).reshape(B * D, G, H, W)
    y = jax.lax.conv_general_dilated(
        xt, w1, window_strides=(1, 1), padding=((1, 1), (1, 1)),
        dimension_numbers=("NCHW", "OIHW", "NCHW")) + b1[None, :, None, None]
    y = jnp.maximum(y, 0.0)
    y = jax.lax.conv_general_dilated(
        y, w2, window_strides=(1, 1), padding="VALID",
        dimension_numbers=("NCHW", "OIHW", "NCHW")) + b2[None, :, None, None]
    y = y.reshape(B, D, H, W)
    y = jax.nn.softmax(y, axis=1)
    y = jnp.max(y, axis=1)
    return y[:, None]


if __name__ == "__main__":
    B, G, D, H, W = 2, 4, 8, 16, 16

    key = jax.random.PRNGKey(0)
    kx, k1, k2, k3, k4 = jax.random.split(key, 5)

    x = jax.random.normal(kx, (B, G, D, H, W), dtype=jnp.float32)

    # Deterministic synthetic parameters (shapes per the module __init__).
    w1 = 0.1 * jax.random.normal(k1, (16, G, 3, 3), dtype=jnp.float32)  # ConvReLU(G,16)
    b1 = 0.1 * jax.random.normal(k2, (16,), dtype=jnp.float32)
    w2 = 0.1 * jax.random.normal(k3, (1, 16, 1, 1), dtype=jnp.float32)  # Conv2d(16,1,1)
    b2 = 0.1 * jax.random.normal(k4, (1,), dtype=jnp.float32)

    out = jax.jit(pixel_view_weight)(x, w1, b1, w2, b2)
    out = jax.block_until_ready(out)

    ref = pixel_view_weight_reference(x, w1, b1, w2, b2)
    assert out.shape == (B, 1, H, W), out.shape
    # Tolerance covers the bf16 activation/weight path of the conv (softmax and
    # accumulation stay f32); observed error is well below this bound.
    err = float(jnp.max(jnp.abs(out - ref)))
    assert jnp.allclose(out, ref, atol=1e-2, rtol=1e-2), err

    print("KERNEL_OK")
</pallas_src>

<mosaic_0001>
module attributes {stable_mosaic.version = 11 : i64} {
  func.func @_pixel_view_weight_kernel(%arg0: i32, %arg1: i32, %arg2: memref<1x4x4096xbf16, #tpu.memory_space<vmem>>, %arg3: memref<16x36xbf16, #tpu.memory_space<vmem>>, %arg4: memref<16x1xf32, #tpu.memory_space<vmem>>, %arg5: memref<16x1xf32, #tpu.memory_space<vmem>>, %arg6: memref<1x1xf32, #tpu.memory_space<vmem>>, %arg7: memref<1x1x384xf32, #tpu.memory_space<vmem>>, %arg8: memref<1x384xf32, #tpu.memory_space<vmem>>, %arg9: memref<1x384xf32, #tpu.memory_space<vmem>>, %arg10: memref<36x384xbf16, #tpu.memory_space<vmem>>) attributes {dimension_semantics = [#tpu.dimension_semantics<parallel>, #tpu.dimension_semantics<arbitrary>], iteration_bounds = array<i64: 2, 1>, scalar_prefetch = 0 : i64, scratch_operands = 3 : i64, tpu.core_type = #tpu.core_type<tc>, window_params = [{transform_indices = @transform_0, window_bounds = array<i64: 1, 4, 4096>}, {pipeline_mode = #tpu.pipeline_mode<synchronous>, transform_indices = @transform_1, window_bounds = array<i64: 16, 36>}, {pipeline_mode = #tpu.pipeline_mode<synchronous>, transform_indices = @transform_2, window_bounds = array<i64: 16, 1>}, {pipeline_mode = #tpu.pipeline_mode<synchronous>, transform_indices = @transform_3, window_bounds = array<i64: 16, 1>}, {pipeline_mode = #tpu.pipeline_mode<synchronous>, transform_indices = @transform_4, window_bounds = array<i64: 1, 1>}, {transform_indices = @transform_5, window_bounds = array<i64: 1, 1, 384>}]} {
    %c0_i32 = arith.constant 0 : i32
    %0 = arith.cmpi eq, %arg1, %c0_i32 : i32
    %1 = arith.extui %0 : i1 to i32
    %c0_i32_0 = arith.constant 0 : i32
    %2 = arith.cmpi ne, %1, %c0_i32_0 : i32
    scf.if %2 {
      %cst_341 = arith.constant 0xFF800000 : f32
      %339 = vector.broadcast %cst_341 : f32 to vector<1x384xf32>
      %c0_342 = arith.constant 0 : index
      %c0_343 = arith.constant 0 : index
      %340 = vector.load %arg8[%c0_342, %c0_343] : memref<1x384xf32, #tpu.memory_space<vmem>>, vector<1x384xf32>
      tpu.vector_store %arg8[%c0_342, %c0_343], %339 {strides = array<i32>} : memref<1x384xf32, #tpu.memory_space<vmem>>, vector<1x384xf32>,
      %cst_344 = arith.constant 0.000000e+00 : f32
      %341 = vector.broadcast %cst_344 : f32 to vector<1x384xf32>
      %c0_345 = arith.constant 0 : index
      %c0_346 = arith.constant 0 : index
      %342 = vector.load %arg9[%c0_345, %c0_346] : memref<1x384xf32, #tpu.memory_space<vmem>>, vector<1x384xf32>
      tpu.vector_store %arg9[%c0_345, %c0_346], %341 {strides = array<i32>} : memref<1x384xf32, #tpu.memory_space<vmem>>, vector<1x384xf32>,
    } else {
    }
    %c0 = arith.constant 0 : index
    %c0_1 = arith.constant 0 : index
    %3 = vector.load %arg3[%c0, %c0_1] : memref<16x36xbf16, #tpu.memory_space<vmem>>, vector<16x36xbf16>
    %c0_2 = arith.constant 0 : index
    %c0_3 = arith.constant 0 : index
    %4 = vector.load %arg4[%c0_2, %c0_3] : memref<16x1xf32, #tpu.memory_space<vmem>>, vector<16x1xf32>
    %c0_4 = arith.constant 0 : index
    %c0_5 = arith.constant 0 : index
    %5 = vector.load %arg5[%c0_4, %c0_5] : memref<16x1xf32, #tpu.memory_space<vmem>>, vector<16x1xf32>
    %c0_6 = arith.constant 0 : index
    %c0_7 = arith.constant 0 : index
    %6 = vector.load %arg6[%c0_6, %c0_7] : memref<1x1xf32, #tpu.memory_space<vmem>>, vector<1x1xf32>
    %c0_8 = arith.constant 0 : index
    %c0_9 = arith.constant 0 : index
    %c0_10 = arith.constant 0 : index
    %7 = vector.load %arg2[%c0_8, %c0_9, %c0_10] : memref<1x4x4096xbf16, #tpu.memory_space<vmem>>, vector<1x4x384xbf16>
    %8 = vector.shape_cast %7 : vector<1x4x384xbf16> to vector<4x384xbf16>
    %c0_11 = arith.constant 0 : index
    %c0_12 = arith.constant 0 : index
    %9 = vector.load %arg10[%c0_11, %c0_12] : memref<36x384xbf16, #tpu.memory_space<vmem>>, vector<4x384xbf16>
    tpu.vector_store %arg10[%c0_11, %c0_12], %8 {strides = array<i32>} : memref<36x384xbf16, #tpu.memory_space<vmem>>, vector<4x384xbf16>,
    %c0_13 = arith.constant 0 : index
    %c0_14 = arith.constant 0 : index
    %c1 = arith.constant 1 : index
    %10 = vector.load %arg2[%c0_13, %c0_14, %c1] : memref<1x4x4096xbf16, #tpu.memory_space<vmem>>, vector<1x4x384xbf16>
    %11 = vector.shape_cast %10 : vector<1x4x384xbf16> to vector<4x384xbf16>
    %c4 = arith.constant 4 : index
    %c0_15 = arith.constant 0 : index
    %12 = vector.load %arg10[%c4, %c0_15] : memref<36x384xbf16, #tpu.memory_space<vmem>>, vector<4x384xbf16>
    tpu.vector_store %arg10[%c4, %c0_15], %11 {strides = array<i32>} : memref<36x384xbf16, #tpu.memory_space<vmem>>, vector<4x384xbf16>,
    %c0_16 = arith.constant 0 : index
    %c0_17 = arith.constant 0 : index
    %c2 = arith.constant 2 : index
    %13 = vector.load %arg2[%c0_16, %c0_17, %c2] : memref<1x4x4096xbf16, #tpu.memory_space<vmem>>, vector<1x4x384xbf16>
    %14 = vector.shape_cast %13 : vector<1x4x384xbf16> to vector<4x384xbf16>
    %c8 = arith.constant 8 : index
    %c0_18 = arith.constant 0 : index
    %15 = vector.load %arg10[%c8, %c0_18] : memref<36x384xbf16, #tpu.memory_space<vmem>>, vector<4x384xbf16>
    tpu.vector_store %arg10[%c8, %c0_18], %14 {strides = array<i32>} : memref<36x384xbf16, #tpu.memory_space<vmem>>, vector<4x384xbf16>,
    %c0_19 = arith.constant 0 : index
    %c0_20 = arith.constant 0 : index
    %c18 = arith.constant 18 : index
    %16 = vector.load %arg2[%c0_19, %c0_20, %c18] : memref<1x4x4096xbf16, #tpu.memory_space<vmem>>, vector<1x4x384xbf16>
    %17 = vector.shape_cast %16 : vector<1x4x384xbf16> to vector<4x384xbf16>
    %c12 = arith.constant 12 : index
    %c0_21 = arith.constant 0 : index
    %18 = vector.load %arg10[%c12, %c0_21] : memref<36x384xbf16, #tpu.memory_space<vmem>>, vector<4x384xbf16>
    tpu.vector_store %arg10[%c12, %c0_21], %17 {strides = array<i32>} : memref<36x384xbf16, #tpu.memory_space<vmem>>, vector<4x384xbf16>,
    %c0_22 = arith.constant 0 : index
    %c0_23 = arith.constant 0 : index
    %c19 = arith.constant 19 : index
    %19 = vector.load %arg2[%c0_22, %c0_23, %c19] : memref<1x4x4096xbf16, #tpu.memory_space<vmem>>, vector<1x4x384xbf16>
    %20 = vector.shape_cast %19 : vector<1x4x384xbf16> to vector<4x384xbf16>
    %c16 = arith.constant 16 : index
    %c0_24 = arith.constant 0 : index
    %21 = vector.load %arg10[%c16, %c0_24] : memref<36x384xbf16, #tpu.memory_space<vmem>>, vector<4x384xbf16>
    tpu.vector_store %arg10[%c16, %c0_24], %20 {strides = array<i32>} : memref<36x384xbf16, #tpu.memory_space<vmem>>, vector<4x384xbf16>,
    %c0_25 = arith.constant 0 : index
    %c0_26 = arith.constant 0 : index
    %c20 = arith.constant 20 : index
    %22 = vector.load %arg2[%c0_25, %c0_26, %c20] : memref<1x4x4096xbf16, #tpu.memory_space<vmem>>, vector<1x4x384xbf16>
    %23 = vector.shape_cast %22 : vector<1x4x384xbf16> to vector<4x384xbf16>
    %c20_27 = arith.constant 20 : index
    %c0_28 = arith.constant 0 : index
    %24 = vector.load %arg10[%c20_27, %c0_28] : memref<36x384xbf16, #tpu.memory_space<vmem>>, vector<4x384xbf16>
    tpu.vector_store %arg10[%c20_27, %c0_28], %23 {strides = array<i32>} : memref<36x384xbf16, #tpu.memory_space<vmem>>, vector<4x384xbf16>,
    %c0_29 = arith.constant 0 : index
    %c0_30 = arith.constant 0 : index
    %c36 = arith.constant 36 : index
    %25 = vector.load %arg2[%c0_29, %c0_30, %c36] : memref<1x4x4096xbf16, #tpu.memory_space<vmem>>, vector<1x4x384xbf16>
    %26 = vector.shape_cast %25 : vector<1x4x384xbf16> to vector<4x384xbf16>
    %c24 = arith.constant 24 : index
    %c0_31 = arith.constant 0 : index
    %27 = vector.load %arg10[%c24, %c0_31] : memref<36x384xbf16, #tpu.memory_space<vmem>>, vector<4x384xbf16>
    tpu.vector_store %arg10[%c24, %c0_31], %26 {strides = array<i32>} : memref<36x384xbf16, #tpu.memory_space<vmem>>, vector<4x384xbf16>,
    %c0_32 = arith.constant 0 : index
    %c0_33 = arith.constant 0 : index
    %c37 = arith.constant 37 : index
    %28 = vector.load %arg2[%c0_32, %c0_33, %c37] : memref<1x4x4096xbf16, #tpu.memory_space<vmem>>, vector<1x4x384xbf16>
    %29 = vector.shape_cast %28 : vector<1x4x384xbf16> to vector<4x384xbf16>
    %c28 = arith.constant 28 : index
    %c0_34 = arith.constant 0 : index
    %30 = vector.load %arg10[%c28, %c0_34] : memref<36x384xbf16, #tpu.memory_space<vmem>>, vector<4x384xbf16>
    tpu.vector_store %arg10[%c28, %c0_34], %29 {strides = array<i32>} : memref<36x384xbf16, #tpu.memory_space<vmem>>, vector<4x384xbf16>,
    %c0_35 = arith.constant 0 : index
    %c0_36 = arith.constant 0 : index
    %c38 = arith.constant 38 : index
    %31 = vector.load %arg2[%c0_35, %c0_36, %c38] : memref<1x4x4096xbf16, #tpu.memory_space<vmem>>, vector<1x4x384xbf16>
    %32 = vector.shape_cast %31 : vector<1x4x384xbf16> to vector<4x384xbf16>
    %c32 = arith.constant 32 : index
    %c0_37 = arith.constant 0 : index
    %33 = vector.load %arg10[%c32, %c0_37] : memref<36x384xbf16, #tpu.memory_space<vmem>>, vector<4x384xbf16>
    tpu.vector_store %arg10[%c32, %c0_37], %32 {strides = array<i32>} : memref<36x384xbf16, #tpu.memory_space<vmem>>, vector<4x384xbf16>,
    %c0_38 = arith.constant 0 : index
    %c0_39 = arith.constant 0 : index
    %34 = vector.load %arg10[%c0_38, %c0_39] : memref<36x384xbf16, #tpu.memory_space<vmem>>, vector<36x384xbf16>
    %cst = arith.constant dense<0.000000e+00> : vector<16x384xf32>
    %35 = tpu.matmul %3, %34, %cst {dimension_numbers = #tpu.dot_dimension_numbers<[1], [0], [0], [1], [0, 0, 1, 1], [], []>} : vector<16x36xbf16>, vector<36x384xbf16>, vector<16x384xf32> -> vector<16x384xf32>
    %36 = vector.broadcast %4 : vector<16x1xf32> to vector<16x384xf32>
    %37 = arith.addf %35, %36 : vector<16x384xf32>
    %cst_40 = arith.constant 0.000000e+00 : f32
    %38 = vector.broadcast %cst_40 : f32 to vector<16x384xf32>
    %39 = arith.maximumf %37, %38 : vector<16x384xf32>
    %40 = vector.broadcast %5 : vector<16x1xf32> to vector<16x384xf32>
    %41 = arith.mulf %39, %40 : vector<16x384xf32>
    %cst_41 = arith.constant dense<0.000000e+00> : vector<384xf32>
    %42 = vector.multi_reduction <add>, %41, %cst_41 [0] : vector<16x384xf32> to vector<384xf32>
    %43 = vector.shape_cast %42 : vector<384xf32> to vector<1x384xf32>
    %44 = vector.broadcast %6 : vector<1x1xf32> to vector<1x384xf32>
    %45 = arith.addf %43, %44 : vector<1x384xf32>
    %c0_42 = arith.constant 0 : index
    %c0_43 = arith.constant 0 : index
    %c512 = arith.constant 512 : index
    %46 = vector.load %arg2[%c0_42, %c0_43, %c512] : memref<1x4x4096xbf16, #tpu.memory_space<vmem>>, vector<1x4x384xbf16>
    %47 = vector.shape_cast %46 : vector<1x4x384xbf16> to vector<4x384xbf16>
    %c0_44 = arith.constant 0 : index
    %c0_45 = arith.constant 0 : index
    %48 = vector.load %arg10[%c0_44, %c0_45] : memref<36x384xbf16, #tpu.memory_space<vmem>>, vector<4x384xbf16>
    tpu.vector_store %arg10[%c0_44, %c0_45], %47 {strides = array<i32>} : memref<36x384xbf16, #tpu.memory_space<vmem>>, vector<4x384xbf16>,
    %c0_46 = arith.constant 0 : index
    %c0_47 = arith.constant 0 : index
    %c513 = arith.constant 513 : index
    %49 = vector.load %arg2[%c0_46, %c0_47, %c513] : memref<1x4x4096xbf16, #tpu.memory_space<vmem>>, vector<1x4x384xbf16>
    %50 = vector.shape_cast %49 : vector<1x4x384xbf16> to vector<4x384xbf16>
    %c4_48 = arith.constant 4 : index
    %c0_49 = arith.constant 0 : index
    %51 = vector.load %arg10[%c4_48, %c0_49] : memref<36x384xbf16, #tpu.memory_space<vmem>>, vector<4x384xbf16>
    tpu.vector_store %arg10[%c4_48, %c0_49], %50 {strides = array<i32>} : memref<36x384xbf16, #tpu.memory_space<vmem>>, vector<4x384xbf16>,
    %c0_50 = arith.constant 0 : index
    %c0_51 = arith.constant 0 : index
    %c514 = arith.constant 514 : index
    %52 = vector.load %arg2[%c0_50, %c0_51, %c514] : memref<1x4x4096xbf16, #tpu.memory_space<vmem>>, vector<1x4x384xbf16>
    %53 = vector.shape_cast %52 : vector<1x4x384xbf16> to vector<4x384xbf16>
    %c8_52 = arith.constant 8 : index
    %c0_53 = arith.constant 0 : index
    %54 = vector.load %arg10[%c8_52, %c0_53] : memref<36x384xbf16, #tpu.memory_space<vmem>>, vector<4x384xbf16>
    tpu.vector_store %arg10[%c8_52, %c0_53], %53 {strides = array<i32>} : memref<36x384xbf16, #tpu.memory_space<vmem>>, vector<4x384xbf16>,
    %c0_54 = arith.constant 0 : index
    %c0_55 = arith.constant 0 : index
    %c530 = arith.constant 530 : index
    %55 = vector.load %arg2[%c0_54, %c0_55, %c530] : memref<1x4x4096xbf16, #tpu.memory_space<vmem>>, vector<1x4x384xbf16>
    %56 = vector.shape_cast %55 : vector<1x4x384xbf16> to vector<4x384xbf16>
    %c12_56 = arith.constant 12 : index
    %c0_57 = arith.constant 0 : index
    %57 = vector.load %arg10[%c12_56, %c0_57] : memref<36x384xbf16, #tpu.memory_space<vmem>>, vector<4x384xbf16>
    tpu.vector_store %arg10[%c12_56, %c0_57], %56 {strides = array<i32>} : memref<36x384xbf16, #tpu.memory_space<vmem>>, vector<4x384xbf16>,
    %c0_58 = arith.constant 0 : index
    %c0_59 = arith.constant 0 : index
    %c531 = arith.constant 531 : index
    %58 = vector.load %arg2[%c0_58, %c0_59, %c531] : memref<1x4x4096xbf16, #tpu.memory_space<vmem>>, vector<1x4x384xbf16>
    %59 = vector.shape_cast %58 : vector<1x4x384xbf16> to vector<4x384xbf16>
    %c16_60 = arith.constant 16 : index
    %c0_61 = arith.constant 0 : index
    %60 = vector.load %arg10[%c16_60, %c0_61] : memref<36x384xbf16, #tpu.memory_space<vmem>>, vector<4x384xbf16>
    tpu.vector_store %arg10[%c16_60, %c0_61], %59 {strides = array<i32>} : memref<36x384xbf16, #tpu.memory_space<vmem>>, vector<4x384xbf16>,
    %c0_62 = arith.constant 0 : index
    %c0_63 = arith.constant 0 : index
    %c532 = arith.constant 532 : index
    %61 = vector.load %arg2[%c0_62, %c0_63, %c532] : memref<1x4x4096xbf16, #tpu.memory_space<vmem>>, vector<1x4x384xbf16>
    %62 = vector.shape_cast %61 : vector<1x4x384xbf16> to vector<4x384xbf16>
    %c20_64 = arith.constant 20 : index
    %c0_65 = arith.constant 0 : index
    %63 = vector.load %arg10[%c20_64, %c0_65] : memref<36x384xbf16, #tpu.memory_space<vmem>>, vector<4x384xbf16>
    tpu.vector_store %arg10[%c20_64, %c0_65], %62 {strides = array<i32>} : memref<36x384xbf16, #tpu.memory_space<vmem>>, vector<4x384xbf16>,
    %c0_66 = arith.constant 0 : index
    %c0_67 = arith.constant 0 : index
    %c548 = arith.constant 548 : index
    %64 = vector.load %arg2[%c0_66, %c0_67, %c548] : memref<1x4x4096xbf16, #tpu.memory_space<vmem>>, vector<1x4x384xbf16>
    %65 = vector.shape_cast %64 : vector<1x4x384xbf16> to vector<4x384xbf16>
    %c24_68 = arith.constant 24 : index
    %c0_69 = arith.constant 0 : index
    %66 = vector.load %arg10[%c24_68, %c0_69] : memref<36x384xbf16, #tpu.memory_space<vmem>>, vector<4x384xbf16>
    tpu.vector_store %arg10[%c24_68, %c0_69], %65 {strides = array<i32>} : memref<36x384xbf16, #tpu.memory_space<vmem>>, vector<4x384xbf16>,
    %c0_70 = arith.constant 0 : index
    %c0_71 = arith.constant 0 : index
    %c549 = arith.constant 549 : index
    %67 = vector.load %arg2[%c0_70, %c0_71, %c549] : memref<1x4x4096xbf16, #tpu.memory_space<vmem>>, vector<1x4x384xbf16>
    %68 = vector.shape_cast %67 : vector<1x4x384xbf16> to vector<4x384xbf16>
    %c28_72 = arith.constant 28 : index
    %c0_73 = arith.constant 0 : index
    %69 = vector.load %arg10[%c28_72, %c0_73] : memref<36x384xbf16, #tpu.memory_space<vmem>>, vector<4x384xbf16>
    tpu.vector_store %arg10[%c28_72, %c0_73], %68 {strides = array<i32>} : memref<36x384xbf16, #tpu.memory_space<vmem>>, vector<4x384xbf16>,
    %c0_74 = arith.constant 0 : index
    %c0_75 = arith.constant 0 : index
    %c550 = arith.constant 550 : index
    %70 = vector.load %arg2[%c0_74, %c0_75, %c550] : memref<1x4x4096xbf16, #tpu.memory_space<vmem>>, vector<1x4x384xbf16>
    %71 = vector.shape_cast %70 : vector<1x4x384xbf16> to vector<4x384xbf16>
    %c32_76 = arith.constant 32 : index
    %c0_77 = arith.constant 0 : index
    %72 = vector.load %arg10[%c32_76, %c0_77] : memref<36x384xbf16, #tpu.memory_space<vmem>>, vector<4x384xbf16>
    tpu.vector_store %arg10[%c32_76, %c0_77], %71 {strides = array<i32>} : memref<36x384xbf16, #tpu.memory_space<vmem>>, vector<4x384xbf16>,
    %c0_78 = arith.constant 0 : index
    %c0_79 = arith.constant 0 : index
    %73 = vector.load %arg10[%c0_78, %c0_79] : memref<36x384xbf16, #tpu.memory_space<vmem>>, vector<36x384xbf16>
    %cst_80 = arith.constant dense<0.000000e+00> : vector<16x384xf32>
    %74 = tpu.matmul %3, %73, %cst_80 {dimension_numbers = #tpu.dot_dimension_numbers<[1], [0], [0], [1], [0, 0, 1, 1], [], []>} : vector<16x36xbf16>, vector<36x384xbf16>, vector<16x384xf32> -> vector<16x384xf32>
    %75 = vector.broadcast %4 : vector<16x1xf32> to vector<16x384xf32>
    %76 = arith.addf %74, %75 : vector<16x384xf32>
    %cst_81 = arith.constant 0.000000e+00 : f32
    %77 = vector.broadcast %cst_81 : f32 to vector<16x384xf32>
    %78 = arith.maximumf %76, %77 : vector<16x384xf32>
    %79 = vector.broadcast %5 : vector<16x1xf32> to vector<16x384xf32>
    %80 = arith.mulf %78, %79 : vector<16x384xf32>
    %cst_82 = arith.constant dense<0.000000e+00> : vector<384xf32>
    %81 = vector.multi_reduction <add>, %80, %cst_82 [0] : vector<16x384xf32> to vector<384xf32>
    %82 = vector.shape_cast %81 : vector<384xf32> to vector<1x384xf32>
    %83 = vector.broadcast %6 : vector<1x1xf32> to vector<1x384xf32>
    %84 = arith.addf %82, %83 : vector<1x384xf32>
    %c0_83 = arith.constant 0 : index
    %c0_84 = arith.constant 0 : index
    %c1024 = arith.constant 1024 : index
    %85 = vector.load %arg2[%c0_83, %c0_84, %c1024] : memref<1x4x4096xbf16, #tpu.memory_space<vmem>>, vector<1x4x384xbf16>
    %86 = vector.shape_cast %85 : vector<1x4x384xbf16> to vector<4x384xbf16>
    %c0_85 = arith.constant 0 : index
    %c0_86 = arith.constant 0 : index
    %87 = vector.load %arg10[%c0_85, %c0_86] : memref<36x384xbf16, #tpu.memory_space<vmem>>, vector<4x384xbf16>
    tpu.vector_store %arg10[%c0_85, %c0_86], %86 {strides = array<i32>} : memref<36x384xbf16, #tpu.memory_space<vmem>>, vector<4x384xbf16>,
    %c0_87 = arith.constant 0 : index
    %c0_88 = arith.constant 0 : index
    %c1025 = arith.constant 1025 : index
    %88 = vector.load %arg2[%c0_87, %c0_88, %c1025] : memref<1x4x4096xbf16, #tpu.memory_space<vmem>>, vector<1x4x384xbf16>
    %89 = vector.shape_cast %88 : vector<1x4x384xbf16> to vector<4x384xbf16>
    %c4_89 = arith.constant 4 : index
    %c0_90 = arith.constant 0 : index
    %90 = vector.load %arg10[%c4_89, %c0_90] : memref<36x384xbf16, #tpu.memory_space<vmem>>, vector<4x384xbf16>
    tpu.vector_store %arg10[%c4_89, %c0_90], %89 {strides = array<i32>} : memref<36x384xbf16, #tpu.memory_space<vmem>>, vector<4x384xbf16>,
    %c0_91 = arith.constant 0 : index
    %c0_92 = arith.constant 0 : index
    %c1026 = arith.constant 1026 : index
    %91 = vector.load %arg2[%c0_91, %c0_92, %c1026] : memref<1x4x4096xbf16, #tpu.memory_space<vmem>>, vector<1x4x384xbf16>
    %92 = vector.shape_cast %91 : vector<1x4x384xbf16> to vector<4x384xbf16>
    %c8_93 = arith.constant 8 : index
    %c0_94 = arith.constant 0 : index
    %93 = vector.load %arg10[%c8_93, %c0_94] : memref<36x384xbf16, #tpu.memory_space<vmem>>, vector<4x384xbf16>
    tpu.vector_store %arg10[%c8_93, %c0_94], %92 {strides = array<i32>} : memref<36x384xbf16, #tpu.memory_space<vmem>>, vector<4x384xbf16>,
    %c0_95 = arith.constant 0 : index
    %c0_96 = arith.constant 0 : index
    %c1042 = arith.constant 1042 : index
    %94 = vector.load %arg2[%c0_95, %c0_96, %c1042] : memref<1x4x4096xbf16, #tpu.memory_space<vmem>>, vector<1x4x384xbf16>
    %95 = vector.shape_cast %94 : vector<1x4x384xbf16> to vector<4x384xbf16>
    %c12_97 = arith.constant 12 : index
    %c0_98 = arith.constant 0 : index
    %96 = vector.load %arg10[%c12_97, %c0_98] : memref<36x384xbf16, #tpu.memory_space<vmem>>, vector<4x384xbf16>
    tpu.vector_store %arg10[%c12_97, %c0_98], %95 {strides = array<i32>} : memref<36x384xbf16, #tpu.memory_space<vmem>>, vector<4x384xbf16>,
    %c0_99 = arith.constant 0 : index
    %c0_100 = arith.constant 0 : index
    %c1043 = arith.constant 1043 : index
    %97 = vector.load %arg2[%c0_99, %c0_100, %c1043] : memref<1x4x4096xbf16, #tpu.memory_space<vmem>>, vector<1x4x384xbf16>
    %98 = vector.shape_cast %97 : vector<1x4x384xbf16> to vector<4x384xbf16>
    %c16_101 = arith.constant 16 : index
    %c0_102 = arith.constant 0 : index
    %99 = vector.load %arg10[%c16_101, %c0_102] : memref<36x384xbf16, #tpu.memory_space<vmem>>, vector<4x384xbf16>
    tpu.vector_store %arg10[%c16_101, %c0_102], %98 {strides = array<i32>} : memref<36x384xbf16, #tpu.memory_space<vmem>>, vector<4x384xbf16>,
    %c0_103 = arith.constant 0 : index
    %c0_104 = arith.constant 0 : index
    %c1044 = arith.constant 1044 : index
    %100 = vector.load %arg2[%c0_103, %c0_104, %c1044] : memref<1x4x4096xbf16, #tpu.memory_space<vmem>>, vector<1x4x384xbf16>
    %101 = vector.shape_cast %100 : vector<1x4x384xbf16> to vector<4x384xbf16>
    %c20_105 = arith.constant 20 : index
    %c0_106 = arith.constant 0 : index
    %102 = vector.load %arg10[%c20_105, %c0_106] : memref<36x384xbf16, #tpu.memory_space<vmem>>, vector<4x384xbf16>
    tpu.vector_store %arg10[%c20_105, %c0_106], %101 {strides = array<i32>} : memref<36x384xbf16, #tpu.memory_space<vmem>>, vector<4x384xbf16>,
    %c0_107 = arith.constant 0 : index
    %c0_108 = arith.constant 0 : index
    %c1060 = arith.constant 1060 : index
    %103 = vector.load %arg2[%c0_107, %c0_108, %c1060] : memref<1x4x4096xbf16, #tpu.memory_space<vmem>>, vector<1x4x384xbf16>
    %104 = vector.shape_cast %103 : vector<1x4x384xbf16> to vector<4x384xbf16>
    %c24_109 = arith.constant 24 : index
    %c0_110 = arith.constant 0 : index
    %105 = vector.load %arg10[%c24_109, %c0_110] : memref<36x384xbf16, #tpu.memory_space<vmem>>, vector<4x384xbf16>
    tpu.vector_store %arg10[%c24_109, %c0_110], %104 {strides = array<i32>} : memref<36x384xbf16, #tpu.memory_space<vmem>>, vector<4x384xbf16>,
    %c0_111 = arith.constant 0 : index
    %c0_112 = arith.constant 0 : index
    %c1061 = arith.constant 1061 : index
    %106 = vector.load %arg2[%c0_111, %c0_112, %c1061] : memref<1x4x4096xbf16, #tpu.memory_space<vmem>>, vector<1x4x384xbf16>
    %107 = vector.shape_cast %106 : vector<1x4x384xbf16> to vector<4x384xbf16>
    %c28_113 = arith.constant 28 : index
    %c0_114 = arith.constant 0 : index
    %108 = vector.load %arg10[%c28_113, %c0_114] : memref<36x384xbf16, #tpu.memory_space<vmem>>, vector<4x384xbf16>
    tpu.vector_store %arg10[%c28_113, %c0_114], %107 {strides = array<i32>} : memref<36x384xbf16, #tpu.memory_space<vmem>>, vector<4x384xbf16>,
    %c0_115 = arith.constant 0 : index
    %c0_116 = arith.constant 0 : index
    %c1062 = arith.constant 1062 : index
    %109 = vector.load %arg2[%c0_115, %c0_116, %c1062] : memref<1x4x4096xbf16, #tpu.memory_space<vmem>>, vector<1x4x384xbf16>
    %110 = vector.shape_cast %109 : vector<1x4x384xbf16> to vector<4x384xbf16>
    %c32_117 = arith.constant 32 : index
    %c0_118 = arith.constant 0 : index
    %111 = vector.load %arg10[%c32_117, %c0_118] : memref<36x384xbf16, #tpu.memory_space<vmem>>, vector<4x384xbf16>
    tpu.vector_store %arg10[%c32_117, %c0_118], %110 {strides = array<i32>} : memref<36x384xbf16, #tpu.memory_space<vmem>>, vector<4x384xbf16>,
    %c0_119 = arith.constant 0 : index
    %c0_120 = arith.constant 0 : index
    %112 = vector.load %arg10[%c0_119, %c0_120] : memref<36x384xbf16, #tpu.memory_space<vmem>>, vector<36x384xbf16>
    %cst_121 = arith.constant dense<0.000000e+00> : vector<16x384xf32>
    %113 = tpu.matmul %3, %112, %cst_121 {dimension_numbers = #tpu.dot_dimension_numbers<[1], [0], [0], [1], [0, 0, 1, 1], [], []>} : vector<16x36xbf16>, vector<36x384xbf16>, vector<16x384xf32> -> vector<16x384xf32>
    %114 = vector.broadcast %4 : vector<16x1xf32> to vector<16x384xf32>
    %115 = arith.addf %113, %114 : vector<16x384xf32>
    %cst_122 = arith.constant 0.000000e+00 : f32
    %116 = vector.broadcast %cst_122 : f32 to vector<16x384xf32>
    %117 = arith.maximumf %115, %116 : vector<16x384xf32>
    %118 = vector.broadcast %5 : vector<16x1xf32> to vector<16x384xf32>
    %119 = arith.mulf %117, %118 : vector<16x384xf32>
    %cst_123 = arith.constant dense<0.000000e+00> : vector<384xf32>
    %120 = vector.multi_reduction <add>, %119, %cst_123 [0] : vector<16x384xf32> to vector<384xf32>
    %121 = vector.shape_cast %120 : vector<384xf32> to vector<1x384xf32>
    %122 = vector.broadcast %6 : vector<1x1xf32> to vector<1x384xf32>
    %123 = arith.addf %121, %122 : vector<1x384xf32>
    %c0_124 = arith.constant 0 : index
    %c0_125 = arith.constant 0 : index
    %c1536 = arith.constant 1536 : index
    %124 = vector.load %arg2[%c0_124, %c0_125, %c1536] : memref<1x4x4096xbf16, #tpu.memory_space<vmem>>, vector<1x4x384xbf16>
    %125 = vector.shape_cast %124 : vector<1x4x384xbf16> to vector<4x384xbf16>
    %c0_126 = arith.constant 0 : index
    %c0_127 = arith.constant 0 : index
    %126 = vector.load %arg10[%c0_126, %c0_127] : memref<36x384xbf16, #tpu.memory_space<vmem>>, vector<4x384xbf16>
    tpu.vector_store %arg10[%c0_126, %c0_127], %125 {strides = array<i32>} : memref<36x384xbf16, #tpu.memory_space<vmem>>, vector<4x384xbf16>,
    %c0_128 = arith.constant 0 : index
    %c0_129 = arith.constant 0 : index
    %c1537 = arith.constant 1537 : index
    %127 = vector.load %arg2[%c0_128, %c0_129, %c1537] : memref<1x4x4096xbf16, #tpu.memory_space<vmem>>, vector<1x4x384xbf16>
    %128 = vector.shape_cast %127 : vector<1x4x384xbf16> to vector<4x384xbf16>
    %c4_130 = arith.constant 4 : index
    %c0_131 = arith.constant 0 : index
    %129 = vector.load %arg10[%c4_130, %c0_131] : memref<36x384xbf16, #tpu.memory_space<vmem>>, vector<4x384xbf16>
    tpu.vector_store %arg10[%c4_130, %c0_131], %128 {strides = array<i32>} : memref<36x384xbf16, #tpu.memory_space<vmem>>, vector<4x384xbf16>,
    %c0_132 = arith.constant 0 : index
    %c0_133 = arith.constant 0 : index
    %c1538 = arith.constant 1538 : index
    %130 = vector.load %arg2[%c0_132, %c0_133, %c1538] : memref<1x4x4096xbf16, #tpu.memory_space<vmem>>, vector<1x4x384xbf16>
    %131 = vector.shape_cast %130 : vector<1x4x384xbf16> to vector<4x384xbf16>
    %c8_134 = arith.constant 8 : index
    %c0_135 = arith.constant 0 : index
    %132 = vector.load %arg10[%c8_134, %c0_135] : memref<36x384xbf16, #tpu.memory_space<vmem>>, vector<4x384xbf16>
    tpu.vector_store %arg10[%c8_134, %c0_135], %131 {strides = array<i32>} : memref<36x384xbf16, #tpu.memory_space<vmem>>, vector<4x384xbf16>,
    %c0_136 = arith.constant 0 : index
    %c0_137 = arith.constant 0 : index
    %c1554 = arith.constant 1554 : index
    %133 = vector.load %arg2[%c0_136, %c0_137, %c1554] : memref<1x4x4096xbf16, #tpu.memory_space<vmem>>, vector<1x4x384xbf16>
    %134 = vector.shape_cast %133 : vector<1x4x384xbf16> to vector<4x384xbf16>
    %c12_138 = arith.constant 12 : index
    %c0_139 = arith.constant 0 : index
    %135 = vector.load %arg10[%c12_138, %c0_139] : memref<36x384xbf16, #tpu.memory_space<vmem>>, vector<4x384xbf16>
    tpu.vector_store %arg10[%c12_138, %c0_139], %134 {strides = array<i32>} : memref<36x384xbf16, #tpu.memory_space<vmem>>, vector<4x384xbf16>,
    %c0_140 = arith.constant 0 : index
    %c0_141 = arith.constant 0 : index
    %c1555 = arith.constant 1555 : index
    %136 = vector.load %arg2[%c0_140, %c0_141, %c1555] : memref<1x4x4096xbf16, #tpu.memory_space<vmem>>, vector<1x4x384xbf16>
    %137 = vector.shape_cast %136 : vector<1x4x384xbf16> to vector<4x384xbf16>
    %c16_142 = arith.constant 16 : index
    %c0_143 = arith.constant 0 : index
    %138 = vector.load %arg10[%c16_142, %c0_143] : memref<36x384xbf16, #tpu.memory_space<vmem>>, vector<4x384xbf16>
    tpu.vector_store %arg10[%c16_142, %c0_143], %137 {strides = array<i32>} : memref<36x384xbf16, #tpu.memory_space<vmem>>, vector<4x384xbf16>,
    %c0_144 = arith.constant 0 : index
    %c0_145 = arith.constant 0 : index
    %c1556 = arith.constant 1556 : index
    %139 = vector.load %arg2[%c0_144, %c0_145, %c1556] : memref<1x4x4096xbf16, #tpu.memory_space<vmem>>, vector<1x4x384xbf16>
    %140 = vector.shape_cast %139 : vector<1x4x384xbf16> to vector<4x384xbf16>
    %c20_146 = arith.constant 20 : index
    %c0_147 = arith.constant 0 : index
    %141 = vector.load %arg10[%c20_146, %c0_147] : memref<36x384xbf16, #tpu.memory_space<vmem>>, vector<4x384xbf16>
    tpu.vector_store %arg10[%c20_146, %c0_147], %140 {strides = array<i32>} : memref<36x384xbf16, #tpu.memory_space<vmem>>, vector<4x384xbf16>,
    %c0_148 = arith.constant 0 : index
    %c0_149 = arith.constant 0 : index
    %c1572 = arith.constant 1572 : index
    %142 = vector.load %arg2[%c0_148, %c0_149, %c1572] : memref<1x4x4096xbf16, #tpu.memory_space<vmem>>, vector<1x4x384xbf16>
    %143 = vector.shape_cast %142 : vector<1x4x384xbf16> to vector<4x384xbf16>
    %c24_150 = arith.constant 24 : index
    %c0_151 = arith.constant 0 : index
    %144 = vector.load %arg10[%c24_150, %c0_151] : memref<36x384xbf16, #tpu.memory_space<vmem>>, vector<4x384xbf16>
    tpu.vector_store %arg10[%c24_150, %c0_151], %143 {strides = array<i32>} : memref<36x384xbf16, #tpu.memory_space<vmem>>, vector<4x384xbf16>,
    %c0_152 = arith.constant 0 : index
    %c0_153 = arith.constant 0 : index
    %c1573 = arith.constant 1573 : index
    %145 = vector.load %arg2[%c0_152, %c0_153, %c1573] : memref<1x4x4096xbf16, #tpu.memory_space<vmem>>, vector<1x4x384xbf16>
    %146 = vector.shape_cast %145 : vector<1x4x384xbf16> to vector<4x384xbf16>
    %c28_154 = arith.constant 28 : index
    %c0_155 = arith.constant 0 : index
    %147 = vector.load %arg10[%c28_154, %c0_155] : memref<36x384xbf16, #tpu.memory_space<vmem>>, vector<4x384xbf16>
    tpu.vector_store %arg10[%c28_154, %c0_155], %146 {strides = array<i32>} : memref<36x384xbf16, #tpu.memory_space<vmem>>, vector<4x384xbf16>,
    %c0_156 = arith.constant 0 : index
    %c0_157 = arith.constant 0 : index
    %c1574 = arith.constant 1574 : index
    %148 = vector.load %arg2[%c0_156, %c0_157, %c1574] : memref<1x4x4096xbf16, #tpu.memory_space<vmem>>, vector<1x4x384xbf16>
    %149 = vector.shape_cast %148 : vector<1x4x384xbf16> to vector<4x384xbf16>
    %c32_158 = arith.constant 32 : index
    %c0_159 = arith.constant 0 : index
    %150 = vector.load %arg10[%c32_158, %c0_159] : memref<36x384xbf16, #tpu.memory_space<vmem>>, vector<4x384xbf16>
    tpu.vector_store %arg10[%c32_158, %c0_159], %149 {strides = array<i32>} : memref<36x384xbf16, #tpu.memory_space<vmem>>, vector<4x384xbf16>,
    %c0_160 = arith.constant 0 : index
    %c0_161 = arith.constant 0 : index
    %151 = vector.load %arg10[%c0_160, %c0_161] : memref<36x384xbf16, #tpu.memory_space<vmem>>, vector<36x384xbf16>
    %cst_162 = arith.constant dense<0.000000e+00> : vector<16x384xf32>
    %152 = tpu.matmul %3, %151, %cst_162 {dimension_numbers = #tpu.dot_dimension_numbers<[1], [0], [0], [1], [0, 0, 1, 1], [], []>} : vector<16x36xbf16>, vector<36x384xbf16>, vector<16x384xf32> -> vector<16x384xf32>
    %153 = vector.broadcast %4 : vector<16x1xf32> to vector<16x384xf32>
    %154 = arith.addf %152, %153 : vector<16x384xf32>
    %cst_163 = arith.constant 0.000000e+00 : f32
    %155 = vector.broadcast %cst_163 : f32 to vector<16x384xf32>
    %156 = arith.maximumf %154, %155 : vector<16x384xf32>
    %157 = vector.broadcast %5 : vector<16x1xf32> to vector<16x384xf32>
    %158 = arith.mulf %156, %157 : vector<16x384xf32>
    %cst_164 = arith.constant dense<0.000000e+00> : vector<384xf32>
    %159 = vector.multi_reduction <add>, %158, %cst_164 [0] : vector<16x384xf32> to vector<384xf32>
    %160 = vector.shape_cast %159 : vector<384xf32> to vector<1x384xf32>
    %161 = vector.broadcast %6 : vector<1x1xf32> to vector<1x384xf32>
    %162 = arith.addf %160, %161 : vector<1x384xf32>
    %c0_165 = arith.constant 0 : index
    %c0_166 = arith.constant 0 : index
    %c2048 = arith.constant 2048 : index
    %163 = vector.load %arg2[%c0_165, %c0_166, %c2048] : memref<1x4x4096xbf16, #tpu.memory_space<vmem>>, vector<1x4x384xbf16>
    %164 = vector.shape_cast %163 : vector<1x4x384xbf16> to vector<4x384xbf16>
    %c0_167 = arith.constant 0 : index
    %c0_168 = arith.constant 0 : index
    %165 = vector.load %arg10[%c0_167, %c0_168] : memref<36x384xbf16, #tpu.memory_space<vmem>>, vector<4x384xbf16>
    tpu.vector_store %arg10[%c0_167, %c0_168], %164 {strides = array<i32>} : memref<36x384xbf16, #tpu.memory_space<vmem>>, vector<4x384xbf16>,
    %c0_169 = arith.constant 0 : index
    %c0_170 = arith.constant 0 : index
    %c2049 = arith.constant 2049 : index
    %166 = vector.load %arg2[%c0_169, %c0_170, %c2049] : memref<1x4x4096xbf16, #tpu.memory_space<vmem>>, vector<1x4x384xbf16>
    %167 = vector.shape_cast %166 : vector<1x4x384xbf16> to vector<4x384xbf16>
    %c4_171 = arith.constant 4 : index
    %c0_172 = arith.constant 0 : index
    %168 = vector.load %arg10[%c4_171, %c0_172] : memref<36x384xbf16, #tpu.memory_space<vmem>>, vector<4x384xbf16>
    tpu.vector_store %arg10[%c4_171, %c0_172], %167 {strides = array<i32>} : memref<36x384xbf16, #tpu.memory_space<vmem>>, vector<4x384xbf16>,
    %c0_173 = arith.constant 0 : index
    %c0_174 = arith.constant 0 : index
    %c2050 = arith.constant 2050 : index
    %169 = vector.load %arg2[%c0_173, %c0_174, %c2050] : memref<1x4x4096xbf16, #tpu.memory_space<vmem>>, vector<1x4x384xbf16>
    %170 = vector.shape_cast %169 : vector<1x4x384xbf16> to vector<4x384xbf16>
    %c8_175 = arith.constant 8 : index
    %c0_176 = arith.constant 0 : index
    %171 = vector.load %arg10[%c8_175, %c0_176] : memref<36x384xbf16, #tpu.memory_space<vmem>>, vector<4x384xbf16>
    tpu.vector_store %arg10[%c8_175, %c0_176], %170 {strides = array<i32>} : memref<36x384xbf16, #tpu.memory_space<vmem>>, vector<4x384xbf16>,
    %c0_177 = arith.constant 0 : index
    %c0_178 = arith.constant 0 : index
    %c2066 = arith.constant 2066 : index
    %172 = vector.load %arg2[%c0_177, %c0_178, %c2066] : memref<1x4x4096xbf16, #tpu.memory_space<vmem>>, vector<1x4x384xbf16>
    %173 = vector.shape_cast %172 : vector<1x4x384xbf16> to vector<4x384xbf16>
    %c12_179 = arith.constant 12 : index
    %c0_180 = arith.constant 0 : index
    %174 = vector.load %arg10[%c12_179, %c0_180] : memref<36x384xbf16, #tpu.memory_space<vmem>>, vector<4x384xbf16>
    tpu.vector_store %arg10[%c12_179, %c0_180], %173 {strides = array<i32>} : memref<36x384xbf16, #tpu.memory_space<vmem>>, vector<4x384xbf16>,
    %c0_181 = arith.constant 0 : index
    %c0_182 = arith.constant 0 : index
    %c2067 = arith.constant 2067 : index
    %175 = vector.load %arg2[%c0_181, %c0_182, %c2067] : memref<1x4x4096xbf16, #tpu.memory_space<vmem>>, vector<1x4x384xbf16>
    %176 = vector.shape_cast %175 : vector<1x4x384xbf16> to vector<4x384xbf16>
    %c16_183 = arith.constant 16 : index
    %c0_184 = arith.constant 0 : index
    %177 = vector.load %arg10[%c16_183, %c0_184] : memref<36x384xbf16, #tpu.memory_space<vmem>>, vector<4x384xbf16>
    tpu.vector_store %arg10[%c16_183, %c0_184], %176 {strides = array<i32>} : memref<36x384xbf16, #tpu.memory_space<vmem>>, vector<4x384xbf16>,
    %c0_185 = arith.constant 0 : index
    %c0_186 = arith.constant 0 : index
    %c2068 = arith.constant 2068 : index
    %178 = vector.load %arg2[%c0_185, %c0_186, %c2068] : memref<1x4x4096xbf16, #tpu.memory_space<vmem>>, vector<1x4x384xbf16>
    %179 = vector.shape_cast %178 : vector<1x4x384xbf16> to vector<4x384xbf16>
    %c20_187 = arith.constant 20 : index
    %c0_188 = arith.constant 0 : index
    %180 = vector.load %arg10[%c20_187, %c0_188] : memref<36x384xbf16, #tpu.memory_space<vmem>>, vector<4x384xbf16>
    tpu.vector_store %arg10[%c20_187, %c0_188], %179 {strides = array<i32>} : memref<36x384xbf16, #tpu.memory_space<vmem>>, vector<4x384xbf16>,
    %c0_189 = arith.constant 0 : index
    %c0_190 = arith.constant 0 : index
    %c2084 = arith.constant 2084 : index
    %181 = vector.load %arg2[%c0_189, %c0_190, %c2084] : memref<1x4x4096xbf16, #tpu.memory_space<vmem>>, vector<1x4x384xbf16>
    %182 = vector.shape_cast %181 : vector<1x4x384xbf16> to vector<4x384xbf16>
    %c24_191 = arith.constant 24 : index
    %c0_192 = arith.constant 0 : index
    %183 = vector.load %arg10[%c24_191, %c0_192] : memref<36x384xbf16, #tpu.memory_space<vmem>>, vector<4x384xbf16>
    tpu.vector_store %arg10[%c24_191, %c0_192], %182 {strides = array<i32>} : memref<36x384xbf16, #tpu.memory_space<vmem>>, vector<4x384xbf16>,
    %c0_193 = arith.constant 0 : index
    %c0_194 = arith.constant 0 : index
    %c2085 = arith.constant 2085 : index
    %184 = vector.load %arg2[%c0_193, %c0_194, %c2085] : memref<1x4x4096xbf16, #tpu.memory_space<vmem>>, vector<1x4x384xbf16>
    %185 = vector.shape_cast %184 : vector<1x4x384xbf16> to vector<4x384xbf16>
    %c28_195 = arith.constant 28 : index
    %c0_196 = arith.constant 0 : index
    %186 = vector.load %arg10[%c28_195, %c0_196] : memref<36x384xbf16, #tpu.memory_space<vmem>>, vector<4x384xbf16>
    tpu.vector_store %arg10[%c28_195, %c0_196], %185 {strides = array<i32>} : memref<36x384xbf16, #tpu.memory_space<vmem>>, vector<4x384xbf16>,
    %c0_197 = arith.constant 0 : index
    %c0_198 = arith.constant 0 : index
    %c2086 = arith.constant 2086 : index
    %187 = vector.load %arg2[%c0_197, %c0_198, %c2086] : memref<1x4x4096xbf16, #tpu.memory_space<vmem>>, vector<1x4x384xbf16>
    %188 = vector.shape_cast %187 : vector<1x4x384xbf16> to vector<4x384xbf16>
    %c32_199 = arith.constant 32 : index
    %c0_200 = arith.constant 0 : index
    %189 = vector.load %arg10[%c32_199, %c0_200] : memref<36x384xbf16, #tpu.memory_space<vmem>>, vector<4x384xbf16>
    tpu.vector_store %arg10[%c32_199, %c0_200], %188 {strides = array<i32>} : memref<36x384xbf16, #tpu.memory_space<vmem>>, vector<4x384xbf16>,
    %c0_201 = arith.constant 0 : index
    %c0_202 = arith.constant 0 : index
    %190 = vector.load %arg10[%c0_201, %c0_202] : memref<36x384xbf16, #tpu.memory_space<vmem>>, vector<36x384xbf16>
    %cst_203 = arith.constant dense<0.000000e+00> : vector<16x384xf32>
    %191 = tpu.matmul %3, %190, %cst_203 {dimension_numbers = #tpu.dot_dimension_numbers<[1], [0], [0], [1], [0, 0, 1, 1], [], []>} : vector<16x36xbf16>, vector<36x384xbf16>, vector<16x384xf32> -> vector<16x384xf32>
    %192 = vector.broadcast %4 : vector<16x1xf32> to vector<16x384xf32>
    %193 = arith.addf %191, %192 : vector<16x384xf32>
    %cst_204 = arith.constant 0.000000e+00 : f32
    %194 = vector.broadcast %cst_204 : f32 to vector<16x384xf32>
    %195 = arith.maximumf %193, %194 : vector<16x384xf32>
    %196 = vector.broadcast %5 : vector<16x1xf32> to vector<16x384xf32>
    %197 = arith.mulf %195, %196 : vector<16x384xf32>
    %cst_205 = arith.constant dense<0.000000e+00> : vector<384xf32>
    %198 = vector.multi_reduction <add>, %197, %cst_205 [0] : vector<16x384xf32> to vector<384xf32>
    %199 = vector.shape_cast %198 : vector<384xf32> to vector<1x384xf32>
    %200 = vector.broadcast %6 : vector<1x1xf32> to vector<1x384xf32>
    %201 = arith.addf %199, %200 : vector<1x384xf32>
    %c0_206 = arith.constant 0 : index
    %c0_207 = arith.constant 0 : index
    %c2560 = arith.constant 2560 : index
    %202 = vector.load %arg2[%c0_206, %c0_207, %c2560] : memref<1x4x4096xbf16, #tpu.memory_space<vmem>>, vector<1x4x384xbf16>
    %203 = vector.shape_cast %202 : vector<1x4x384xbf16> to vector<4x384xbf16>
    %c0_208 = arith.constant 0 : index
    %c0_209 = arith.constant 0 : index
    %204 = vector.load %arg10[%c0_208, %c0_209] : memref<36x384xbf16, #tpu.memory_space<vmem>>, vector<4x384xbf16>
    tpu.vector_store %arg10[%c0_208, %c0_209], %203 {strides = array<i32>} : memref<36x384xbf16, #tpu.memory_space<vmem>>, vector<4x384xbf16>,
    %c0_210 = arith.constant 0 : index
    %c0_211 = arith.constant 0 : index
    %c2561 = arith.constant 2561 : index
    %205 = vector.load %arg2[%c0_210, %c0_211, %c2561] : memref<1x4x4096xbf16, #tpu.memory_space<vmem>>, vector<1x4x384xbf16>
    %206 = vector.shape_cast %205 : vector<1x4x384xbf16> to vector<4x384xbf16>
    %c4_212 = arith.constant 4 : index
    %c0_213 = arith.constant 0 : index
    %207 = vector.load %arg10[%c4_212, %c0_213] : memref<36x384xbf16, #tpu.memory_space<vmem>>, vector<4x384xbf16>
    tpu.vector_store %arg10[%c4_212, %c0_213], %206 {strides = array<i32>} : memref<36x384xbf16, #tpu.memory_space<vmem>>, vector<4x384xbf16>,
    %c0_214 = arith.constant 0 : index
    %c0_215 = arith.constant 0 : index
    %c2562 = arith.constant 2562 : index
    %208 = vector.load %arg2[%c0_214, %c0_215, %c2562] : memref<1x4x4096xbf16, #tpu.memory_space<vmem>>, vector<1x4x384xbf16>
    %209 = vector.shape_cast %208 : vector<1x4x384xbf16> to vector<4x384xbf16>
    %c8_216 = arith.constant 8 : index
    %c0_217 = arith.constant 0 : index
    %210 = vector.load %arg10[%c8_216, %c0_217] : memref<36x384xbf16, #tpu.memory_space<vmem>>, vector<4x384xbf16>
    tpu.vector_store %arg10[%c8_216, %c0_217], %209 {strides = array<i32>} : memref<36x384xbf16, #tpu.memory_space<vmem>>, vector<4x384xbf16>,
    %c0_218 = arith.constant 0 : index
    %c0_219 = arith.constant 0 : index
    %c2578 = arith.constant 2578 : index
    %211 = vector.load %arg2[%c0_218, %c0_219, %c2578] : memref<1x4x4096xbf16, #tpu.memory_space<vmem>>, vector<1x4x384xbf16>
    %212 = vector.shape_cast %211 : vector<1x4x384xbf16> to vector<4x384xbf16>
    %c12_220 = arith.constant 12 : index
    %c0_221 = arith.constant 0 : index
    %213 = vector.load %arg10[%c12_220, %c0_221] : memref<36x384xbf16, #tpu.memory_space<vmem>>, vector<4x384xbf16>
    tpu.vector_store %arg10[%c12_220, %c0_221], %212 {strides = array<i32>} : memref<36x384xbf16, #tpu.memory_space<vmem>>, vector<4x384xbf16>,
    %c0_222 = arith.constant 0 : index
    %c0_223 = arith.constant 0 : index
    %c2579 = arith.constant 2579 : index
    %214 = vector.load %arg2[%c0_222, %c0_223, %c2579] : memref<1x4x4096xbf16, #tpu.memory_space<vmem>>, vector<1x4x384xbf16>
    %215 = vector.shape_cast %214 : vector<1x4x384xbf16> to vector<4x384xbf16>
    %c16_224 = arith.constant 16 : index
    %c0_225 = arith.constant 0 : index
    %216 = vector.load %arg10[%c16_224, %c0_225] : memref<36x384xbf16, #tpu.memory_space<vmem>>, vector<4x384xbf16>
    tpu.vector_store %arg10[%c16_224, %c0_225], %215 {strides = array<i32>} : memref<36x384xbf16, #tpu.memory_space<vmem>>, vector<4x384xbf16>,
    %c0_226 = arith.constant 0 : index
    %c0_227 = arith.constant 0 : index
    %c2580 = arith.constant 2580 : index
    %217 = vector.load %arg2[%c0_226, %c0_227, %c2580] : memref<1x4x4096xbf16, #tpu.memory_space<vmem>>, vector<1x4x384xbf16>
    %218 = vector.shape_cast %217 : vector<1x4x384xbf16> to vector<4x384xbf16>
    %c20_228 = arith.constant 20 : index
    %c0_229 = arith.constant 0 : index
    %219 = vector.load %arg10[%c20_228, %c0_229] : memref<36x384xbf16, #tpu.memory_space<vmem>>, vector<4x384xbf16>
    tpu.vector_store %arg10[%c20_228, %c0_229], %218 {strides = array<i32>} : memref<36x384xbf16, #tpu.memory_space<vmem>>, vector<4x384xbf16>,
    %c0_230 = arith.constant 0 : index
    %c0_231 = arith.constant 0 : index
    %c2596 = arith.constant 2596 : index
    %220 = vector.load %arg2[%c0_230, %c0_231, %c2596] : memref<1x4x4096xbf16, #tpu.memory_space<vmem>>, vector<1x4x384xbf16>
    %221 = vector.shape_cast %220 : vector<1x4x384xbf16> to vector<4x384xbf16>
    %c24_232 = arith.constant 24 : index
    %c0_233 = arith.constant 0 : index
    %222 = vector.load %arg10[%c24_232, %c0_233] : memref<36x384xbf16, #tpu.memory_space<vmem>>, vector<4x384xbf16>
    tpu.vector_store %arg10[%c24_232, %c0_233], %221 {strides = array<i32>} : memref<36x384xbf16, #tpu.memory_space<vmem>>, vector<4x384xbf16>,
    %c0_234 = arith.constant 0 : index
    %c0_235 = arith.constant 0 : index
    %c2597 = arith.constant 2597 : index
    %223 = vector.load %arg2[%c0_234, %c0_235, %c2597] : memref<1x4x4096xbf16, #tpu.memory_space<vmem>>, vector<1x4x384xbf16>
    %224 = vector.shape_cast %223 : vector<1x4x384xbf16> to vector<4x384xbf16>
    %c28_236 = arith.constant 28 : index
    %c0_237 = arith.constant 0 : index
    %225 = vector.load %arg10[%c28_236, %c0_237] : memref<36x384xbf16, #tpu.memory_space<vmem>>, vector<4x384xbf16>
    tpu.vector_store %arg10[%c28_236, %c0_237], %224 {strides = array<i32>} : memref<36x384xbf16, #tpu.memory_space<vmem>>, vector<4x384xbf16>,
    %c0_238 = arith.constant 0 : index
    %c0_239 = arith.constant 0 : index
    %c2598 = arith.constant 2598 : index
    %226 = vector.load %arg2[%c0_238, %c0_239, %c2598] : memref<1x4x4096xbf16, #tpu.memory_space<vmem>>, vector<1x4x384xbf16>
    %227 = vector.shape_cast %226 : vector<1x4x384xbf16> to vector<4x384xbf16>
    %c32_240 = arith.constant 32 : index
    %c0_241 = arith.constant 0 : index
    %228 = vector.load %arg10[%c32_240, %c0_241] : memref<36x384xbf16, #tpu.memory_space<vmem>>, vector<4x384xbf16>
    tpu.vector_store %arg10[%c32_240, %c0_241], %227 {strides = array<i32>} : memref<36x384xbf16, #tpu.memory_space<vmem>>, vector<4x384xbf16>,
    %c0_242 = arith.constant 0 : index
    %c0_243 = arith.constant 0 : index
    %229 = vector.load %arg10[%c0_242, %c0_243] : memref<36x384xbf16, #tpu.memory_space<vmem>>, vector<36x384xbf16>
    %cst_244 = arith.constant dense<0.000000e+00> : vector<16x384xf32>
    %230 = tpu.matmul %3, %229, %cst_244 {dimension_numbers = #tpu.dot_dimension_numbers<[1], [0], [0], [1], [0, 0, 1, 1], [], []>} : vector<16x36xbf16>, vector<36x384xbf16>, vector<16x384xf32> -> vector<16x384xf32>
    %231 = vector.broadcast %4 : vector<16x1xf32> to vector<16x384xf32>
    %232 = arith.addf %230, %231 : vector<16x384xf32>
    %cst_245 = arith.constant 0.000000e+00 : f32
    %233 = vector.broadcast %cst_245 : f32 to vector<16x384xf32>
    %234 = arith.maximumf %232, %233 : vector<16x384xf32>
    %235 = vector.broadcast %5 : vector<16x1xf32> to vector<16x384xf32>
    %236 = arith.mulf %234, %235 : vector<16x384xf32>
    %cst_246 = arith.constant dense<0.000000e+00> : vector<384xf32>
    %237 = vector.multi_reduction <add>, %236, %cst_246 [0] : vector<16x384xf32> to vector<384xf32>
    %238 = vector.shape_cast %237 : vector<384xf32> to vector<1x384xf32>
    %239 = vector.broadcast %6 : vector<1x1xf32> to vector<1x384xf32>
    %240 = arith.addf %238, %239 : vector<1x384xf32>
    %c0_247 = arith.constant 0 : index
    %c0_248 = arith.constant 0 : index
    %c3072 = arith.constant 3072 : index
    %241 = vector.load %arg2[%c0_247, %c0_248, %c3072] : memref<1x4x4096xbf16, #tpu.memory_space<vmem>>, vector<1x4x384xbf16>
    %242 = vector.shape_cast %241 : vector<1x4x384xbf16> to vector<4x384xbf16>
    %c0_249 = arith.constant 0 : index
    %c0_250 = arith.constant 0 : index
    %243 = vector.load %arg10[%c0_249, %c0_250] : memref<36x384xbf16, #tpu.memory_space<vmem>>, vector<4x384xbf16>
    tpu.vector_store %arg10[%c0_249, %c0_250], %242 {strides = array<i32>} : memref<36x384xbf16, #tpu.memory_space<vmem>>, vector<4x384xbf16>,
    %c0_251 = arith.constant 0 : index
    %c0_252 = arith.constant 0 : index
    %c3073 = arith.constant 3073 : index
    %244 = vector.load %arg2[%c0_251, %c0_252, %c3073] : memref<1x4x4096xbf16, #tpu.memory_space<vmem>>, vector<1x4x384xbf16>
    %245 = vector.shape_cast %244 : vector<1x4x384xbf16> to vector<4x384xbf16>
    %c4_253 = arith.constant 4 : index
    %c0_254 = arith.constant 0 : index
    %246 = vector.load %arg10[%c4_253, %c0_254] : memref<36x384xbf16, #tpu.memory_space<vmem>>, vector<4x384xbf16>
    tpu.vector_store %arg10[%c4_253, %c0_254], %245 {strides = array<i32>} : memref<36x384xbf16, #tpu.memory_space<vmem>>, vector<4x384xbf16>,
    %c0_255 = arith.constant 0 : index
    %c0_256 = arith.constant 0 : index
    %c3074 = arith.constant 3074 : index
    %247 = vector.load %arg2[%c0_255, %c0_256, %c3074] : memref<1x4x4096xbf16, #tpu.memory_space<vmem>>, vector<1x4x384xbf16>
    %248 = vector.shape_cast %247 : vector<1x4x384xbf16> to vector<4x384xbf16>
    %c8_257 = arith.constant 8 : index
    %c0_258 = arith.constant 0 : index
    %249 = vector.load %arg10[%c8_257, %c0_258] : memref<36x384xbf16, #tpu.memory_space<vmem>>, vector<4x384xbf16>
    tpu.vector_store %arg10[%c8_257, %c0_258], %248 {strides = array<i32>} : memref<36x384xbf16, #tpu.memory_space<vmem>>, vector<4x384xbf16>,
    %c0_259 = arith.constant 0 : index
    %c0_260 = arith.constant 0 : index
    %c3090 = arith.constant 3090 : index
    %250 = vector.load %arg2[%c0_259, %c0_260, %c3090] : memref<1x4x4096xbf16, #tpu.memory_space<vmem>>, vector<1x4x384xbf16>
    %251 = vector.shape_cast %250 : vector<1x4x384xbf16> to vector<4x384xbf16>
    %c12_261 = arith.constant 12 : index
    %c0_262 = arith.constant 0 : index
    %252 = vector.load %arg10[%c12_261, %c0_262] : memref<36x384xbf16, #tpu.memory_space<vmem>>, vector<4x384xbf16>
    tpu.vector_store %arg10[%c12_261, %c0_262], %251 {strides = array<i32>} : memref<36x384xbf16, #tpu.memory_space<vmem>>, vector<4x384xbf16>,
    %c0_263 = arith.constant 0 : index
    %c0_264 = arith.constant 0 : index
    %c3091 = arith.constant 3091 : index
    %253 = vector.load %arg2[%c0_263, %c0_264, %c3091] : memref<1x4x4096xbf16, #tpu.memory_space<vmem>>, vector<1x4x384xbf16>
    %254 = vector.shape_cast %253 : vector<1x4x384xbf16> to vector<4x384xbf16>
    %c16_265 = arith.constant 16 : index
    %c0_266 = arith.constant 0 : index
    %255 = vector.load %arg10[%c16_265, %c0_266] : memref<36x384xbf16, #tpu.memory_space<vmem>>, vector<4x384xbf16>
    tpu.vector_store %arg10[%c16_265, %c0_266], %254 {strides = array<i32>} : memref<36x384xbf16, #tpu.memory_space<vmem>>, vector<4x384xbf16>,
    %c0_267 = arith.constant 0 : index
    %c0_268 = arith.constant 0 : index
    %c3092 = arith.constant 3092 : index
    %256 = vector.load %arg2[%c0_267, %c0_268, %c3092] : memref<1x4x4096xbf16, #tpu.memory_space<vmem>>, vector<1x4x384xbf16>
    %257 = vector.shape_cast %256 : vector<1x4x384xbf16> to vector<4x384xbf16>
    %c20_269 = arith.constant 20 : index
    %c0_270 = arith.constant 0 : index
    %258 = vector.load %arg10[%c20_269, %c0_270] : memref<36x384xbf16, #tpu.memory_space<vmem>>, vector<4x384xbf16>
    tpu.vector_store %arg10[%c20_269, %c0_270], %257 {strides = array<i32>} : memref<36x384xbf16, #tpu.memory_space<vmem>>, vector<4x384xbf16>,
    %c0_271 = arith.constant 0 : index
    %c0_272 = arith.constant 0 : index
    %c3108 = arith.constant 3108 : index
    %259 = vector.load %arg2[%c0_271, %c0_272, %c3108] : memref<1x4x4096xbf16, #tpu.memory_space<vmem>>, vector<1x4x384xbf16>
    %260 = vector.shape_cast %259 : vector<1x4x384xbf16> to vector<4x384xbf16>
    %c24_273 = arith.constant 24 : index
    %c0_274 = arith.constant 0 : index
    %261 = vector.load %arg10[%c24_273, %c0_274] : memref<36x384xbf16, #tpu.memory_space<vmem>>, vector<4x384xbf16>
    tpu.vector_store %arg10[%c24_273, %c0_274], %260 {strides = array<i32>} : memref<36x384xbf16, #tpu.memory_space<vmem>>, vector<4x384xbf16>,
    %c0_275 = arith.constant 0 : index
    %c0_276 = arith.constant 0 : index
    %c3109 = arith.constant 3109 : index
    %262 = vector.load %arg2[%c0_275, %c0_276, %c3109] : memref<1x4x4096xbf16, #tpu.memory_space<vmem>>, vector<1x4x384xbf16>
    %263 = vector.shape_cast %262 : vector<1x4x384xbf16> to vector<4x384xbf16>
    %c28_277 = arith.constant 28 : index
    %c0_278 = arith.constant 0 : index
    %264 = vector.load %arg10[%c28_277, %c0_278] : memref<36x384xbf16, #tpu.memory_space<vmem>>, vector<4x384xbf16>
    tpu.vector_store %arg10[%c28_277, %c0_278], %263 {strides = array<i32>} : memref<36x384xbf16, #tpu.memory_space<vmem>>, vector<4x384xbf16>,
    %c0_279 = arith.constant 0 : index
    %c0_280 = arith.constant 0 : index
    %c3110 = arith.constant 3110 : index
    %265 = vector.load %arg2[%c0_279, %c0_280, %c3110] : memref<1x4x4096xbf16, #tpu.memory_space<vmem>>, vector<1x4x384xbf16>
    %266 = vector.shape_cast %265 : vector<1x4x384xbf16> to vector<4x384xbf16>
    %c32_281 = arith.constant 32 : index
    %c0_282 = arith.constant 0 : index
    %267 = vector.load %arg10[%c32_281, %c0_282] : memref<36x384xbf16, #tpu.memory_space<vmem>>, vector<4x384xbf16>
    tpu.vector_store %arg10[%c32_281, %c0_282], %266 {strides = array<i32>} : memref<36x384xbf16, #tpu.memory_space<vmem>>, vector<4x384xbf16>,
    %c0_283 = arith.constant 0 : index
    %c0_284 = arith.constant 0 : index
    %268 = vector.load %arg10[%c0_283, %c0_284] : memref<36x384xbf16, #tpu.memory_space<vmem>>, vector<36x384xbf16>
    %cst_285 = arith.constant dense<0.000000e+00> : vector<16x384xf32>
    %269 = tpu.matmul %3, %268, %cst_285 {dimension_numbers = #tpu.dot_dimension_numbers<[1], [0], [0], [1], [0, 0, 1, 1], [], []>} : vector<16x36xbf16>, vector<36x384xbf16>, vector<16x384xf32> -> vector<16x384xf32>
    %270 = vector.broadcast %4 : vector<16x1xf32> to vector<16x384xf32>
    %271 = arith.addf %269, %270 : vector<16x384xf32>
    %cst_286 = arith.constant 0.000000e+00 : f32
    %272 = vector.broadcast %cst_286 : f32 to vector<16x384xf32>
    %273 = arith.maximumf %271, %272 : vector<16x384xf32>
    %274 = vector.broadcast %5 : vector<16x1xf32> to vector<16x384xf32>
    %275 = arith.mulf %273, %274 : vector<16x384xf32>
    %cst_287 = arith.constant dense<0.000000e+00> : vector<384xf32>
    %276 = vector.multi_reduction <add>, %275, %cst_287 [0] : vector<16x384xf32> to vector<384xf32>
    %277 = vector.shape_cast %276 : vector<384xf32> to vector<1x384xf32>
    %278 = vector.broadcast %6 : vector<1x1xf32> to vector<1x384xf32>
    %279 = arith.addf %277, %278 : vector<1x384xf32>
    %c0_288 = arith.constant 0 : index
    %c0_289 = arith.constant 0 : index
    %c3584 = arith.constant 3584 : index
    %280 = vector.load %arg2[%c0_288, %c0_289, %c3584] : memref<1x4x4096xbf16, #tpu.memory_space<vmem>>, vector<1x4x384xbf16>
    %281 = vector.shape_cast %280 : vector<1x4x384xbf16> to vector<4x384xbf16>
    %c0_290 = arith.constant 0 : index
    %c0_291 = arith.constant 0 : index
    %282 = vector.load %arg10[%c0_290, %c0_291] : memref<36x384xbf16, #tpu.memory_space<vmem>>, vector<4x384xbf16>
    tpu.vector_store %arg10[%c0_290, %c0_291], %281 {strides = array<i32>} : memref<36x384xbf16, #tpu.memory_space<vmem>>, vector<4x384xbf16>,
    %c0_292 = arith.constant 0 : index
    %c0_293 = arith.constant 0 : index
    %c3585 = arith.constant 3585 : index
    %283 = vector.load %arg2[%c0_292, %c0_293, %c3585] : memref<1x4x4096xbf16, #tpu.memory_space<vmem>>, vector<1x4x384xbf16>
    %284 = vector.shape_cast %283 : vector<1x4x384xbf16> to vector<4x384xbf16>
    %c4_294 = arith.constant 4 : index
    %c0_295 = arith.constant 0 : index
    %285 = vector.load %arg10[%c4_294, %c0_295] : memref<36x384xbf16, #tpu.memory_space<vmem>>, vector<4x384xbf16>
    tpu.vector_store %arg10[%c4_294, %c0_295], %284 {strides = array<i32>} : memref<36x384xbf16, #tpu.memory_space<vmem>>, vector<4x384xbf16>,
    %c0_296 = arith.constant 0 : index
    %c0_297 = arith.constant 0 : index
    %c3586 = arith.constant 3586 : index
    %286 = vector.load %arg2[%c0_296, %c0_297, %c3586] : memref<1x4x4096xbf16, #tpu.memory_space<vmem>>, vector<1x4x384xbf16>
    %287 = vector.shape_cast %286 : vector<1x4x384xbf16> to vector<4x384xbf16>
    %c8_298 = arith.constant 8 : index
    %c0_299 = arith.constant 0 : index
    %288 = vector.load %arg10[%c8_298, %c0_299] : memref<36x384xbf16, #tpu.memory_space<vmem>>, vector<4x384xbf16>
    tpu.vector_store %arg10[%c8_298, %c0_299], %287 {strides = array<i32>} : memref<36x384xbf16, #tpu.memory_space<vmem>>, vector<4x384xbf16>,
    %c0_300 = arith.constant 0 : index
    %c0_301 = arith.constant 0 : index
    %c3602 = arith.constant 3602 : index
    %289 = vector.load %arg2[%c0_300, %c0_301, %c3602] : memref<1x4x4096xbf16, #tpu.memory_space<vmem>>, vector<1x4x384xbf16>
    %290 = vector.shape_cast %289 : vector<1x4x384xbf16> to vector<4x384xbf16>
    %c12_302 = arith.constant 12 : index
    %c0_303 = arith.constant 0 : index
    %291 = vector.load %arg10[%c12_302, %c0_303] : memref<36x384xbf16, #tpu.memory_space<vmem>>, vector<4x384xbf16>
    tpu.vector_store %arg10[%c12_302, %c0_303], %290 {strides = array<i32>} : memref<36x384xbf16, #tpu.memory_space<vmem>>, vector<4x384xbf16>,
    %c0_304 = arith.constant 0 : index
    %c0_305 = arith.constant 0 : index
    %c3603 = arith.constant 3603 : index
    %292 = vector.load %arg2[%c0_304, %c0_305, %c3603] : memref<1x4x4096xbf16, #tpu.memory_space<vmem>>, vector<1x4x384xbf16>
    %293 = vector.shape_cast %292 : vector<1x4x384xbf16> to vector<4x384xbf16>
    %c16_306 = arith.constant 16 : index
    %c0_307 = arith.constant 0 : index
    %294 = vector.load %arg10[%c16_306, %c0_307] : memref<36x384xbf16, #tpu.memory_space<vmem>>, vector<4x384xbf16>
    tpu.vector_store %arg10[%c16_306, %c0_307], %293 {strides = array<i32>} : memref<36x384xbf16, #tpu.memory_space<vmem>>, vector<4x384xbf16>,
    %c0_308 = arith.constant 0 : index
    %c0_309 = arith.constant 0 : index
    %c3604 = arith.constant 3604 : index
    %295 = vector.load %arg2[%c0_308, %c0_309, %c3604] : memref<1x4x4096xbf16, #tpu.memory_space<vmem>>, vector<1x4x384xbf16>
    %296 = vector.shape_cast %295 : vector<1x4x384xbf16> to vector<4x384xbf16>
    %c20_310 = arith.constant 20 : index
    %c0_311 = arith.constant 0 : index
    %297 = vector.load %arg10[%c20_310, %c0_311] : memref<36x384xbf16, #tpu.memory_space<vmem>>, vector<4x384xbf16>
    tpu.vector_store %arg10[%c20_310, %c0_311], %296 {strides = array<i32>} : memref<36x384xbf16, #tpu.memory_space<vmem>>, vector<4x384xbf16>,
    %c0_312 = arith.constant 0 : index
    %c0_313 = arith.constant 0 : index
    %c3620 = arith.constant 3620 : index
    %298 = vector.load %arg2[%c0_312, %c0_313, %c3620] : memref<1x4x4096xbf16, #tpu.memory_space<vmem>>, vector<1x4x384xbf16>
    %299 = vector.shape_cast %298 : vector<1x4x384xbf16> to vector<4x384xbf16>
    %c24_314 = arith.constant 24 : index
    %c0_315 = arith.constant 0 : index
    %300 = vector.load %arg10[%c24_314, %c0_315] : memref<36x384xbf16, #tpu.memory_space<vmem>>, vector<4x384xbf16>
    tpu.vector_store %arg10[%c24_314, %c0_315], %299 {strides = array<i32>} : memref<36x384xbf16, #tpu.memory_space<vmem>>, vector<4x384xbf16>,
    %c0_316 = arith.constant 0 : index
    %c0_317 = arith.constant 0 : index
    %c3621 = arith.constant 3621 : index
    %301 = vector.load %arg2[%c0_316, %c0_317, %c3621] : memref<1x4x4096xbf16, #tpu.memory_space<vmem>>, vector<1x4x384xbf16>
    %302 = vector.shape_cast %301 : vector<1x4x384xbf16> to vector<4x384xbf16>
    %c28_318 = arith.constant 28 : index
    %c0_319 = arith.constant 0 : index
    %303 = vector.load %arg10[%c28_318, %c0_319] : memref<36x384xbf16, #tpu.memory_space<vmem>>, vector<4x384xbf16>
    tpu.vector_store %arg10[%c28_318, %c0_319], %302 {strides = array<i32>} : memref<36x384xbf16, #tpu.memory_space<vmem>>, vector<4x384xbf16>,
    %c0_320 = arith.constant 0 : index
    %c0_321 = arith.constant 0 : index
    %c3622 = arith.constant 3622 : index
    %304 = vector.load %arg2[%c0_320, %c0_321, %c3622] : memref<1x4x4096xbf16, #tpu.memory_space<vmem>>, vector<1x4x384xbf16>
    %305 = vector.shape_cast %304 : vector<1x4x384xbf16> to vector<4x384xbf16>
    %c32_322 = arith.constant 32 : index
    %c0_323 = arith.constant 0 : index
    %306 = vector.load %arg10[%c32_322, %c0_323] : memref<36x384xbf16, #tpu.memory_space<vmem>>, vector<4x384xbf16>
    tpu.vector_store %arg10[%c32_322, %c0_323], %305 {strides = array<i32>} : memref<36x384xbf16, #tpu.memory_space<vmem>>, vector<4x384xbf16>,
    %c0_324 = arith.constant 0 : index
    %c0_325 = arith.constant 0 : index
    %307 = vector.load %arg10[%c0_324, %c0_325] : memref<36x384xbf16, #tpu.memory_space<vmem>>, vector<36x384xbf16>
    %cst_326 = arith.constant dense<0.000000e+00> : vector<16x384xf32>
    %308 = tpu.matmul %3, %307, %cst_326 {dimension_numbers = #tpu.dot_dimension_numbers<[1], [0], [0], [1], [0, 0, 1, 1], [], []>} : vector<16x36xbf16>, vector<36x384xbf16>, vector<16x384xf32> -> vector<16x384xf32>
    %309 = vector.broadcast %4 : vector<16x1xf32> to vector<16x384xf32>
    %310 = arith.addf %308, %309 : vector<16x384xf32>
    %cst_327 = arith.constant 0.000000e+00 : f32
    %311 = vector.broadcast %cst_327 : f32 to vector<16x384xf32>
    %312 = arith.maximumf %310, %311 : vector<16x384xf32>
    %313 = vector.broadcast %5 : vector<16x1xf32> to vector<16x384xf32>
    %314 = arith.mulf %312, %313 : vector<16x384xf32>
    %cst_328 = arith.constant dense<0.000000e+00> : vector<384xf32>
    %315 = vector.multi_reduction <add>, %314, %cst_328 [0] : vector<16x384xf32> to vector<384xf32>
    %316 = vector.shape_cast %315 : vector<384xf32> to vector<1x384xf32>
    %317 = vector.broadcast %6 : vector<1x1xf32> to vector<1x384xf32>
    %318 = arith.addf %316, %317 : vector<1x384xf32>
    %319 = tpu.concatenate %45, %84, %123, %162, %201, %240, %279, %318 in 0 : vector<1x384xf32>, vector<1x384xf32>, vector<1x384xf32>, vector<1x384xf32>, vector<1x384xf32>, vector<1x384xf32>, vector<1x384xf32>, vector<1x384xf32> -> vector<8x384xf32>
    %c0_329 = arith.constant 0 : index
    %c0_330 = arith.constant 0 : index
    %320 = vector.load %arg8[%c0_329, %c0_330] : memref<1x384xf32, #tpu.memory_space<vmem>>, vector<1x384xf32>
    %c0_331 = arith.constant 0 : index
    %c0_332 = arith.constant 0 : index
    %321 = vector.load %arg9[%c0_331, %c0_332] : memref<1x384xf32, #tpu.memory_space<vmem>>, vector<1x384xf32>
    %cst_333 = arith.constant dense<0xFF800000> : vector<384xf32>
    %322 = vector.multi_reduction <maximumf>, %319, %cst_333 [0] : vector<8x384xf32> to vector<384xf32>
    %323 = vector.shape_cast %322 : vector<384xf32> to vector<1x384xf32>
    %324 = arith.maximumf %320, %323 : vector<1x384xf32>
    %325 = vector.broadcast %324 : vector<1x384xf32> to vector<8x384xf32>
    %326 = arith.subf %319, %325 : vector<8x384xf32>
    %327 = math.exp %326 : vector<8x384xf32>
    %cst_334 = arith.constant dense<0.000000e+00> : vector<384xf32>
    %328 = vector.multi_reduction <add>, %327, %cst_334 [0] : vector<8x384xf32> to vector<384xf32>
    %329 = vector.shape_cast %328 : vector<384xf32> to vector<1x384xf32>
    %330 = arith.subf %320, %324 : vector<1x384xf32>
    %331 = math.exp %330 : vector<1x384xf32>
    %332 = arith.mulf %321, %331 : vector<1x384xf32>
    %333 = arith.addf %332, %329 : vector<1x384xf32>
    %c0_335 = arith.constant 0 : index
    %c0_336 = arith.constant 0 : index
    %334 = vector.load %arg9[%c0_335, %c0_336] : memref<1x384xf32, #tpu.memory_space<vmem>>, vector<1x384xf32>
    tpu.vector_store %arg9[%c0_335, %c0_336], %333 {strides = array<i32>} : memref<1x384xf32, #tpu.memory_space<vmem>>, vector<1x384xf32>,
    %c0_337 = arith.constant 0 : index
    %c0_338 = arith.constant 0 : index
    %335 = vector.load %arg8[%c0_337, %c0_338] : memref<1x384xf32, #tpu.memory_space<vmem>>, vector<1x384xf32>
    tpu.vector_store %arg8[%c0_337, %c0_338], %324 {strides = array<i32>} : memref<1x384xf32, #tpu.memory_space<vmem>>, vector<1x384xf32>,
    %c0_i32_339 = arith.constant 0 : i32
    %336 = arith.cmpi eq, %arg1, %c0_i32_339 : i32
    %337 = arith.extui %336 : i1 to i32
    %c0_i32_340 = arith.constant 0 : i32
    %338 = arith.cmpi ne, %337, %c0_i32_340 : i32
    scf.if %338 {
      %c0_341 = arith.constant 0 : index
      %c0_342 = arith.constant 0 : index
      %339 = vector.load %arg9[%c0_341, %c0_342] : memref<1x384xf32, #tpu.memory_space<vmem>>, vector<1x384xf32>
      %340 = tpu.reciprocal %339 : vector<1x384xf32> -> vector<1x384xf32>
      %c0_343 = arith.constant 0 : index
      %c0_344 = arith.constant 0 : index
      %c0_345 = arith.constant 0 : index
      %341 = vector.load %arg7[%c0_343, %c0_344, %c0_345] : memref<1x1x384xf32, #tpu.memory_space<vmem>>, vector<1x1x384xf32>
      %342 = vector.shape_cast %341 : vector<1x1x384xf32> to vector<1x384xf32>
      %343 = vector.shape_cast %340 : vector<1x384xf32> to vector<1x1x384xf32>
      tpu.vector_store %arg7[%c0_343, %c0_344, %c0_345], %343 {strides = array<i32>} : memref<1x1x384xf32, #tpu.memory_space<vmem>>, vector<1x1x384xf32>,
    } else {
    }
    return
  }
  func.func @transform_0(%arg0: i32, %arg1: i32) -> (i32, i32, i32) {
    %c0_i32 = arith.constant 0 : i32
    %c0_i32_0 = arith.constant 0 : i32
    return %arg0, %c0_i32, %arg1 : i32, i32, i32
  }
  func.func @transform_1(%arg0: i32, %arg1: i32) -> (i32, i32) {
    %c0_i32 = arith.constant 0 : i32
    %c0_i32_0 = arith.constant 0 : i32
    %c0_i32_1 = arith.constant 0 : i32
    return %c0_i32, %c0_i32_0 : i32, i32
  }
  func.func @transform_2(%arg0: i32, %arg1: i32) -> (i32, i32) {
    %c0_i32 = arith.constant 0 : i32
    %c0_i32_0 = arith.constant 0 : i32
    %c0_i32_1 = arith.constant 0 : i32
    return %c0_i32, %c0_i32_0 : i32, i32
  }
  func.func @transform_3(%arg0: i32, %arg1: i32) -> (i32, i32) {
    %c0_i32 = arith.constant 0 : i32
    %c0_i32_0 = arith.constant 0 : i32
    %c0_i32_1 = arith.constant 0 : i32
    return %c0_i32, %c0_i32_0 : i32, i32
  }
  func.func @transform_4(%arg0: i32, %arg1: i32) -> (i32, i32) {
    %c0_i32 = arith.constant 0 : i32
    %c0_i32_0 = arith.constant 0 : i32
    %c0_i32_1 = arith.constant 0 : i32
    return %c0_i32, %c0_i32_0 : i32, i32
  }
  func.func @transform_5(%arg0: i32, %arg1: i32) -> (i32, i32, i32) {
    %c0_i32 = arith.constant 0 : i32
    %c0_i32_0 = arith.constant 0 : i32
    %c0_i32_1 = arith.constant 0 : i32
    return %arg0, %c0_i32, %c0_i32_0 : i32, i32, i32
  }
}

</mosaic_0001>

<bundles_post_ra>
// kernel: pixel_view_weight.1
= control target key start
LH: loop header
LB: loop body
LE: loop exit
PB: predicated region body
PF: predicated region fallthrough
CT: control target
= control target key end

     0   :  { %s4511_s20 = smov 0   ;;  %s4513_s21 = smov 0   ;;  %s5411_s0 = inlined_call_operand.vmem [shape: bf16[2,4,4096], index: 0, kind: input, shape index: {}]   ;;  %s5412_s1 = inlined_call_operand.vmem [shape: bf16[16,36], index: 1, kind: input, shape index: {}]   ;;  %s5413_s2 = inlined_call_operand.vmem [shape: f32[16,1], index: 2, kind: input, shape index: {}]   ;;  %s5414_s3 = inlined_call_operand.vmem [shape: f32[16,1], index: 3, kind: input, shape index: {}]   ;;  %s5415_s4 = inlined_call_operand.<no memory space> [shape: f32[1,1], index: 4, kind: input, shape index: {}]   ;;  %s5416_s5 = inlined_call_operand.vmem [shape: f32[2,1,384], index: 5, kind: output, shape index: {}]  }
   0x1   :  { %v10_v0 = vstv %s5415_s4  ;;  %s4515_s22 = smov 0  }
   0x2   :  { %11 = vst [vmem:[#allocation5] sm:$0x1] %v10_v0 }
   0x3 LB: > { %s29_s4 = sadd.s32 1, %s4458_s21  ;;  %p4072_p0 = scmp.ge.s32.totalorder %s4462_s22, 1  ;;  %s4462_s22 = sphi %s4515_s22, %s17_s22   ;;  %s4458_s21 = sphi %s4513_s21, %s5420_s21   ;;  %s4454_s20 = sphi %s4511_s20, %s5419_s20  }
   0x4   : > { %p31_p1 = scmp.ge.s32.totalorder %s29_s4, 2  ;;  %p208_p2 = scmp.lt.s32.totalorder %s4462_s22, 3 }
   0x6   : > { %s5422_s4 = smov (%p31_p1, %s29_s4), 0  ;;  %p209_p3 = pnand %p4072_p0, %p208_p2 }
   0x7   : > { %p240_p4 = scmp.lt.s32.totalorder (!%p209_p3), %s4454_s20, 1  ;;  %s4465_s27 = smov (!%p209_p3), 90  }
   0x8   : > { %212 = sbr.rel (%p209_p3) target bundleno = 716 (0x2cc), region = 40  ;;  %s4466_s28 = smov (!%p209_p3), 109  }
   0x9   : > { %s4467_s29 = smov (!%p209_p3), 108   ;;  %s4469_s30 = smov (!%p209_p3), 92  }
   0xa   : > { %s4470_s6 = smov (!%p209_p3), 91   ;;  %s4471_s7 = smov (!%p209_p3), 127  }
   0xb   : > { %s4472_s8 = smov (!%p209_p3), 126   ;;  %s4473_s9 = smov (!%p209_p3), 110  }
   0xd   : > { %v258_v1 = vlaneseq  ;;  %v4464_v2 = vmov 1983009808   ;;  %s5424_s20 = smov (!%p240_p4, %s4454_s20), 1  ;;  %v4468_v13 = vmov 0.0   ;;  %vm4474_vm0 = vmmov 0  }
   0xe   : > { %v296_v3 = vunpack.c.l.s4 %v4464_v2  ;;  %s4190_s23 = sshll.u32 %s5424_s20, 6  ;;  %4223 = vmatprep.subr.bf16.mxu1 %v4468_v13  ;;  %4229 = vmatprep.mubr.msk.bf16.mxu1 %vm4474_vm0, %v4468_v13  ;;  %v4475_v21 = vmov 0   ;;  %vm315_vm1 = vcmask 1043456   ;;  %vm534_vm2 = vcmask 736256   ;;  %s4303_s25 = smul.u32 3, %s5424_s20 }
   0xf   : > { %v4532_v4 = vshrl.u32 %v258_v1, 7  ;;  %s4538_s26 = scalar_lea.vmem %s5411_s0, %s4190_s23  ;;  %652 = vmatprep.mubr.bf16.mxu0 %v4475_v21  ;;  %4343 = vset.pattern.permute.xlu1 %v4475_v21  ;;  %vm441_vm3 = vcmask 883712   ;;  %vm410_vm4 = vcmask 891904   ;;  %vm472_vm5 = vcmask 752640  }
  0x10   : > { %v297_v5 = vunpack.c.0.s8 %v296_v3  ;;  %v510_v7 = vld [vmem:[%s4538_s26] sm:$0xff]  ;;  %v990_v16 = vld [vmem:[%s4538_s26 + $0x8] sm:$0xff]  ;;  %4342 = vset.pattern.permute.xlu0 %v4475_v21  ;;  %v1430_v23 = vld [vmem:[%s4538_s26 + $0x10] sm:$0xff]  ;;  %vm610_vm6 = vcmask 1041408   ;;  %vm503_vm7 = vcmask 744448   ;;  %vm317_vm8 = vcmask 1039360  }
  0x11   : > { %v512_v9 = vcombine.high %v510_v7, %v510_v7  ;;  %v419_v11 = vcombine.low %v510_v7, %v510_v7  ;;  %v271_v14 = vld [vmem:[%s4538_s26] sm:$0x3f]  ;;  %v992_v17 = vcombine.high %v990_v16, %v990_v16  ;;  %v902_v20 = vcombine.low %v990_v16, %v990_v16  ;;  %v1870_v29 = vld [vmem:[%s4538_s26 + $0x18] sm:$0xff] }
  0x12   : > { %v4541_v6 = vsub.s32 %v297_v5, %v4532_v4  ;;  %v273_v15 = vcombine.high %v271_v14, %v271_v14  ;;  %4075 = vst.sshfl [vmem:[#allocation4] sm:$0xf pattern:$0x76325410] %v271_v14  ;;  %v1432_v24 = vcombine.high %v1430_v23, %v1430_v23  ;;  %v1342_v27 = vcombine.low %v1430_v23, %v1430_v23  ;;  %v4627_v37 = vld [vmem:[%s4538_s26 + $0x20] sm:$0xff] }
  0x13   : > { %v1872_v30 = vcombine.high %v1870_v29, %v1870_v29  ;;  %v1782_v33 = vcombine.low %v1870_v29, %v1870_v29  ;;  %v2312_v43 = vcombine.high %v4627_v37, %v4627_v37  ;;  %v2222_v0 = vcombine.low %v4627_v37, %v4627_v37 }
  0x14   : > { %v519_v8 = vrot.slane %v510_v7, %v4541_v6  ;;  %v526_v10 = vrot.slane %v512_v9, %v4541_v6  ;;  %v426_v12 = vrot.slane %v419_v11, %v4541_v6  ;;  %4076 = vst.sshfl [vmem:[#allocation4 + $0x8] sm:$0x3 pattern:$0x76325410] %v273_v15  ;;  %v1006_v18 = vrot.slane %v992_v17, %v4541_v6 }
  0x15   : > { %v999_v19 = vrot.slane %v990_v16, %v4541_v6  ;;  %v909_v22 = vrot.slane %v902_v20, %v4541_v6  ;;  %v1446_v25 = vrot.slane %v1432_v24, %v4541_v6  ;;  %v1439_v26 = vrot.slane %v1430_v23, %v4541_v6 }
  0x16   : > { %527 = vrot.lane.b32.xlu0 %v519_v8, %s4465_s27  ;;  %403 = vrot.lane.b32.xlu1 %v519_v8, %s4466_s28  ;;  %v1349_v28 = vrot.slane %v1342_v27, %v4541_v6  ;;  %v1886_v31 = vrot.slane %v1872_v30, %v4541_v6  ;;  %v1879_v32 = vrot.slane %v1870_v29, %v4541_v6  ;;  %vm348_vm9 = vcmask 1031168  }
  0x17   : > { %v1789_v34 = vrot.slane %v1782_v33, %v4541_v6  ;;  %v4640_v53 = vrot.slane %v2312_v43, %v4541_v6  ;;  %v4644_v54 = vrot.slane %v4627_v37, %v4541_v6  ;;  %v4666_v17 = vrot.slane %v2222_v0, %v4541_v6 }
  0x18   : > { %vm379_vm10 = vcmask 900096   ;;  %vm606_vm11 = vcmask 293888   ;;  %vm3839_vm12 = vcmask 1040384   ;;  %vm3846_vm13 = vcmask 1042432  }
  0x19   : > { %vm5191_vm14 = vcmp.lt.s32.totalorder %v258_v1, 384  ;;  %vm3854_vm15 = vcmask 1044480  }
  0x1a   : > { %529 = vrot.lane.b32.xlu0 %v526_v10, %s4465_s27  ;;  %436 = vrot.lane.b32.xlu1 %v519_v8, %s4467_s29  ;;  %263 = vst.msk [vmem:[#allocation3] sm:$0x7] %vm5191_vm14, %v4468_v13 }
  0x1e   : > { %434 = vrot.lane.b32.xlu0 %v426_v12, %s4467_s29  ;;  %405 = vrot.lane.b32.xlu1 %v526_v10, %s4466_s28 }
  0x22   : > { %465 = vrot.lane.b32.xlu0 %v519_v8, %s4469_s30  ;;  %467 = vrot.lane.b32.xlu1 %v526_v10, %s4469_s30 }
  0x26   : > { %496 = vrot.lane.b32.xlu0 %v426_v12, %s4470_s6  ;;  %498 = vrot.lane.b32.xlu1 %v519_v8, %s4470_s6 }
  0x2a   : > { %311 = vrot.lane.b32.xlu1 %v519_v8, %s4471_s7  ;;  %309 = vrot.lane.b32.xlu0 %v426_v12, %s4471_s7 }
  0x2e   : > { %343 = vrot.lane.b32.xlu1 %v526_v10, %s4472_s8  ;;  %341 = vrot.lane.b32.xlu0 %v519_v8, %s4472_s8 }
  0x32   : > { %374 = vrot.lane.b32.xlu1 %v519_v8, %s4473_s9  ;;  %372 = vrot.lane.b32.xlu0 %v426_v12, %s4473_s9 }
  0x36   : > { %1009 = vrot.lane.b32.xlu1 %v1006_v18, %s4465_s27  ;;  %1007 = vrot.lane.b32.xlu0 %v999_v19, %s4465_s27 }
  0x3a   : > { %889 = vrot.lane.b32.xlu1 %v1006_v18, %s4466_s28  ;;  %887 = vrot.lane.b32.xlu0 %v999_v19, %s4466_s28 }
  0x3e   : > { %919 = vrot.lane.b32.xlu1 %v999_v19, %s4467_s29  ;;  %917 = vrot.lane.b32.xlu0 %v909_v22, %s4467_s29 }
  0x42   : > { %949 = vrot.lane.b32.xlu1 %v1006_v18, %s4469_s30  ;;  %947 = vrot.lane.b32.xlu0 %v999_v19, %s4469_s30 }
  0x46   : > { %979 = vrot.lane.b32.xlu1 %v999_v19, %s4470_s6  ;;  %977 = vrot.lane.b32.xlu0 %v909_v22, %s4470_s6 }
  0x4a   : > { %799 = vrot.lane.b32.xlu1 %v999_v19, %s4471_s7  ;;  %797 = vrot.lane.b32.xlu0 %v909_v22, %s4471_s7 }
  0x4e   : > { %829 = vrot.lane.b32.xlu1 %v1006_v18, %s4472_s8  ;;  %827 = vrot.lane.b32.xlu0 %v999_v19, %s4472_s8 }
  0x52   : > { %859 = vrot.lane.b32.xlu1 %v999_v19, %s4473_s9  ;;  %857 = vrot.lane.b32.xlu0 %v909_v22, %s4473_s9 }
  0x56   : > { %1449 = vrot.lane.b32.xlu1 %v1446_v25, %s4465_s27  ;;  %1447 = vrot.lane.b32.xlu0 %v1439_v26, %s4465_s27 }
  0x5a   : > { %1329 = vrot.lane.b32.xlu1 %v1446_v25, %s4466_s28  ;;  %1327 = vrot.lane.b32.xlu0 %v1439_v26, %s4466_s28 }
  0x5e   : > { %1359 = vrot.lane.b32.xlu1 %v1439_v26, %s4467_s29  ;;  %1357 = vrot.lane.b32.xlu0 %v1349_v28, %s4467_s29 }
  0x62   : > { %1389 = vrot.lane.b32.xlu1 %v1446_v25, %s4469_s30  ;;  %1387 = vrot.lane.b32.xlu0 %v1439_v26, %s4469_s30 }
  0x66   : > { %1419 = vrot.lane.b32.xlu1 %v1439_v26, %s4470_s6  ;;  %1417 = vrot.lane.b32.xlu0 %v1349_v28, %s4470_s6 }
  0x6a   : > { %1239 = vrot.lane.b32.xlu1 %v1439_v26, %s4471_s7  ;;  %1237 = vrot.lane.b32.xlu0 %v1349_v28, %s4471_s7 }
  0x6e   : > { %1269 = vrot.lane.b32.xlu1 %v1446_v25, %s4472_s8  ;;  %1267 = vrot.lane.b32.xlu0 %v1439_v26, %s4472_s8 }
  0x72   : > { %1299 = vrot.lane.b32.xlu1 %v1439_v26, %s4473_s9  ;;  %1297 = vrot.lane.b32.xlu0 %v1349_v28, %s4473_s9 }
  0x76   : > { %1889 = vrot.lane.b32.xlu1 %v1886_v31, %s4465_s27  ;;  %1887 = vrot.lane.b32.xlu0 %v1879_v32, %s4465_s27 }
  0x7a   : > { %1769 = vrot.lane.b32.xlu1 %v1886_v31, %s4466_s28  ;;  %1767 = vrot.lane.b32.xlu0 %v1879_v32, %s4466_s28 }
  0x7e   : > { %1799 = vrot.lane.b32.xlu1 %v1879_v32, %s4467_s29  ;;  %1797 = vrot.lane.b32.xlu0 %v1789_v34, %s4467_s29 }
  0x82   : > { %1829 = vrot.lane.b32.xlu1 %v1886_v31, %s4469_s30  ;;  %1827 = vrot.lane.b32.xlu0 %v1879_v32, %s4469_s30 }
  0x86   : > { %1859 = vrot.lane.b32.xlu1 %v1879_v32, %s4470_s6  ;;  %1857 = vrot.lane.b32.xlu0 %v1789_v34, %s4470_s6 }
  0x88   : > { %v528_v35 = vpop.permute.xlu0 %527  ;;  %v404_v36 = vpop.permute.xlu1 %403 }
  0x89   : > { %v531_v40 = vrot.slane %v528_v35, 4  ;;  %v407_v50 = vrot.slane %v404_v36, 4 }
  0x8a   : > { %1679 = vrot.lane.b32.xlu1 %v1879_v32, %s4471_s7  ;;  %1677 = vrot.lane.b32.xlu0 %v1789_v34, %s4471_s7 }
  0x8c   : > { %v530_v38 = vpop.permute.xlu0 %529  ;;  %v437_v39 = vpop.permute.xlu1 %436 }
  0x8d   : > { %v532_v41 = vrot.slane %v530_v38, 4  ;;  %v439_v42 = vrot.slane %v437_v39, 4 }
  0x8e   : > { %1709 = vrot.lane.b32.xlu1 %v1886_v31, %s4472_s8  ;;  %1707 = vrot.lane.b32.xlu0 %v1879_v32, %s4472_s8 }
  0x8f   : > { %v533_v44 = vsel %vm315_vm1, %v531_v40, %v532_v41  ;;  %v536_v45 = vsel %vm534_vm2, %v530_v38, %v532_v41  ;;  %v443_v46 = vsel %vm441_vm3, %v437_v39, %v439_v42 }
  0x90   : > { %v535_v47 = vsel %vm534_vm2, %v528_v35, %v533_v44  ;;  %540 = vst [vmem:[#allocation4 + $0x38] sm:$0x3] %v536_v45  ;;  %447 = vst [vmem:[#allocation4 + $0x20] sm:$0xc] %v443_v46  ;;  %v435_v48 = vpop.permute.xlu0 %434  ;;  %v406_v49 = vpop.permute.xlu1 %405 }
  0x91   : > { %539 = vst [vmem:[#allocation4 + $0x30] sm:$0x33] %v535_v47  ;;  %v438_v51 = vrot.slane %v435_v48, 4  ;;  %v408_v52 = vrot.slane %v406_v49, 4 }
  0x92   : > { %1739 = vrot.lane.b32.xlu1 %v1879_v32, %s4473_s9  ;;  %1737 = vrot.lane.b32.xlu0 %v1789_v34, %s4473_s9  ;;  %v759_v34 = vld [vmem:[%s4538_s26 + $0x8] sm:$0x3f] }
  0x93   : > { %v440_v55 = vsel %vm315_vm1, %v438_v51, %v439_v42  ;;  %v409_v56 = vsel %vm315_vm1, %v407_v50, %v408_v52  ;;  %v412_v57 = vsel %vm410_vm4, %v406_v49, %v408_v52  ;;  %v761_v45 = vcombine.high %v759_v34, %v759_v34 }
  0x94   : > { %v442_v58 = vsel %vm441_vm3, %v435_v48, %v440_v55  ;;  %v411_v59 = vsel %vm410_vm4, %v404_v36, %v409_v56  ;;  %416 = vst [vmem:[#allocation4 + $0x20] sm:$0x3] %v412_v57  ;;  %v466_v60 = vpop.permute.xlu0 %465  ;;  %v468_v61 = vpop.permute.xlu1 %467 }
  0x95   : > { %446 = vst [vmem:[#allocation4 + $0x18] sm:$0xcc] %v442_v58  ;;  %415 = vst [vmem:[#allocation4 + $0x18] sm:$0x33] %v411_v59  ;;  %v469_v62 = vrot.slane %v466_v60, 4  ;;  %v470_v63 = vrot.slane %v468_v61, 4 }
  0x96   : > { %2329 = vrot.lane.b32.xlu1 %v4640_v53, %s4465_s27  ;;  %2327 = vrot.lane.b32.xlu0 %v4644_v54, %s4465_s27 }
  0x97   : > { %v471_v2 = vsel %vm315_vm1, %v469_v62, %v470_v63  ;;  %v474_v3 = vsel %vm472_vm5, %v468_v61, %v470_v63  ;;  %v4354_v5 = vld [vmem:[#allocation4 + $0x38] ss:$0 sps:$4 sm:$0x33]   ;;  %v4704_v63 = vld [vmem:[%s4538_s26 + $0x28] sm:$0xff] }
  0x98   : > { %v473_v7 = vsel %vm472_vm5, %v466_v60, %v471_v2  ;;  %478 = vst [vmem:[#allocation4 + $0x2c] sm:$0x3] %v474_v3  ;;  %v497_v8 = vpop.permute.xlu0 %496  ;;  %v499_v9 = vpop.permute.xlu1 %498  ;;  %v549_v10 = vld [vmem:[#allocation4 + $0x30] sm:$0x33]  ;;  %v618_v15 = vsel %vm610_vm6, %v4354_v5, 0 }
  0x99   : > { %477 = vst [vmem:[#allocation4 + $0x24] sm:$0x33] %v473_v7  ;;  %v500_v11 = vrot.slane %v497_v8, 4  ;;  %v501_v12 = vrot.slane %v499_v9, 4  ;;  %v4085_v14 = vcombine.high %v549_v10, %v549_v10  ;;  %v4084_v16 = vcombine.low %v549_v10, %v549_v10  ;;  %4224 = vmatpush3.bf16.msra.mxu1 %v618_v15 }
  0x9a   : > { %2209 = vrot.lane.b32.xlu1 %v4640_v53, %s4466_s28  ;;  %2207 = vrot.lane.b32.xlu0 %v4644_v54, %s4466_s28 }
  0x9b   : > { %v502_v18 = vsel %vm315_vm1, %v500_v11, %v501_v12  ;;  %v505_v19 = vsel %vm503_vm7, %v499_v9, %v501_v12  ;;  %4087 = vmatprep.subr.msk.bf16.mxu0 %vm610_vm6, %v4085_v14  ;;  %v612_v22 = vsel %vm610_vm6, %v4084_v16, 0  ;;  %4225 = vmatprep.subr.bf16.mxu1 %v4468_v13  ;;  %v546_v35 = vld [vmem:[#allocation4 + $0x20] sm:$0xf] }
  0x9c   : > { %v504_v20 = vsel %vm503_vm7, %v497_v8, %v502_v18  ;;  %509 = vst [vmem:[#allocation4 + $0x2c] sm:$0xc] %v505_v19  ;;  %v312_v23 = vpop.permute.xlu1 %311  ;;  %v310_v24 = vpop.permute.xlu0 %309  ;;  %631 = vmatpush1.bf16.msra.mxu0 %v612_v22  ;;  %v545_v39 = vld [vmem:[#allocation4 + $0x18] sm:$0xff]  ;;  %v2752_v8 = vcombine.high %v4704_v63, %v4704_v63 }
  0x9d   : > { %508 = vst [vmem:[#allocation4 + $0x24] sm:$0xcc] %v504_v20  ;;  %v314_v25 = vrot.slane %v312_v23, 4  ;;  %v313_v26 = vrot.slane %v310_v24, 4 }
  0x9e   : > { %2239 = vrot.lane.b32.xlu1 %v4644_v54, %s4467_s29  ;;  %2237 = vrot.lane.b32.xlu0 %v4666_v17, %s4467_s29 }
  0x9f   : > { %v319_v27 = vsel %vm317_vm8, %v312_v23, %v314_v25  ;;  %v316_v28 = vsel %vm315_vm1, %v313_v26, %v314_v25  ;;  %v4719_v23 = vld [vmem:[%s5412_s1] sm:$0xff]  }
  0xa0   : > { %323 = vst [vmem:[#allocation4 + $0x8] sm:$0xc] %v319_v27  ;;  %v318_v29 = vsel %vm317_vm8, %v310_v24, %v316_v28  ;;  %v344_v30 = vpop.permute.xlu1 %343  ;;  %v342_v31 = vpop.permute.xlu0 %341  ;;  %v4724_v24 = vrot.slane %v2752_v8, %v4541_v6  ;;  %v4732_v27 = vrot.slane %v4704_v63, %v4541_v6 }
  0xa1   : > { %322 = vst [vmem:[#allocation4] sm:$0xcc] %v318_v29  ;;  %v346_v32 = vrot.slane %v344_v30, 4  ;;  %v345_v33 = vrot.slane %v342_v31, 4 }
  0xa2   : > { %2269 = vrot.lane.b32.xlu1 %v4640_v53, %s4469_s30  ;;  %2267 = vrot.lane.b32.xlu0 %v4644_v54, %s4469_s30 }
  0xa3   : > { %v548_v36 = vld [vmem:[#allocation4 + $0x2c] sm:$0xf]  ;;  %v350_v37 = vsel %vm348_vm9, %v344_v30, %v346_v32  ;;  %v347_v38 = vsel %vm315_vm1, %v345_v33, %v346_v32 }
  0xa4   : > { %v547_v40 = vld [vmem:[#allocation4 + $0x24] sm:$0xff]  ;;  %354 = vst [vmem:[#allocation4 + $0x14] sm:$0x3] %v350_v37  ;;  %v349_v41 = vsel %vm348_vm9, %v342_v31, %v347_v38  ;;  %v375_v42 = vpop.permute.xlu1 %374  ;;  %v373_v43 = vpop.permute.xlu0 %372  ;;  %v4083_v44 = vcombine.low %v546_v35, %v548_v36  ;;  %v2662_v38 = vcombine.low %v4704_v63, %v4704_v63 }
  0xa5   : > { %353 = vst [vmem:[#allocation4 + $0xc] sm:$0x33] %v349_v41  ;;  %v377_v46 = vrot.slane %v375_v42, 4  ;;  %v376_v47 = vrot.slane %v373_v43, 4  ;;  %v4082_v48 = vcombine.high %v545_v39, %v547_v40  ;;  %v4081_v49 = vcombine.low %v545_v39, %v547_v40 }
  0xa6   : > { %4226 = vmatpush3.bf16.msra.mxu1 %v4083_v44  ;;  %2299 = vrot.lane.b32.xlu1 %v4644_v54, %s4470_s6 }
  0xa7   : > { %v542_v50 = vld [vmem:[#allocation4 + $0x8] sm:$0xf]  ;;  %v381_v51 = vsel %vm379_vm10, %v375_v42, %v377_v46  ;;  %v378_v52 = vsel %vm315_vm1, %v376_v47, %v377_v46  ;;  %2297 = vrot.lane.b32.xlu0 %v4666_v17, %s4470_s6  ;;  %632 = vmatprep.subr.bf16.mxu0 %v4082_v48  ;;  %v4763_v47 = vrot.slane %v2662_v38, %v4541_v6 }
  0xa8   : > { %v541_v55 = vld [vmem:[#allocation4] sm:$0xff]  ;;  %385 = vst [vmem:[#allocation4 + $0x14] sm:$0xc] %v381_v51  ;;  %v380_v56 = vsel %vm379_vm10, %v373_v43, %v378_v52  ;;  %633 = vmatpush1.bf16.msra.mxu0 %v4081_v49  ;;  %v1010_v57 = vpop.permute.xlu1 %1009  ;;  %v1008_v58 = vpop.permute.xlu0 %1007  ;;  %4227 = vmatprep.subr.bf16.mxu1 %v4468_v13 }
  0xa9   : > { %4091 = vst.sshfl [vmem:[#allocation4 + $0x8] sm:$0x3 pattern:$0x76325410] %v761_v45  ;;  %384 = vst [vmem:[#allocation4 + $0xc] sm:$0xcc] %v380_v56 }
  0xaa   : > { %v1012_v59 = vrot.slane %v1010_v57, 4  ;;  %v1011_v60 = vrot.slane %v1008_v58, 4  ;;  %4090 = vst.sshfl [vmem:[#allocation4] sm:$0xf pattern:$0x76325410] %v759_v34  ;;  %2119 = vrot.lane.b32.xlu1 %v4644_v54, %s4471_s7 }
  0xab   : > { %2117 = vrot.lane.b32.xlu0 %v4666_v17, %s4471_s7 }
  0xac   : > { %v1015_v61 = vsel %vm534_vm2, %v1010_v57, %v1012_v59  ;;  %v1013_v62 = vsel %vm315_vm1, %v1011_v60, %v1012_v59  ;;  %v890_v2 = vpop.permute.xlu1 %889  ;;  %v888_v3 = vpop.permute.xlu0 %887 }
  0xad   : > { %1019 = vst [vmem:[#allocation4 + $0x38] sm:$0x3] %v1015_v61  ;;  %v1014_v0 = vsel %vm534_vm2, %v1008_v58, %v1013_v62  ;;  %v892_v5 = vrot.slane %v890_v2, 4  ;;  %v891_v7 = vrot.slane %v888_v3, 4  ;;  %v1199_v62 = vld [vmem:[%s4538_s26 + $0x10] sm:$0x3f] }
  0xae   : > { %1018 = vst [vmem:[#allocation4 + $0x30] sm:$0x33] %v1014_v0  ;;  %2149 = vrot.lane.b32.xlu1 %v4640_v53, %s4472_s8 }
  0xaf   : > { %v544_v9 = vld [vmem:[#allocation4 + $0x14] sm:$0xf]  ;;  %v895_v10 = vsel %vm410_vm4, %v890_v2, %v892_v5  ;;  %v893_v11 = vsel %vm315_vm1, %v891_v7, %v892_v5  ;;  %2147 = vrot.lane.b32.xlu0 %v4644_v54, %s4472_s8 }
  0xb0   : > { %v543_v12 = vld [vmem:[#allocation4 + $0xc] sm:$0xff]  ;;  %899 = vst [vmem:[#allocation4 + $0x20] sm:$0x3] %v895_v10  ;;  %v894_v14 = vsel %vm410_vm4, %v888_v3, %v893_v11  ;;  %v920_v15 = vpop.permute.xlu1 %919  ;;  %v918_v16 = vpop.permute.xlu0 %917  ;;  %v4080_v18 = vcombine.low %v542_v50, %v544_v9 }
  0xb1   : > { %898 = vst [vmem:[#allocation4 + $0x18] sm:$0x33] %v894_v14  ;;  %v922_v53 = vrot.slane %v920_v15, 4  ;;  %v921_v19 = vrot.slane %v918_v16, 4  ;;  %v4079_v20 = vcombine.high %v541_v55, %v543_v12  ;;  %v4078_v22 = vcombine.low %v541_v55, %v543_v12 }
  0xb2   : > { %2179 = vrot.lane.b32.xlu1 %v4644_v54, %s4473_s9  ;;  %4228 = vmatpush3.bf16.msra.mxu1 %v4080_v18  ;;  %v1201_v12 = vcombine.high %v1199_v62, %v1199_v62 }
  0xb3   : > { %v925_v25 = vsel %vm441_vm3, %v920_v15, %v922_v53  ;;  %v923_v26 = vsel %vm315_vm1, %v921_v19, %v922_v53  ;;  %2177 = vrot.lane.b32.xlu0 %v4666_v17, %s4473_s9  ;;  %634 = vmatprep.subr.bf16.mxu0 %v4079_v20 }
  0xb4   : > { %v4360_v28 = vld [vmem:[#allocation4 + $0x38] ss:$0 sps:$4 sm:$0x33]   ;;  %929 = vst [vmem:[#allocation4 + $0x20] sm:$0xc] %v925_v25  ;;  %v924_v54 = vsel %vm441_vm3, %v918_v16, %v923_v26  ;;  %v950_v29 = vpop.permute.xlu1 %949  ;;  %v948_v30 = vpop.permute.xlu0 %947  ;;  %635 = vmatpush1.bf16.msra.mxu0 %v4078_v22  ;;  %4233 = vmatprep.subr.bf16.mxu1 %v4468_v13 }
  0xb5   : > { %v1028_v31 = vld [vmem:[#allocation4 + $0x30] sm:$0x33]  ;;  %928 = vst [vmem:[#allocation4 + $0x18] sm:$0xcc] %v924_v54  ;;  %v952_v32 = vrot.slane %v950_v29, 4  ;;  %v951_v33 = vrot.slane %v948_v30, 4  ;;  %4230 = vmatmul.mubr.msk.bf16.vlgmr.msra.gmra.mxu1 %vm606_vm11, %v4719_v23 }
  0xb6   : > { %v4099_v17 = vcombine.high %v1028_v31, %v1028_v31  ;;  %v1077_v34 = vsel %vm610_vm6, %v4360_v28, 0  ;;  %2769 = vrot.lane.b32.xlu1 %v4724_v24, %s4465_s27  ;;  %v4098_v35 = vcombine.low %v1028_v31, %v1028_v31  ;;  %4239 = vmatprep.mubr.msk.bf16.mxu1 %vm4474_vm0, %v4468_v13 }
  0xb7   : > { %4234 = vmatpush3.bf16.msra.mxu1 %v1077_v34  ;;  %v955_v36 = vsel %vm472_vm5, %v950_v29, %v952_v32  ;;  %v953_v37 = vsel %vm315_vm1, %v951_v33, %v952_v32  ;;  %2767 = vrot.lane.b32.xlu0 %v4732_v27, %s4465_s27  ;;  %v4796_v32 = vld [vmem:[%s4538_s26 + $0x30] sm:$0xff] }
  0xb8   : > { %4101 = vmatprep.subr.msk.bf16.mxu0 %vm610_vm6, %v4099_v17  ;;  %959 = vst [vmem:[#allocation4 + $0x2c] sm:$0x3] %v955_v36  ;;  %v954_v39 = vsel %vm472_vm5, %v948_v30, %v953_v37  ;;  %v980_v40 = vpop.permute.xlu1 %979  ;;  %v978_v41 = vpop.permute.xlu0 %977  ;;  %4088 = vmatmul.mubr.msk.bf16.vlgmr.msra.gmra.mxu0 %vm606_vm11, %v4719_v23  ;;  %v1071_v42 = vsel %vm610_vm6, %v4098_v35, 0  ;;  %v3192_v37 = vcombine.high %v4796_v32, %v4796_v32 }
  0xb9   : > { %4235 = vmatprep.subr.bf16.mxu1 %v4468_v13  ;;  %958 = vst [vmem:[#allocation4 + $0x24] sm:$0x33] %v954_v39  ;;  %v982_v43 = vrot.slane %v980_v40, 4  ;;  %v981_v44 = vrot.slane %v978_v41, 4  ;;  %1090 = vmatpush1.bf16.msra.mxu0 %v1071_v42 }
  0xba   : > { %2649 = vrot.lane.b32.xlu1 %v4724_v24, %s4466_s28  ;;  %1111 = vmatprep.mubr.bf16.mxu0 %v4475_v21 }
  0xbb   : > { %v985_v45 = vsel %vm503_vm7, %v980_v40, %v982_v43  ;;  %v983_v46 = vsel %vm315_vm1, %v981_v44, %v982_v43  ;;  %2647 = vrot.lane.b32.xlu0 %v4732_v27, %s4466_s28  ;;  %v1025_v63 = vld [vmem:[#allocation4 + $0x20] sm:$0xf] }
  0xbc   : > { %989 = vst [vmem:[#allocation4 + $0x2c] sm:$0xc] %v985_v45  ;;  %v984_v48 = vsel %vm503_vm7, %v978_v41, %v983_v46  ;;  %v800_v49 = vpop.permute.xlu1 %799  ;;  %v798_v50 = vpop.permute.xlu0 %797  ;;  %v1024_v5 = vld [vmem:[#allocation4 + $0x18] sm:$0xff] }
  0xbd   : > { %988 = vst [vmem:[#allocation4 + $0x24] sm:$0xcc] %v984_v48  ;;  %v802_v51 = vrot.slane %v800_v49, 4  ;;  %v801_v52 = vrot.slane %v798_v50, 4 }
  0xbe   : > { %2679 = vrot.lane.b32.xlu1 %v4732_v27, %s4467_s29 }
  0xbf   : > { %v805_v55 = vsel %vm317_vm8, %v800_v49, %v802_v51  ;;  %v803_v56 = vsel %vm315_vm1, %v801_v52, %v802_v51  ;;  %2677 = vrot.lane.b32.xlu0 %v4763_v47, %s4467_s29 }
  0xc0   : > { %809 = vst [vmem:[#allocation4 + $0x8] sm:$0xc] %v805_v55  ;;  %v804_v57 = vsel %vm317_vm8, %v798_v50, %v803_v56  ;;  %v830_v58 = vpop.permute.xlu1 %829  ;;  %v828_v59 = vpop.permute.xlu0 %827  ;;  %v4811_v50 = vrot.slane %v3192_v37, %v4541_v6  ;;  %v4819_v55 = vrot.slane %v4796_v32, %v4541_v6 }
  0xc1   : > { %808 = vst [vmem:[#allocation4] sm:$0xcc] %v804_v57  ;;  %v832_v60 = vrot.slane %v830_v58, 4  ;;  %v831_v61 = vrot.slane %v828_v59, 4 }
  0xc2   : > { %2709 = vrot.lane.b32.xlu1 %v4724_v24, %s4469_s30 }
  0xc3   : > { %v1027_v0 = vld [vmem:[#allocation4 + $0x2c] sm:$0xf]  ;;  %v835_v2 = vsel %vm348_vm9, %v830_v58, %v832_v60  ;;  %v833_v3 = vsel %vm315_vm1, %v831_v61, %v832_v60  ;;  %2707 = vrot.lane.b32.xlu0 %v4732_v27, %s4469_s30 }
  0xc4   : > { %v1026_v7 = vld [vmem:[#allocation4 + $0x24] sm:$0xff]  ;;  %839 = vst [vmem:[#allocation4 + $0x14] sm:$0x3] %v835_v2  ;;  %v834_v8 = vsel %vm348_vm9, %v828_v59, %v833_v3  ;;  %v860_v9 = vpop.permute.xlu1 %859  ;;  %v858_v10 = vpop.permute.xlu0 %857  ;;  %v4097_v11 = vcombine.low %v1025_v63, %v1027_v0  ;;  %v3102_v3 = vcombine.low %v4796_v32, %v4796_v32 }
  0xc5   : > { %838 = vst [vmem:[#allocation4 + $0xc] sm:$0x33] %v834_v8  ;;  %v862_v14 = vrot.slane %v860_v9, 4  ;;  %v861_v15 = vrot.slane %v858_v10, 4  ;;  %v4096_v16 = vcombine.high %v1024_v5, %v1026_v7  ;;  %v4095_v18 = vcombine.low %v1024_v5, %v1026_v7 }
  0xc6   : > { %2739 = vrot.lane.b32.xlu1 %v4732_v27, %s4470_s6  ;;  %4236 = vmatpush3.bf16.msra.mxu1 %v4097_v11 }
  0xc7   : > { %v1021_v53 = vld [vmem:[#allocation4 + $0x8] sm:$0xf]  ;;  %v865_v19 = vsel %vm379_vm10, %v860_v9, %v862_v14  ;;  %v863_v20 = vsel %vm315_vm1, %v861_v15, %v862_v14  ;;  %2737 = vrot.lane.b32.xlu0 %v4763_v47, %s4470_s6  ;;  %1091 = vmatprep.subr.bf16.mxu0 %v4096_v16  ;;  %v4850_v15 = vrot.slane %v3102_v3, %v4541_v6 }
  0xc8   : > { %v1020_v22 = vld [vmem:[#allocation4] sm:$0xff]  ;;  %869 = vst [vmem:[#allocation4 + $0x14] sm:$0xc] %v865_v19  ;;  %v864_v25 = vsel %vm379_vm10, %v858_v10, %v863_v20  ;;  %v1450_v26 = vpop.permute.xlu1 %1449  ;;  %v1448_v28 = vpop.permute.xlu0 %1447  ;;  %1092 = vmatpush1.bf16.msra.mxu0 %v4095_v18  ;;  %4237 = vmatprep.subr.bf16.mxu1 %v4468_v13 }
  0xc9   : > { %4105 = vst.sshfl [vmem:[#allocation4 + $0x8] sm:$0x3 pattern:$0x76325410] %v1201_v12  ;;  %868 = vst [vmem:[#allocation4 + $0xc] sm:$0xcc] %v864_v25 }
  0xca   : > { %v1452_v54 = vrot.slane %v1450_v26, 4  ;;  %v1451_v29 = vrot.slane %v1448_v28, 4  ;;  %4104 = vst.sshfl [vmem:[#allocation4] sm:$0xf pattern:$0x76325410] %v1199_v62  ;;  %2559 = vrot.lane.b32.xlu1 %v4732_v27, %s4471_s7 }
  0xcb   : > { %2557 = vrot.lane.b32.xlu0 %v4763_v47, %s4471_s7 }
  0xcc   : > { %v1455_v30 = vsel %vm534_vm2, %v1450_v26, %v1452_v54  ;;  %v1453_v31 = vsel %vm315_vm1, %v1451_v29, %v1452_v54  ;;  %v1330_v17 = vpop.permute.xlu1 %1329  ;;  %v1328_v34 = vpop.permute.xlu0 %1327 }
  0xcd   : > { %1459 = vst [vmem:[#allocation4 + $0x38] sm:$0x3] %v1455_v30  ;;  %v1454_v33 = vsel %vm534_vm2, %v1448_v28, %v1453_v31  ;;  %v1332_v35 = vrot.slane %v1330_v17, 4  ;;  %v1331_v36 = vrot.slane %v1328_v34, 4 }
  0xce   : > { %1458 = vst [vmem:[#allocation4 + $0x30] sm:$0x33] %v1454_v33  ;;  %2589 = vrot.lane.b32.xlu1 %v4724_v24, %s4472_s8 }
  0xcf   : > { %v1023_v38 = vld [vmem:[#allocation4 + $0x14] sm:$0xf]  ;;  %v1335_v39 = vsel %vm410_vm4, %v1330_v17, %v1332_v35  ;;  %v1333_v40 = vsel %vm315_vm1, %v1331_v36, %v1332_v35  ;;  %2587 = vrot.lane.b32.xlu0 %v4732_v27, %s4472_s8 }
  0xd0   : > { %v1022_v41 = vld [vmem:[#allocation4 + $0xc] sm:$0xff]  ;;  %1339 = vst [vmem:[#allocation4 + $0x20] sm:$0x3] %v1335_v39  ;;  %v1334_v42 = vsel %vm410_vm4, %v1328_v34, %v1333_v40  ;;  %v1360_v43 = vpop.permute.xlu1 %1359  ;;  %v1358_v44 = vpop.permute.xlu0 %1357  ;;  %v4094_v45 = vcombine.low %v1021_v53, %v1023_v38 }
  0xd1   : > { %1338 = vst [vmem:[#allocation4 + $0x18] sm:$0x33] %v1334_v42  ;;  %v1362_v24 = vrot.slane %v1360_v43, 4  ;;  %v1361_v46 = vrot.slane %v1358_v44, 4  ;;  %v4093_v48 = vcombine.high %v1020_v22, %v1022_v41  ;;  %v4092_v49 = vcombine.low %v1020_v22, %v1022_v41 }
  0xd2   : > { %2619 = vrot.lane.b32.xlu1 %v4732_v27, %s4473_s9  ;;  %4238 = vmatpush3.bf16.msra.mxu1 %v4094_v45 }
  0xd3   : > { %v1365_v51 = vsel %vm441_vm3, %v1360_v43, %v1362_v24  ;;  %v1363_v52 = vsel %vm315_vm1, %v1361_v46, %v1362_v24  ;;  %2617 = vrot.lane.b32.xlu0 %v4763_v47, %s4473_s9  ;;  %1093 = vmatprep.subr.bf16.mxu0 %v4093_v48  ;;  %v1639_v48 = vld [vmem:[%s4538_s26 + $0x18] sm:$0x3f] }
  0xd4   : > { %v4365_v56 = vld [vmem:[#allocation4 + $0x38] ss:$0 sps:$4 sm:$0x33]   ;;  %1369 = vst [vmem:[#allocation4 + $0x20] sm:$0xc] %v1365_v51  ;;  %v1364_v27 = vsel %vm441_vm3, %v1358_v44, %v1363_v52  ;;  %v1390_v57 = vpop.permute.xlu1 %1389  ;;  %v1388_v58 = vpop.permute.xlu0 %1387  ;;  %1094 = vmatpush1.bf16.msra.mxu0 %v4092_v49  ;;  %4243 = vmatprep.subr.bf16.mxu1 %v4468_v13 }
  0xd5   : > { %v1468_v59 = vld [vmem:[#allocation4 + $0x30] sm:$0x33]  ;;  %1368 = vst [vmem:[#allocation4 + $0x18] sm:$0xcc] %v1364_v27  ;;  %v1392_v60 = vrot.slane %v1390_v57, 4  ;;  %v1391_v61 = vrot.slane %v1388_v58, 4  ;;  %4240 = vmatmul.mubr.msk.bf16.vlgmr.msra.gmra.mxu1 %vm606_vm11, %v4719_v23 }
  0xd6   : > { %v4113_v47 = vcombine.high %v1468_v59, %v1468_v59  ;;  %v1517_v62 = vsel %vm610_vm6, %v4365_v56, 0  ;;  %3209 = vrot.lane.b32.xlu1 %v4811_v50, %s4465_s27  ;;  %v4112_v63 = vcombine.low %v1468_v59, %v1468_v59  ;;  %4249 = vmatprep.mubr.msk.bf16.mxu1 %vm4474_vm0, %v4468_v13  ;;  %v4883_v27 = vld [vmem:[%s4538_s26 + $0x38] sm:$0xff] }
  0xd7   : > { %4244 = vmatpush3.bf16.msra.mxu1 %v1517_v62  ;;  %v1395_v0 = vsel %vm472_vm5, %v1390_v57, %v1392_v60  ;;  %v1393_v2 = vsel %vm315_vm1, %v1391_v61, %v1392_v60  ;;  %3207 = vrot.lane.b32.xlu0 %v4819_v55, %s4465_s27  ;;  %v1641_v60 = vcombine.high %v1639_v48, %v1639_v48 }
  0xd8   : > { %4115 = vmatprep.subr.msk.bf16.mxu0 %vm610_vm6, %v4113_v47  ;;  %1399 = vst [vmem:[#allocation4 + $0x2c] sm:$0x3] %v1395_v0  ;;  %v1394_v5 = vsel %vm472_vm5, %v1388_v58, %v1393_v2  ;;  %v1420_v7 = vpop.permute.xlu1 %1419  ;;  %v1418_v8 = vpop.permute.xlu0 %1417  ;;  %4102 = vmatmul.mubr.msk.bf16.vlgmr.msra.gmra.mxu0 %vm606_vm11, %v4719_v23  ;;  %v1511_v9 = vsel %vm610_vm6, %v4112_v63, 0  ;;  %v3632_v62 = vcombine.high %v4883_v27, %v4883_v27 }
  0xd9   : > { %4245 = vmatprep.subr.bf16.mxu1 %v4468_v13  ;;  %1398 = vst [vmem:[#allocation4 + $0x24] sm:$0x33] %v1394_v5  ;;  %v1422_v10 = vrot.slane %v1420_v7, 4  ;;  %v1421_v11 = vrot.slane %v1418_v8, 4  ;;  %1530 = vmatpush1.bf16.msra.mxu0 %v1511_v9 }
  0xda   : > { %3089 = vrot.lane.b32.xlu1 %v4811_v50, %s4466_s28  ;;  %1551 = vmatprep.mubr.bf16.mxu0 %v4475_v21 }
  0xdb   : > { %v1425_v12 = vsel %vm503_vm7, %v1420_v7, %v1422_v10  ;;  %v1423_v14 = vsel %vm315_vm1, %v1421_v11, %v1422_v10  ;;  %3087 = vrot.lane.b32.xlu0 %v4819_v55, %s4466_s28 }
  0xdc   : > { %1429 = vst [vmem:[#allocation4 + $0x2c] sm:$0xc] %v1425_v12  ;;  %v1424_v16 = vsel %vm503_vm7, %v1418_v8, %v1423_v14  ;;  %v1240_v18 = vpop.permute.xlu1 %1239  ;;  %v1238_v53 = vpop.permute.xlu0 %1237  ;;  %v1464_v17 = vld [vmem:[#allocation4 + $0x18] sm:$0xff]  ;;  %v4898_v12 = vrot.slane %v3632_v62, %v4541_v6 }
  0xdd   : > { %1428 = vst [vmem:[#allocation4 + $0x24] sm:$0xcc] %v1424_v16  ;;  %v1242_v19 = vrot.slane %v1240_v18, 4  ;;  %v1241_v20 = vrot.slane %v1238_v53, 4 }
  0xde   : > { %3119 = vrot.lane.b32.xlu1 %v4819_v55, %s4467_s29 }
  0xdf   : > { %v1245_v22 = vsel %vm317_vm8, %v1240_v18, %v1242_v19  ;;  %v1243_v25 = vsel %vm315_vm1, %v1241_v20, %v1242_v19  ;;  %3117 = vrot.lane.b32.xlu0 %v4850_v15, %s4467_s29  ;;  %v4907_v18 = vrot.slane %v4883_v27, %v4541_v6 }
  0xe0   : > { %1249 = vst [vmem:[#allocation4 + $0x8] sm:$0xc] %v1245_v22  ;;  %v1244_v26 = vsel %vm317_vm8, %v1238_v53, %v1243_v25  ;;  %v1270_v28 = vpop.permute.xlu1 %1269  ;;  %v1268_v54 = vpop.permute.xlu0 %1267 }
  0xe1   : > { %1248 = vst [vmem:[#allocation4] sm:$0xcc] %v1244_v26  ;;  %v1272_v29 = vrot.slane %v1270_v28, 4  ;;  %v1271_v30 = vrot.slane %v1268_v54, 4 }
  0xe2   : > { %3149 = vrot.lane.b32.xlu1 %v4811_v50, %s4469_s30 }
  0xe3   : > { %v1275_v31 = vsel %vm348_vm9, %v1270_v28, %v1272_v29  ;;  %v1273_v32 = vsel %vm315_vm1, %v1271_v30, %v1272_v29  ;;  %3147 = vrot.lane.b32.xlu0 %v4819_v55, %s4469_s30  ;;  %v4368_v33 = vld [vmem:[#allocation4 + $0x20] ss:$12 sps:$4 sm:$0xff]  }
  0xe4   : > { %v1466_v34 = vld [vmem:[#allocation4 + $0x24] sm:$0xff]  ;;  %1279 = vst [vmem:[#allocation4 + $0x14] sm:$0x3] %v1275_v31  ;;  %v1274_v35 = vsel %vm348_vm9, %v1268_v54, %v1273_v32  ;;  %v1300_v36 = vpop.permute.xlu1 %1299  ;;  %v1298_v37 = vpop.permute.xlu0 %1297  ;;  %4246 = vmatpush3.bf16.msra.mxu1 %v4368_v33  ;;  %v3542_v31 = vcombine.low %v4883_v27, %v4883_v27 }
  0xe5   : > { %1278 = vst [vmem:[#allocation4 + $0xc] sm:$0x33] %v1274_v35  ;;  %v1302_v38 = vrot.slane %v1300_v36, 4  ;;  %v1301_v39 = vrot.slane %v1298_v37, 4  ;;  %v4110_v40 = vcombine.high %v1464_v17, %v1466_v34  ;;  %v4109_v41 = vcombine.low %v1464_v17, %v1466_v34  ;;  %4247 = vmatprep.subr.bf16.mxu1 %v4468_v13 }
  0xe6   : > { %3179 = vrot.lane.b32.xlu1 %v4819_v55, %s4470_s6 }
  0xe7   : > { %v1305_v42 = vsel %vm379_vm10, %v1300_v36, %v1302_v38  ;;  %v1303_v43 = vsel %vm315_vm1, %v1301_v39, %v1302_v38  ;;  %3177 = vrot.lane.b32.xlu0 %v4850_v15, %s4470_s6  ;;  %1531 = vmatprep.subr.bf16.mxu0 %v4110_v40  ;;  %v4937_v39 = vrot.slane %v3542_v31, %v4541_v6 }
  0xe8   : > { %v1460_v44 = vld [vmem:[#allocation4] sm:$0xff]  ;;  %1309 = vst [vmem:[#allocation4 + $0x14] sm:$0xc] %v1305_v42  ;;  %v1304_v45 = vsel %vm379_vm10, %v1298_v37, %v1303_v43  ;;  %v1890_v24 = vpop.permute.xlu1 %1889  ;;  %v1888_v46 = vpop.permute.xlu0 %1887  ;;  %1532 = vmatpush1.bf16.msra.mxu0 %v4109_v41 }
  0xe9   : > { %1308 = vst [vmem:[#allocation4 + $0xc] sm:$0xcc] %v1304_v45  ;;  %v1892_v49 = vrot.slane %v1890_v24, 4  ;;  %v1891_v51 = vrot.slane %v1888_v46, 4 }
  0xea   : > { %4118 = vst.sshfl [vmem:[#allocation4] sm:$0xf pattern:$0x76325410] %v1639_v48  ;;  %2999 = vrot.lane.b32.xlu1 %v4819_v55, %s4471_s7 }
  0xeb   : > { %v1895_v52 = vsel %vm534_vm2, %v1890_v24, %v1892_v49  ;;  %v1893_v56 = vsel %vm315_vm1, %v1891_v51, %v1892_v49  ;;  %2997 = vrot.lane.b32.xlu0 %v4850_v15, %s4471_s7 }
  0xec   : > { %1899 = vst [vmem:[#allocation4 + $0x38] sm:$0x3] %v1895_v52  ;;  %v1894_v57 = vsel %vm534_vm2, %v1888_v46, %v1893_v56  ;;  %v1770_v58 = vpop.permute.xlu1 %1769  ;;  %v1768_v59 = vpop.permute.xlu0 %1767 }
  0xed   : > { %1898 = vst [vmem:[#allocation4 + $0x30] sm:$0x33] %v1894_v57  ;;  %v1772_v61 = vrot.slane %v1770_v58, 4  ;;  %v1771_v47 = vrot.slane %v1768_v59, 4 }
  0xee   : > { %3029 = vrot.lane.b32.xlu1 %v4811_v50, %s4472_s8 }
  0xef   : > { %v1775_v63 = vsel %vm410_vm4, %v1770_v58, %v1772_v61  ;;  %v1773_v0 = vsel %vm315_vm1, %v1771_v47, %v1772_v61  ;;  %3027 = vrot.lane.b32.xlu0 %v4819_v55, %s4472_s8  ;;  %v4369_v2 = vld [vmem:[#allocation4 + $0x8] ss:$12 sps:$4 sm:$0xff]  }
  0xf0   : > { %v1462_v3 = vld [vmem:[#allocation4 + $0xc] sm:$0xff]  ;;  %1779 = vst [vmem:[#allocation4 + $0x20] sm:$0x3] %v1775_v63  ;;  %v1774_v5 = vsel %vm410_vm4, %v1768_v59, %v1773_v0  ;;  %v1800_v7 = vpop.permute.xlu1 %1799  ;;  %v1798_v8 = vpop.permute.xlu0 %1797  ;;  %4248 = vmatpush3.bf16.msra.mxu1 %v4369_v2 }
  0xf1   : > { %4119 = vst.sshfl [vmem:[#allocation4 + $0x8] sm:$0x3 pattern:$0x76325410] %v1641_v60  ;;  %1778 = vst [vmem:[#allocation4 + $0x18] sm:$0x33] %v1774_v5  ;;  %v4107_v10 = vcombine.high %v1460_v44, %v1462_v3  ;;  %v4106_v11 = vcombine.low %v1460_v44, %v1462_v3  ;;  %4253 = vmatprep.subr.bf16.mxu1 %v4468_v13 }
  0xf2   : > { %v1802_v50 = vrot.slane %v1800_v7, 4  ;;  %v1801_v9 = vrot.slane %v1798_v8, 4  ;;  %3059 = vrot.lane.b32.xlu1 %v4819_v55, %s4473_s9 }
  0xf3   : > { %3057 = vrot.lane.b32.xlu0 %v4850_v15, %s4473_s9  ;;  %1533 = vmatprep.subr.bf16.mxu0 %v4107_v10  ;;  %v4372_v53 = vld [vmem:[#allocation4 + $0x38] ss:$0 sps:$4 sm:$0x33]  }
  0xf4   : > { %v1805_v14 = vsel %vm441_vm3, %v1800_v7, %v1802_v50  ;;  %v1803_v16 = vsel %vm315_vm1, %v1801_v9, %v1802_v50  ;;  %v1830_v19 = vpop.permute.xlu1 %1829  ;;  %v1828_v20 = vpop.permute.xlu0 %1827  ;;  %1534 = vmatpush1.bf16.msra.mxu0 %v4106_v11  ;;  %4250 = vmatmul.mubr.msk.bf16.vlgmr.msra.gmra.mxu1 %vm606_vm11, %v4719_v23  ;;  %v1908_v22 = vld [vmem:[#allocation4 + $0x30] sm:$0x33]  ;;  %v1957_v28 = vsel %vm610_vm6, %v4372_v53, 0  ;;  %v2079_v50 = vld [vmem:[%s4538_s26 + $0x20] sm:$0x3f] }
  0xf5   : > { %1809 = vst [vmem:[#allocation4 + $0x20] sm:$0xc] %v1805_v14  ;;  %v1804_v55 = vsel %vm441_vm3, %v1798_v8, %v1803_v16  ;;  %v1832_v25 = vrot.slane %v1830_v19, 4  ;;  %v1831_v26 = vrot.slane %v1828_v20, 4  ;;  %v4127_v15 = vcombine.high %v1908_v22, %v1908_v22  ;;  %4259 = vmatprep.mubr.msk.bf16.mxu1 %vm4474_vm0, %v4468_v13  ;;  %4254 = vmatpush3.bf16.msra.mxu1 %v1957_v28 }
  0xf6   : > { %1808 = vst [vmem:[#allocation4 + $0x18] sm:$0xcc] %v1804_v55  ;;  %3649 = vrot.lane.b32.xlu1 %v4898_v12, %s4465_s27  ;;  %v4126_v54 = vcombine.low %v1908_v22, %v1908_v22  ;;  %4255 = vmatprep.subr.bf16.mxu1 %v4468_v13  ;;  %v2081_v53 = vcombine.high %v2079_v50, %v2079_v50 }
  0xf7   : > { %v1835_v29 = vsel %vm472_vm5, %v1830_v19, %v1832_v25  ;;  %v1833_v30 = vsel %vm315_vm1, %v1831_v26, %v1832_v25  ;;  %3647 = vrot.lane.b32.xlu0 %v4907_v18, %s4465_s27  ;;  %4129 = vmatprep.subr.msk.bf16.mxu0 %vm610_vm6, %v4127_v15 }
  0xf8   : > { %1839 = vst [vmem:[#allocation4 + $0x2c] sm:$0x3] %v1835_v29  ;;  %v1834_v32 = vsel %vm472_vm5, %v1828_v20, %v1833_v30  ;;  %v1860_v33 = vpop.permute.xlu1 %1859  ;;  %v1858_v17 = vpop.permute.xlu0 %1857  ;;  %4116 = vmatmul.mubr.msk.bf16.vlgmr.msra.gmra.mxu0 %vm606_vm11, %v4719_v23  ;;  %v1951_v34 = vsel %vm610_vm6, %v4126_v54, 0 }
  0xf9   : > { %1838 = vst [vmem:[#allocation4 + $0x24] sm:$0x33] %v1834_v32  ;;  %v1862_v35 = vrot.slane %v1860_v33, 4  ;;  %v1861_v36 = vrot.slane %v1858_v17, 4  ;;  %1970 = vmatpush1.bf16.msra.mxu0 %v1951_v34  ;;  %1991 = vmatprep.mubr.bf16.mxu0 %v4475_v21 }
  0xfa   : > { %3529 = vrot.lane.b32.xlu1 %v4898_v12, %s4466_s28 }
  0xfb   : > { %v1865_v37 = vsel %vm503_vm7, %v1860_v33, %v1862_v35  ;;  %v1863_v38 = vsel %vm315_vm1, %v1861_v36, %v1862_v35  ;;  %3527 = vrot.lane.b32.xlu0 %v4907_v18, %s4466_s28  ;;  %s252_s28 = scalar_lea.vmem %s5416_s5, %s4303_s25 }
  0xfc   : > { %1869 = vst [vmem:[#allocation4 + $0x2c] sm:$0xc] %v1865_v37  ;;  %v1864_v40 = vsel %vm503_vm7, %v1858_v17, %v1863_v38  ;;  %v1680_v41 = vpop.permute.xlu1 %1679  ;;  %v1678_v42 = vpop.permute.xlu0 %1677 }
  0xfd   : > { %1868 = vst [vmem:[#allocation4 + $0x24] sm:$0xcc] %v1864_v40  ;;  %v1682_v43 = vrot.slane %v1680_v41, 4  ;;  %v1681_v44 = vrot.slane %v1678_v42, 4 }
  0xfe   : > { %3559 = vrot.lane.b32.xlu1 %v4907_v18, %s4467_s29 }
  0xff   : > { %v1685_v45 = vsel %vm317_vm8, %v1680_v41, %v1682_v43  ;;  %v1683_v24 = vsel %vm315_vm1, %v1681_v44, %v1682_v43  ;;  %3557 = vrot.lane.b32.xlu0 %v4937_v39, %s4467_s29 }
 0x100   : > { %1689 = vst [vmem:[#allocation4 + $0x8] sm:$0xc] %v1685_v45  ;;  %v1684_v6 = vsel %vm317_vm8, %v1678_v42, %v1683_v24  ;;  %v1710_v46 = vpop.permute.xlu1 %1709  ;;  %v1708_v48 = vpop.permute.xlu0 %1707  ;;  %v266_v42 = vld [vmem:[%s5413_s2] sm:$0xff] }
 0x101   : > { %1688 = vst [vmem:[#allocation4] sm:$0xcc] %v1684_v6  ;;  %v1712_v49 = vrot.slane %v1710_v46, 4  ;;  %v1711_v51 = vrot.slane %v1708_v48, 4 }
 0x102   : > { %3589 = vrot.lane.b32.xlu1 %v4898_v12, %s4469_s30 }
 0x103   : > { %v1715_v52 = vsel %vm348_vm9, %v1710_v46, %v1712_v49  ;;  %v1713_v56 = vsel %vm315_vm1, %v1711_v51, %v1712_v49  ;;  %3587 = vrot.lane.b32.xlu0 %v4907_v18, %s4469_s30  ;;  %v4375_v27 = vld [vmem:[#allocation4 + $0x20] ss:$12 sps:$4 sm:$0xff]  }
 0x104   : > { %1719 = vst [vmem:[#allocation4 + $0x14] sm:$0x3] %v1715_v52  ;;  %v1714_v57 = vsel %vm348_vm9, %v1708_v48, %v1713_v56  ;;  %v1740_v58 = vpop.permute.xlu1 %1739  ;;  %v1738_v59 = vpop.permute.xlu0 %1737  ;;  %v4376_v60 = vld [vmem:[#allocation4 + $0x1c] ss:$12 sps:$4 sm:$0xff]   ;;  %v4378_v61 = vld [vmem:[#allocation4 + $0x18] ss:$12 sps:$4 sm:$0xff]   ;;  %4256 = vmatpush3.bf16.msra.mxu1 %v4375_v27 }
 0x105   : > { %1718 = vst [vmem:[#allocation4 + $0xc] sm:$0x33] %v1714_v57  ;;  %v1742_v47 = vrot.slane %v1740_v58, 4  ;;  %v1741_v62 = vrot.slane %v1738_v59, 4  ;;  %1971 = vmatprep.subr.bf16.mxu0 %v4376_v60  ;;  %4257 = vmatprep.subr.bf16.mxu1 %v4468_v13  ;;  %v268_v48 = vld [vmem:[%s5414_s3] sm:$0xff]  ;;  %v269_v51 = vld [vmem:[%s5414_s3 + $0x8] sm:$0xff] }
 0x106   : > { %3619 = vrot.lane.b32.xlu1 %v4907_v18, %s4470_s6  ;;  %1972 = vmatpush1.bf16.msra.mxu0 %v4378_v61  ;;  %v270_v60 = vld [vmem:[#allocation5] sm:$0x1] }
 0x107   : > { %v1745_v63 = vsel %vm379_vm10, %v1740_v58, %v1742_v47  ;;  %v1743_v0 = vsel %vm315_vm1, %v1741_v62, %v1742_v47  ;;  %3617 = vrot.lane.b32.xlu0 %v4937_v39, %s4470_s6 }
 0x108   : > { %1749 = vst [vmem:[#allocation4 + $0x14] sm:$0xc] %v1745_v63  ;;  %v1744_v2 = vsel %vm379_vm10, %v1738_v59, %v1743_v0  ;;  %v2330_v3 = vpop.permute.xlu1 %2329  ;;  %v2328_v5 = vpop.permute.xlu0 %2327 }
 0x109   : > { %1748 = vst [vmem:[#allocation4 + $0xc] sm:$0xcc] %v1744_v2  ;;  %v2332_v7 = vrot.slane %v2330_v3, 4  ;;  %v2331_v8 = vrot.slane %v2328_v5, 4 }
 0x10a   : > { %3439 = vrot.lane.b32.xlu1 %v4907_v18, %s4471_s7 }
 0x10b   : > { %v2335_v9 = vsel %vm534_vm2, %v2330_v3, %v2332_v7  ;;  %v2333_v10 = vsel %vm315_vm1, %v2331_v8, %v2332_v7  ;;  %3437 = vrot.lane.b32.xlu0 %v4937_v39, %s4471_s7 }
 0x10c   : > { %2339 = vst [vmem:[#allocation4 + $0x38] sm:$0x3] %v2335_v9  ;;  %v2334_v11 = vsel %vm534_vm2, %v2328_v5, %v2333_v10  ;;  %v2210_v14 = vpop.permute.xlu1 %2209  ;;  %v2208_v16 = vpop.permute.xlu0 %2207 }
 0x10d   : > { %2338 = vst [vmem:[#allocation4 + $0x30] sm:$0x33] %v2334_v11  ;;  %v2212_v55 = vrot.slane %v2210_v14, 4  ;;  %v2211_v19 = vrot.slane %v2208_v16, 4 }
 0x10e   : > { %3469 = vrot.lane.b32.xlu1 %v4898_v12, %s4472_s8 }
 0x10f   : > { %v2215_v20 = vsel %vm410_vm4, %v2210_v14, %v2212_v55  ;;  %v2213_v22 = vsel %vm315_vm1, %v2211_v19, %v2212_v55  ;;  %3467 = vrot.lane.b32.xlu0 %v4907_v18, %s4472_s8  ;;  %v4380_v25 = vld [vmem:[#allocation4 + $0x8] ss:$12 sps:$4 sm:$0xff]  }
 0x110   : > { %2219 = vst [vmem:[#allocation4 + $0x20] sm:$0x3] %v2215_v20  ;;  %v2214_v26 = vsel %vm410_vm4, %v2208_v16, %v2213_v22  ;;  %v2240_v15 = vpop.permute.xlu1 %2239  ;;  %v2238_v28 = vpop.permute.xlu0 %2237  ;;  %v4381_v54 = vld [vmem:[#allocation4 + $0x4] ss:$12 sps:$4 sm:$0xff]   ;;  %v4383_v29 = vld [vmem:[#allocation4] ss:$12 sps:$4 sm:$0xff]   ;;  %4258 = vmatpush3.bf16.msra.mxu1 %v4380_v25 }
 0x111   : > { %4133 = vst.sshfl [vmem:[#allocation4 + $0x8] sm:$0x3 pattern:$0x76325410] %v2081_v53  ;;  %2218 = vst [vmem:[#allocation4 + $0x18] sm:$0x33] %v2214_v26  ;;  %1973 = vmatprep.subr.bf16.mxu0 %v4381_v54  ;;  %4263 = vmatprep.subr.bf16.mxu1 %v4468_v13 }
 0x112   : > { %v2242_v30 = vrot.slane %v2240_v15, 4  ;;  %v2241_v31 = vrot.slane %v2238_v28, 4  ;;  %4132 = vst.sshfl [vmem:[#allocation4] sm:$0xf pattern:$0x76325410] %v2079_v50  ;;  %3499 = vrot.lane.b32.xlu1 %v4907_v18, %s4473_s9  ;;  %1974 = vmatpush1.bf16.msra.mxu0 %v4383_v29 }
 0x113   : > { %3497 = vrot.lane.b32.xlu0 %v4937_v39, %s4473_s9  ;;  %v4385_v33 = vld [vmem:[#allocation4 + $0x38] ss:$0 sps:$4 sm:$0x33]   ;;  %4260 = vmatmul.mubr.msk.bf16.vlgmr.msra.gmra.mxu1 %vm606_vm11, %v4719_v23  ;;  %v267_v39 = vld [vmem:[%s5413_s2 + $0x8] sm:$0xff] }
 0x114   : > { %v2245_v12 = vsel %vm441_vm3, %v2240_v15, %v2242_v30  ;;  %v2243_v32 = vsel %vm315_vm1, %v2241_v31, %v2242_v30  ;;  %v2270_v34 = vpop.permute.xlu1 %2269  ;;  %v2268_v35 = vpop.permute.xlu0 %2267  ;;  %v2348_v18 = vld [vmem:[#allocation4 + $0x30] sm:$0x33]  ;;  %v2397_v40 = vsel %vm610_vm6, %v4385_v33, 0  ;;  %4269 = vmatprep.mubr.msk.bf16.mxu1 %vm4474_vm0, %v4468_v13 }
 0x115   : > { %2249 = vst [vmem:[#allocation4 + $0x20] sm:$0xc] %v2245_v12  ;;  %v2244_v17 = vsel %vm441_vm3, %v2238_v28, %v2243_v32  ;;  %v2272_v36 = vrot.slane %v2270_v34, 4  ;;  %v2271_v37 = vrot.slane %v2268_v35, 4  ;;  %v4141_v38 = vcombine.high %v2348_v18, %v2348_v18  ;;  %4264 = vmatpush3.bf16.msra.mxu1 %v2397_v40  ;;  %4130 = vmatmul.mubr.msk.bf16.vlgmr.msra.gmra.mxu0 %vm606_vm11, %v4719_v23  ;;  %v2519_v28 = vld [vmem:[%s4538_s26 + $0x28] sm:$0x3f] }
 0x116   : > { %2248 = vst [vmem:[#allocation4 + $0x18] sm:$0xcc] %v2244_v17  ;;  %v4140_v41 = vcombine.low %v2348_v18, %v2348_v18  ;;  %4265 = vmatprep.subr.bf16.mxu1 %v4468_v13  ;;  %2431 = vmatprep.mubr.bf16.mxu0 %v4475_v21  ;;  %v2521_v12 = vcombine.high %v2519_v28, %v2519_v28 }
 0x117   : > { %v2275_v43 = vsel %vm472_vm5, %v2270_v34, %v2272_v36  ;;  %v2273_v44 = vsel %vm315_vm1, %v2271_v37, %v2272_v36  ;;  %4143 = vmatprep.subr.msk.bf16.mxu0 %vm610_vm6, %v4141_v38  ;;  %558 = vperm.xlu1 %4343, %v267_v39  }
 0x118   : > { %2279 = vst [vmem:[#allocation4 + $0x2c] sm:$0x3] %v2275_v43  ;;  %v2274_v45 = vsel %vm472_vm5, %v2268_v35, %v2273_v44  ;;  %v2300_v24 = vpop.permute.xlu1 %2299  ;;  %v2391_v6 = vsel %vm610_vm6, %v4140_v41, 0  ;;  %553 = vperm.xlu0 %4342, %v266_v42  }
 0x119   : > { %2278 = vst [vmem:[#allocation4 + $0x24] sm:$0x33] %v2274_v45  ;;  %v2302_v23 = vrot.slane %v2300_v24, 4  ;;  %v2298_v46 = vpop.permute.xlu0 %2297  ;;  %2410 = vmatpush1.bf16.msra.mxu0 %v2391_v6 }
 0x11a   : > { %v2301_v49 = vrot.slane %v2298_v46, 4 }
 0x11b   : > { %v2305_v52 = vsel %vm503_vm7, %v2300_v24, %v2302_v23  ;;  %712 = vperm.xlu1 %4343, %v268_v48   ;;  %v5037_v48 = vld [vmem:[%s5412_s1] sm:$0xff]  }
 0x11c   : > { %2309 = vst [vmem:[#allocation4 + $0x2c] sm:$0xc] %v2305_v52  ;;  %v2303_v56 = vsel %vm315_vm1, %v2301_v49, %v2302_v23  ;;  %v2120_v27 = vpop.permute.xlu1 %2119  ;;  %717 = vperm.xlu0 %4342, %v269_v51  }
 0x11d   : > { %v2304_v57 = vsel %vm503_vm7, %v2298_v46, %v2303_v56  ;;  %v2122_v58 = vrot.slane %v2120_v27, 4  ;;  %v2118_v59 = vpop.permute.xlu0 %2117 }
 0x11e   : > { %2308 = vst [vmem:[#allocation4 + $0x24] sm:$0xcc] %v2304_v57  ;;  %v2121_v61 = vrot.slane %v2118_v59, 4 }
 0x11f   : > { %v2125_v47 = vsel %vm317_vm8, %v2120_v27, %v2122_v58  ;;  %749 = vperm.xlu1 %4343, %v270_v60  }
 0x120   : > { %2129 = vst [vmem:[#allocation4 + $0x8] sm:$0xc] %v2125_v47  ;;  %v2123_v62 = vsel %vm315_vm1, %v2121_v61, %v2122_v58  ;;  %v2150_v63 = vpop.permute.xlu1 %2149 }
 0x121   : > { %v2124_v0 = vsel %vm317_vm8, %v2118_v59, %v2123_v62  ;;  %v2152_v2 = vrot.slane %v2150_v63, 4  ;;  %v2148_v3 = vpop.permute.xlu0 %2147 }
 0x122   : > { %2128 = vst [vmem:[#allocation4] sm:$0xcc] %v2124_v0  ;;  %v2151_v5 = vrot.slane %v2148_v3, 4 }
 0x123   : > { %v2155_v7 = vsel %vm348_vm9, %v2150_v63, %v2152_v2  ;;  %v4387_v8 = vld [vmem:[#allocation4 + $0x20] ss:$12 sps:$4 sm:$0xff]  }
 0x124   : > { %2159 = vst [vmem:[#allocation4 + $0x14] sm:$0x3] %v2155_v7  ;;  %v2153_v50 = vsel %vm315_vm1, %v2151_v5, %v2152_v2  ;;  %v2180_v9 = vpop.permute.xlu1 %2179  ;;  %4266 = vmatpush3.bf16.msra.mxu1 %v4387_v8 }
 0x125   : > { %v2154_v10 = vsel %vm348_vm9, %v2148_v3, %v2153_v50  ;;  %v2182_v11 = vrot.slane %v2180_v9, 4  ;;  %v2178_v14 = vpop.permute.xlu0 %2177  ;;  %v4388_v16 = vld [vmem:[#allocation4 + $0x1c] ss:$12 sps:$4 sm:$0xff]   ;;  %v4390_v53 = vld [vmem:[#allocation4 + $0x18] ss:$12 sps:$4 sm:$0xff]   ;;  %4267 = vmatprep.subr.bf16.mxu1 %v4468_v13 }
 0x126   : > { %2158 = vst [vmem:[#allocation4 + $0xc] sm:$0x33] %v2154_v10  ;;  %v2181_v55 = vrot.slane %v2178_v14, 4  ;;  %2411 = vmatprep.subr.bf16.mxu0 %v4388_v16 }
 0x127   : > { %v2185_v19 = vsel %vm379_vm10, %v2180_v9, %v2182_v11  ;;  %2412 = vmatpush1.bf16.msra.mxu0 %v4390_v53 }
 0x128   : > { %2189 = vst [vmem:[#allocation4 + $0x14] sm:$0xc] %v2185_v19  ;;  %v2183_v20 = vsel %vm315_vm1, %v2181_v55, %v2182_v11  ;;  %v2770_v22 = vpop.permute.xlu1 %2769 }
 0x129   : > { %v2184_v25 = vsel %vm379_vm10, %v2178_v14, %v2183_v20  ;;  %v2772_v26 = vrot.slane %v2770_v22, 4  ;;  %v2768_v15 = vpop.permute.xlu0 %2767  ;;  %v2340_v41 = vld [vmem:[#allocation4] sm:$0xff] }
 0x12a   : > { %2188 = vst [vmem:[#allocation4 + $0xc] sm:$0xcc] %v2184_v25  ;;  %v2771_v54 = vrot.slane %v2768_v15, 4 }
 0x12b   : > { %v2775_v29 = vsel %vm534_vm2, %v2770_v22, %v2772_v26 }
 0x12c   : > { %2779 = vst [vmem:[#allocation4 + $0x38] sm:$0x3] %v2775_v29  ;;  %v2773_v30 = vsel %vm315_vm1, %v2771_v54, %v2772_v26  ;;  %v2650_v31 = vpop.permute.xlu1 %2649 }
 0x12d   : > { %v2774_v32 = vsel %vm534_vm2, %v2768_v15, %v2773_v30  ;;  %v2652_v33 = vrot.slane %v2650_v31, 4  ;;  %v2648_v17 = vpop.permute.xlu0 %2647 }
 0x12e   : > { %2778 = vst [vmem:[#allocation4 + $0x30] sm:$0x33] %v2774_v32  ;;  %v2651_v34 = vrot.slane %v2648_v17, 4 }
 0x12f   : > { %v2655_v35 = vsel %vm410_vm4, %v2650_v31, %v2652_v33  ;;  %v4392_v18 = vld [vmem:[#allocation4 + $0x8] ss:$12 sps:$4 sm:$0xff]  }
 0x130   : > { %2659 = vst [vmem:[#allocation4 + $0x20] sm:$0x3] %v2655_v35  ;;  %v2653_v36 = vsel %vm315_vm1, %v2651_v34, %v2652_v33  ;;  %v2680_v37 = vpop.permute.xlu1 %2679  ;;  %4147 = vst.sshfl [vmem:[#allocation4 + $0x8] sm:$0x3 pattern:$0x76325410] %v2521_v12  ;;  %4268 = vmatpush3.bf16.msra.mxu1 %v4392_v18 }
 0x131   : > { %v2654_v38 = vsel %vm410_vm4, %v2648_v17, %v2653_v36  ;;  %v2682_v40 = vrot.slane %v2680_v37, 4  ;;  %v2678_v39 = vpop.permute.xlu0 %2677  ;;  %v2342_v42 = vld [vmem:[#allocation4 + $0xc] sm:$0xff]  ;;  %4273 = vmatprep.subr.bf16.mxu1 %v4468_v13 }
 0x132   : > { %v4394_v43 = vld [vmem:[#allocation4 + $0x4] ss:$12 sps:$4 sm:$0xff]   ;;  %2658 = vst [vmem:[#allocation4 + $0x18] sm:$0x33] %v2654_v38  ;;  %v2681_v44 = vrot.slane %v2678_v39, 4  ;;  %v4134_v45 = vcombine.low %v2340_v41, %v2342_v42 }
 0x133   : > { %4146 = vst.sshfl [vmem:[#allocation4] sm:$0xf pattern:$0x76325410] %v2519_v28  ;;  %v2685_v24 = vsel %vm441_vm3, %v2680_v37, %v2682_v40  ;;  %2413 = vmatprep.subr.bf16.mxu0 %v4394_v43  ;;  %4270 = vmatmul.mubr.msk.bf16.vlgmr.msra.gmra.mxu1 %vm606_vm11, %v5037_v48  ;;  %v2959_v37 = vld [vmem:[%s4538_s26 + $0x30] sm:$0x3f] }
 0x134   : > { %v4397_v6 = vld [vmem:[#allocation4 + $0x38] ss:$0 sps:$4 sm:$0x33]   ;;  %2689 = vst [vmem:[#allocation4 + $0x20] sm:$0xc] %v2685_v24  ;;  %v2683_v23 = vsel %vm315_vm1, %v2681_v44, %v2682_v40  ;;  %v2710_v46 = vpop.permute.xlu1 %2709  ;;  %2414 = vmatpush1.bf16.msra.mxu0 %v4134_v45  ;;  %4279 = vmatprep.mubr.msk.bf16.mxu1 %vm4474_vm0, %v4468_v13  ;;  %v2961_v42 = vcombine.high %v2959_v37, %v2959_v37 }
 0x135   : > { %v2684_v49 = vsel %vm441_vm3, %v2678_v39, %v2683_v23  ;;  %v2712_v51 = vrot.slane %v2710_v46, 4  ;;  %v2708_v52 = vpop.permute.xlu0 %2707  ;;  %v2788_v56 = vld [vmem:[#allocation4 + $0x30] sm:$0x33]  ;;  %v2837_v27 = vsel %vm610_vm6, %v4397_v6, 0 }
 0x136   : > { %2688 = vst [vmem:[#allocation4 + $0x18] sm:$0xcc] %v2684_v49  ;;  %v2711_v57 = vrot.slane %v2708_v52, 4  ;;  %v4155_v58 = vcombine.high %v2788_v56, %v2788_v56  ;;  %4274 = vmatpush3.bf16.msra.mxu1 %v2837_v27  ;;  %v4154_v59 = vcombine.low %v2788_v56, %v2788_v56 }
 0x137   : > { %v2715_v60 = vsel %vm472_vm5, %v2710_v46, %v2712_v51  ;;  %4144 = vmatmul.mubr.msk.bf16.vlgmr.msra.gmra.mxu0 %vm606_vm11, %v5037_v48  ;;  %4275 = vmatprep.subr.bf16.mxu1 %v4468_v13 }
 0x138   : > { %2719 = vst [vmem:[#allocation4 + $0x2c] sm:$0x3] %v2715_v60  ;;  %v2713_v61 = vsel %vm315_vm1, %v2711_v57, %v2712_v51  ;;  %4157 = vmatprep.subr.msk.bf16.mxu0 %vm610_vm6, %v4155_v58  ;;  %v2740_v47 = vpop.permute.xlu1 %2739  ;;  %v2831_v62 = vsel %vm610_vm6, %v4154_v59, 0  ;;  %2871 = vmatprep.mubr.bf16.mxu0 %v4475_v21 }
 0x139   : > { %v2714_v63 = vsel %vm472_vm5, %v2708_v52, %v2713_v61  ;;  %v2742_v0 = vrot.slane %v2740_v47, 4  ;;  %v2738_v2 = vpop.permute.xlu0 %2737  ;;  %2850 = vmatpush1.bf16.msra.mxu0 %v2831_v62 }
 0x13a   : > { %2718 = vst [vmem:[#allocation4 + $0x24] sm:$0x33] %v2714_v63  ;;  %v2741_v3 = vrot.slane %v2738_v2, 4 }
 0x13b   : > { %v2745_v5 = vsel %vm503_vm7, %v2740_v47, %v2742_v0 }
 0x13c   : > { %2749 = vst [vmem:[#allocation4 + $0x2c] sm:$0xc] %v2745_v5  ;;  %v2743_v7 = vsel %vm315_vm1, %v2741_v3, %v2742_v0  ;;  %v2560_v8 = vpop.permute.xlu1 %2559 }
 0x13d   : > { %v2744_v50 = vsel %vm503_vm7, %v2738_v2, %v2743_v7  ;;  %v2562_v9 = vrot.slane %v2560_v8, 4  ;;  %v2558_v10 = vpop.permute.xlu0 %2557 }
 0x13e   : > { %2748 = vst [vmem:[#allocation4 + $0x24] sm:$0xcc] %v2744_v50  ;;  %v2561_v11 = vrot.slane %v2558_v10, 4 }
 0x13f   : > { %v2565_v14 = vsel %vm317_vm8, %v2560_v8, %v2562_v9 }
 0x140   : > { %2569 = vst [vmem:[#allocation4 + $0x8] sm:$0xc] %v2565_v14  ;;  %v2563_v16 = vsel %vm315_vm1, %v2561_v11, %v2562_v9  ;;  %v2590_v53 = vpop.permute.xlu1 %2589 }
 0x141   : > { %v2564_v55 = vsel %vm317_vm8, %v2558_v10, %v2563_v16  ;;  %v2592_v19 = vrot.slane %v2590_v53, 4  ;;  %v2588_v20 = vpop.permute.xlu0 %2587 }
 0x142   : > { %2568 = vst [vmem:[#allocation4] sm:$0xcc] %v2564_v55  ;;  %v2591_v22 = vrot.slane %v2588_v20, 4 }
 0x143   : > { %v2595_v25 = vsel %vm348_vm9, %v2590_v53, %v2592_v19  ;;  %v4399_v26 = vld [vmem:[#allocation4 + $0x20] ss:$12 sps:$4 sm:$0xff]  }
 0x144   : > { %2599 = vst [vmem:[#allocation4 + $0x14] sm:$0x3] %v2595_v25  ;;  %v2593_v15 = vsel %vm315_vm1, %v2591_v22, %v2592_v19  ;;  %v2620_v28 = vpop.permute.xlu1 %2619  ;;  %4276 = vmatpush3.bf16.msra.mxu1 %v4399_v26 }
 0x145   : > { %v2594_v54 = vsel %vm348_vm9, %v2588_v20, %v2593_v15  ;;  %v2622_v29 = vrot.slane %v2620_v28, 4  ;;  %v2618_v30 = vpop.permute.xlu0 %2617  ;;  %v4400_v31 = vld [vmem:[#allocation4 + $0x1c] ss:$12 sps:$4 sm:$0xff]   ;;  %v4402_v12 = vld [vmem:[#allocation4 + $0x18] ss:$12 sps:$4 sm:$0xff]   ;;  %4277 = vmatprep.subr.bf16.mxu1 %v4468_v13 }
 0x146   : > { %2598 = vst [vmem:[#allocation4 + $0xc] sm:$0x33] %v2594_v54  ;;  %v2621_v32 = vrot.slane %v2618_v30, 4  ;;  %2851 = vmatprep.subr.bf16.mxu0 %v4400_v31 }
 0x147   : > { %v2625_v33 = vsel %vm379_vm10, %v2620_v28, %v2622_v29  ;;  %2852 = vmatpush1.bf16.msra.mxu0 %v4402_v12 }
 0x148   : > { %2629 = vst [vmem:[#allocation4 + $0x14] sm:$0xc] %v2625_v33  ;;  %v2623_v17 = vsel %vm315_vm1, %v2621_v32, %v2622_v29  ;;  %v3210_v34 = vpop.permute.xlu1 %3209 }
 0x149   : > { %v2624_v35 = vsel %vm379_vm10, %v2618_v30, %v2623_v17  ;;  %v3212_v18 = vrot.slane %v3210_v34, 4  ;;  %v3208_v36 = vpop.permute.xlu0 %3207  ;;  %v2780_v27 = vld [vmem:[#allocation4] sm:$0xff] }
 0x14a   : > { %2628 = vst [vmem:[#allocation4 + $0xc] sm:$0xcc] %v2624_v35  ;;  %v3211_v38 = vrot.slane %v3208_v36, 4 }
 0x14b   : > { %v3215_v40 = vsel %vm534_vm2, %v3210_v34, %v3212_v18 }
 0x14c   : > { %3219 = vst [vmem:[#allocation4 + $0x38] sm:$0x3] %v3215_v40  ;;  %v3213_v39 = vsel %vm315_vm1, %v3211_v38, %v3212_v18  ;;  %v3090_v41 = vpop.permute.xlu1 %3089 }
 0x14d   : > { %v3214_v43 = vsel %vm534_vm2, %v3208_v36, %v3213_v39  ;;  %v3092_v44 = vrot.slane %v3090_v41, 4  ;;  %v3088_v45 = vpop.permute.xlu0 %3087 }
 0x14e   : > { %3218 = vst [vmem:[#allocation4 + $0x30] sm:$0x33] %v3214_v43  ;;  %v3091_v24 = vrot.slane %v3088_v45, 4 }
 0x14f   : > { %v3095_v6 = vsel %vm410_vm4, %v3090_v41, %v3092_v44  ;;  %v4403_v23 = vld [vmem:[#allocation4 + $0x8] ss:$12 sps:$4 sm:$0xff]  }
 0x150   : > { %3099 = vst [vmem:[#allocation4 + $0x20] sm:$0x3] %v3095_v6  ;;  %v3093_v46 = vsel %vm315_vm1, %v3091_v24, %v3092_v44  ;;  %v3120_v49 = vpop.permute.xlu1 %3119  ;;  %4161 = vst.sshfl [vmem:[#allocation4 + $0x8] sm:$0x3 pattern:$0x76325410] %v2961_v42  ;;  %4278 = vmatpush3.bf16.msra.mxu1 %v4403_v23 }
 0x151   : > { %v3094_v51 = vsel %vm410_vm4, %v3088_v45, %v3093_v46  ;;  %v3122_v52 = vrot.slane %v3120_v49, 4  ;;  %v3118_v56 = vpop.permute.xlu0 %3117  ;;  %v2782_v57 = vld [vmem:[#allocation4 + $0xc] sm:$0xff]  ;;  %4283 = vmatprep.subr.bf16.mxu1 %v4468_v13 }
 0x152   : > { %v4405_v58 = vld [vmem:[#allocation4 + $0x4] ss:$12 sps:$4 sm:$0xff]   ;;  %3098 = vst [vmem:[#allocation4 + $0x18] sm:$0x33] %v3094_v51  ;;  %v3121_v59 = vrot.slane %v3118_v56, 4  ;;  %v4148_v60 = vcombine.low %v2780_v27, %v2782_v57 }
 0x153   : > { %4160 = vst.sshfl [vmem:[#allocation4] sm:$0xf pattern:$0x76325410] %v2959_v37  ;;  %v3125_v61 = vsel %vm441_vm3, %v3120_v49, %v3122_v52  ;;  %2853 = vmatprep.subr.bf16.mxu0 %v4405_v58  ;;  %4280 = vmatmul.mubr.msk.bf16.vlgmr.msra.gmra.mxu1 %vm606_vm11, %v5037_v48  ;;  %v3399_v49 = vld [vmem:[%s4538_s26 + $0x38] sm:$0x3f] }
 0x154   : > { %v4408_v47 = vld [vmem:[#allocation4 + $0x38] ss:$0 sps:$4 sm:$0x33]   ;;  %3129 = vst [vmem:[#allocation4 + $0x20] sm:$0xc] %v3125_v61  ;;  %v3123_v62 = vsel %vm315_vm1, %v3121_v59, %v3122_v52  ;;  %v3150_v63 = vpop.permute.xlu1 %3149  ;;  %2854 = vmatpush1.bf16.msra.mxu0 %v4148_v60  ;;  %4289 = vmatprep.mubr.msk.bf16.mxu1 %vm4474_vm0, %v4468_v13  ;;  %v3401_v57 = vcombine.high %v3399_v49, %v3399_v49 }
 0x155   : > { %v3124_v0 = vsel %vm441_vm3, %v3118_v56, %v3123_v62  ;;  %v3152_v2 = vrot.slane %v3150_v63, 4  ;;  %v3148_v3 = vpop.permute.xlu0 %3147  ;;  %v3228_v5 = vld [vmem:[#allocation4 + $0x30] sm:$0x33]  ;;  %v3277_v7 = vsel %vm610_vm6, %v4408_v47, 0 }
 0x156   : > { %3128 = vst [vmem:[#allocation4 + $0x18] sm:$0xcc] %v3124_v0  ;;  %v3151_v8 = vrot.slane %v3148_v3, 4  ;;  %v4169_v50 = vcombine.high %v3228_v5, %v3228_v5  ;;  %4284 = vmatpush3.bf16.msra.mxu1 %v3277_v7  ;;  %v4168_v9 = vcombine.low %v3228_v5, %v3228_v5 }
 0x157   : > { %v3155_v10 = vsel %vm472_vm5, %v3150_v63, %v3152_v2  ;;  %4158 = vmatmul.mubr.msk.bf16.vlgmr.msra.gmra.mxu0 %vm606_vm11, %v5037_v48  ;;  %4285 = vmatprep.subr.bf16.mxu1 %v4468_v13 }
 0x158   : > { %3159 = vst [vmem:[#allocation4 + $0x2c] sm:$0x3] %v3155_v10  ;;  %v3153_v11 = vsel %vm315_vm1, %v3151_v8, %v3152_v2  ;;  %4171 = vmatprep.subr.msk.bf16.mxu0 %vm610_vm6, %v4169_v50  ;;  %v3180_v14 = vpop.permute.xlu1 %3179  ;;  %v3271_v16 = vsel %vm610_vm6, %v4168_v9, 0  ;;  %3311 = vmatprep.mubr.bf16.mxu0 %v4475_v21 }
 0x159   : > { %v3154_v53 = vsel %vm472_vm5, %v3148_v3, %v3153_v11  ;;  %v3182_v55 = vrot.slane %v3180_v14, 4  ;;  %v3178_v19 = vpop.permute.xlu0 %3177  ;;  %3290 = vmatpush1.bf16.msra.mxu0 %v3271_v16 }
 0x15a   : > { %3158 = vst [vmem:[#allocation4 + $0x24] sm:$0x33] %v3154_v53  ;;  %v3181_v20 = vrot.slane %v3178_v19, 4 }
 0x15b   : > { %v3185_v22 = vsel %vm503_vm7, %v3180_v14, %v3182_v55 }
 0x15c   : > { %3189 = vst [vmem:[#allocation4 + $0x2c] sm:$0xc] %v3185_v22  ;;  %v3183_v25 = vsel %vm315_vm1, %v3181_v20, %v3182_v55  ;;  %v3000_v26 = vpop.permute.xlu1 %2999 }
 0x15d   : > { %v3184_v15 = vsel %vm503_vm7, %v3178_v19, %v3183_v25  ;;  %v3002_v28 = vrot.slane %v3000_v26, 4  ;;  %v2998_v54 = vpop.permute.xlu0 %2997 }
 0x15e   : > { %3188 = vst [vmem:[#allocation4 + $0x24] sm:$0xcc] %v3184_v15  ;;  %v3001_v29 = vrot.slane %v2998_v54, 4 }
 0x15f   : > { %v3005_v30 = vsel %vm317_vm8, %v3000_v26, %v3002_v28 }
 0x160   : > { %3009 = vst [vmem:[#allocation4 + $0x8] sm:$0xc] %v3005_v30  ;;  %v3003_v31 = vsel %vm315_vm1, %v3001_v29, %v3002_v28  ;;  %v3030_v12 = vpop.permute.xlu1 %3029 }
 0x161   : > { %v3004_v32 = vsel %vm317_vm8, %v2998_v54, %v3003_v31  ;;  %v3032_v33 = vrot.slane %v3030_v12, 4  ;;  %v3028_v17 = vpop.permute.xlu0 %3027 }
 0x162   : > { %3008 = vst [vmem:[#allocation4] sm:$0xcc] %v3004_v32  ;;  %v3031_v34 = vrot.slane %v3028_v17, 4 }
 0x163   : > { %v3035_v35 = vsel %vm348_vm9, %v3030_v12, %v3032_v33  ;;  %v4410_v18 = vld [vmem:[#allocation4 + $0x20] ss:$12 sps:$4 sm:$0xff]  }
 0x164   : > { %3039 = vst [vmem:[#allocation4 + $0x14] sm:$0x3] %v3035_v35  ;;  %v3033_v36 = vsel %vm315_vm1, %v3031_v34, %v3032_v33  ;;  %v3060_v37 = vpop.permute.xlu1 %3059  ;;  %4286 = vmatpush3.bf16.msra.mxu1 %v4410_v18 }
 0x165   : > { %v3034_v38 = vsel %vm348_vm9, %v3028_v17, %v3033_v36  ;;  %v3062_v40 = vrot.slane %v3060_v37, 4  ;;  %v3058_v39 = vpop.permute.xlu0 %3057  ;;  %v4411_v41 = vld [vmem:[#allocation4 + $0x1c] ss:$12 sps:$4 sm:$0xff]   ;;  %v4413_v42 = vld [vmem:[#allocation4 + $0x18] ss:$12 sps:$4 sm:$0xff]   ;;  %4287 = vmatprep.subr.bf16.mxu1 %v4468_v13 }
 0x166   : > { %3038 = vst [vmem:[#allocation4 + $0xc] sm:$0x33] %v3034_v38  ;;  %v3061_v43 = vrot.slane %v3058_v39, 4  ;;  %3291 = vmatprep.subr.bf16.mxu0 %v4411_v41 }
 0x167   : > { %v3065_v44 = vsel %vm379_vm10, %v3060_v37, %v3062_v40  ;;  %3292 = vmatpush1.bf16.msra.mxu0 %v4413_v42 }
 0x168   : > { %3069 = vst [vmem:[#allocation4 + $0x14] sm:$0xc] %v3065_v44  ;;  %v3063_v45 = vsel %vm315_vm1, %v3061_v43, %v3062_v40  ;;  %v3650_v24 = vpop.permute.xlu1 %3649 }
 0x169   : > { %v3064_v6 = vsel %vm379_vm10, %v3058_v39, %v3063_v45  ;;  %v3652_v23 = vrot.slane %v3650_v24, 4  ;;  %v3648_v46 = vpop.permute.xlu0 %3647  ;;  %v3220_v7 = vld [vmem:[#allocation4] sm:$0xff] }
 0x16a   : > { %3068 = vst [vmem:[#allocation4 + $0xc] sm:$0xcc] %v3064_v6  ;;  %v3651_v51 = vrot.slane %v3648_v46, 4 }
 0x16b   : > { %v3655_v52 = vsel %vm534_vm2, %v3650_v24, %v3652_v23 }
 0x16c   : > { %3659 = vst [vmem:[#allocation4 + $0x38] sm:$0x3] %v3655_v52  ;;  %v3653_v56 = vsel %vm315_vm1, %v3651_v51, %v3652_v23  ;;  %v3530_v27 = vpop.permute.xlu1 %3529 }
 0x16d   : > { %v3654_v58 = vsel %vm534_vm2, %v3648_v46, %v3653_v56  ;;  %v3532_v59 = vrot.slane %v3530_v27, 4  ;;  %v3528_v60 = vpop.permute.xlu0 %3527  ;;  %vm3862_vm2 = vcmask 1046528  }
 0x16e   : > { %3658 = vst [vmem:[#allocation4 + $0x30] sm:$0x33] %v3654_v58  ;;  %v3531_v61 = vrot.slane %v3528_v60, 4 }
 0x16f   : > { %v3535_v47 = vsel %vm410_vm4, %v3530_v27, %v3532_v59  ;;  %v4414_v62 = vld [vmem:[#allocation4 + $0x8] ss:$12 sps:$4 sm:$0xff]  }
 0x170   : > { %3539 = vst [vmem:[#allocation4 + $0x20] sm:$0x3] %v3535_v47  ;;  %v3533_v63 = vsel %vm315_vm1, %v3531_v61, %v3532_v59  ;;  %v3560_v0 = vpop.permute.xlu1 %3559  ;;  %4175 = vst.sshfl [vmem:[#allocation4 + $0x8] sm:$0x3 pattern:$0x76325410] %v3401_v57  ;;  %4288 = vmatpush3.bf16.msra.mxu1 %v4414_v62 }
 0x171   : > { %v3534_v2 = vsel %vm410_vm4, %v3528_v60, %v3533_v63  ;;  %v3562_v3 = vrot.slane %v3560_v0, 4  ;;  %v3558_v5 = vpop.permute.xlu0 %3557  ;;  %v3222_v8 = vld [vmem:[#allocation4 + $0xc] sm:$0xff]  ;;  %4293 = vmatprep.subr.bf16.mxu1 %v4468_v13 }
 0x172   : > { %v4416_v50 = vld [vmem:[#allocation4 + $0x4] ss:$12 sps:$4 sm:$0xff]   ;;  %3538 = vst [vmem:[#allocation4 + $0x18] sm:$0x33] %v3534_v2  ;;  %v3561_v9 = vrot.slane %v3558_v5, 4  ;;  %v4162_v10 = vcombine.low %v3220_v7, %v3222_v8 }
 0x173   : > { %4174 = vst.sshfl [vmem:[#allocation4] sm:$0xf pattern:$0x76325410] %v3399_v49  ;;  %v3565_v11 = vsel %vm441_vm3, %v3560_v0, %v3562_v3  ;;  %3293 = vmatprep.subr.bf16.mxu0 %v4416_v50  ;;  %4290 = vmatmul.mubr.msk.bf16.vlgmr.msra.gmra.mxu1 %vm606_vm11, %v5037_v48 }
 0x174   : > { %v4419_v14 = vld [vmem:[#allocation4 + $0x38] ss:$0 sps:$4 sm:$0x33]   ;;  %3569 = vst [vmem:[#allocation4 + $0x20] sm:$0xc] %v3565_v11  ;;  %v3563_v16 = vsel %vm315_vm1, %v3561_v9, %v3562_v3  ;;  %v3590_v53 = vpop.permute.xlu1 %3589  ;;  %3294 = vmatpush1.bf16.msra.mxu0 %v4162_v10  ;;  %4299 = vmatprep.mubr.msk.bf16.mxu1 %vm4474_vm0, %v4468_v13  ;;  %vm3858_vm0 = vcmask 1045504  }
 0x175   : > { %v3564_v55 = vsel %vm441_vm3, %v3558_v5, %v3563_v16  ;;  %v3592_v19 = vrot.slane %v3590_v53, 4  ;;  %v3588_v20 = vpop.permute.xlu0 %3587  ;;  %v3668_v22 = vld [vmem:[#allocation4 + $0x30] sm:$0x33]  ;;  %v3717_v25 = vsel %vm610_vm6, %v4419_v14, 0  ;;  %v5121_v26 = vpop.f32.mrf.mxu1 }
 0x176   : > { %3568 = vst [vmem:[#allocation4 + $0x18] sm:$0xcc] %v3564_v55  ;;  %v3591_v15 = vrot.slane %v3588_v20, 4  ;;  %v4183_v28 = vcombine.high %v3668_v22, %v3668_v22  ;;  %4294 = vmatpush3.bf16.msra.mxu1 %v3717_v25  ;;  %v4182_v54 = vcombine.low %v3668_v22, %v3668_v22 }
 0x177   : > { %v3595_v29 = vsel %vm472_vm5, %v3590_v53, %v3592_v19  ;;  %4172 = vmatmul.mubr.msk.bf16.vlgmr.msra.gmra.mxu0 %vm606_vm11, %v5037_v48  ;;  %4295 = vmatprep.subr.bf16.mxu1 %v4468_v13  ;;  %v4231_v30 = vpop.f32.mrf.mxu1 }
 0x178   : > { %3599 = vst [vmem:[#allocation4 + $0x2c] sm:$0x3] %v3595_v29  ;;  %v3593_v31 = vsel %vm315_vm1, %v3591_v15, %v3592_v19  ;;  %4185 = vmatprep.subr.msk.bf16.mxu0 %vm610_vm6, %v4183_v28  ;;  %v3620_v12 = vpop.permute.xlu1 %3619  ;;  %v3711_v32 = vsel %vm610_vm6, %v4182_v54, 0  ;;  %3751 = vmatprep.mubr.bf16.mxu0 %v4475_v21 }
 0x179   : > { %v3594_v33 = vsel %vm472_vm5, %v3588_v20, %v3593_v31  ;;  %v3622_v17 = vrot.slane %v3620_v12, 4  ;;  %v3618_v34 = vpop.permute.xlu0 %3617  ;;  %3730 = vmatpush1.bf16.msra.mxu0 %v3711_v32  ;;  %v700_v35 = vpop.f32.mrf.mxu1 }
 0x17a   : > { %3598 = vst [vmem:[#allocation4 + $0x24] sm:$0x33] %v3594_v33  ;;  %v3621_v18 = vrot.slane %v3618_v34, 4 }
 0x17b   : > { %v3625_v36 = vsel %vm503_vm7, %v3620_v12, %v3622_v17  ;;  %v4232_v37 = vpop.f32.mrf.mxu1 }
 0x17c   : > { %3629 = vst [vmem:[#allocation4 + $0x2c] sm:$0xc] %v3625_v36  ;;  %v3623_v38 = vsel %vm315_vm1, %v3621_v18, %v3622_v17  ;;  %v3440_v40 = vpop.permute.xlu1 %3439  ;;  %v754_v18 = vsub.s32 0, %v4532_v4 }
 0x17d   : > { %v3624_v39 = vsel %vm503_vm7, %v3618_v34, %v3623_v38  ;;  %v3442_v41 = vrot.slane %v3440_v40, 4  ;;  %v3438_v42 = vpop.permute.xlu0 %3437 }
 0x17e   : > { %3628 = vst [vmem:[#allocation4 + $0x24] sm:$0xcc] %v3624_v39  ;;  %v3441_v21 = vrot.slane %v3438_v42, 4 }
 0x17f   : > { %v3445_v43 = vsel %vm317_vm8, %v3440_v40, %v3442_v41 }
 0x180   : > { %3449 = vst [vmem:[#allocation4 + $0x8] sm:$0xc] %v3445_v43  ;;  %v3443_v44 = vsel %vm315_vm1, %v3441_v21, %v3442_v41  ;;  %v3470_v45 = vpop.permute.xlu1 %3469 }
 0x181   : > { %v3444_v24 = vsel %vm317_vm8, %v3438_v42, %v3443_v44  ;;  %v3472_v6 = vrot.slane %v3470_v45, 4  ;;  %v3468_v23 = vpop.permute.xlu0 %3467 }
 0x182   : > { %3448 = vst [vmem:[#allocation4] sm:$0xcc] %v3444_v24  ;;  %v3471_v46 = vrot.slane %v3468_v23, 4 }
 0x183   : > { %v3475_v49 = vsel %vm348_vm9, %v3470_v45, %v3472_v6  ;;  %v4421_v51 = vld [vmem:[#allocation4 + $0x20] ss:$12 sps:$4 sm:$0xff]  }
 0x184   : > { %3479 = vst [vmem:[#allocation4 + $0x14] sm:$0x3] %v3475_v49  ;;  %v3473_v52 = vsel %vm315_vm1, %v3471_v46, %v3472_v6  ;;  %v3500_v56 = vpop.permute.xlu1 %3499  ;;  %4296 = vmatpush3.bf16.msra.mxu1 %v4421_v51 }
 0x185   : > { %v3474_v27 = vsel %vm348_vm9, %v3468_v23, %v3473_v52  ;;  %v3502_v57 = vrot.slane %v3500_v56, 4  ;;  %v3498_v58 = vpop.permute.xlu0 %3497  ;;  %v4422_v59 = vld [vmem:[#allocation4 + $0x18] ss:$12 sps:$4 sm:$0xff]   ;;  %v4424_v60 = vld [vmem:[#allocation4 + $0x1c] ss:$12 sps:$4 sm:$0xff]   ;;  %4297 = vmatprep.subr.bf16.mxu1 %v4468_v13 }
 0x186   : > { %3478 = vst [vmem:[#allocation4 + $0xc] sm:$0x33] %v3474_v27  ;;  %v3501_v61 = vrot.slane %v3498_v58, 4  ;;  %3731 = vmatprep.subr.bf16.mxu0 %v4424_v60 }
 0x187   : > { %v3505_v47 = vsel %vm379_vm10, %v3500_v56, %v3502_v57  ;;  %3732 = vmatpush1.bf16.msra.mxu0 %v4422_v59 }
 0x188   : > { %3509 = vst [vmem:[#allocation4 + $0x14] sm:$0xc] %v3505_v47  ;;  %v3503_v62 = vsel %vm315_vm1, %v3501_v61, %v3502_v57 }
 0x189   : > { %v3504_v63 = vsel %vm379_vm10, %v3498_v58, %v3503_v62 }
 0x18a   : > { %3508 = vst [vmem:[#allocation4 + $0xc] sm:$0xcc] %v3504_v63 }
 0x18f   : > { %v4425_v0 = vld [vmem:[#allocation4 + $0x8] ss:$12 sps:$4 sm:$0xff]  }
 0x190   : > { %4298 = vmatpush3.bf16.msra.mxu1 %v4425_v0 }
 0x191   : > { %v4426_v2 = vld [vmem:[#allocation4] ss:$12 sps:$4 sm:$0xff]   ;;  %v4428_v3 = vld [vmem:[#allocation4 + $0x4] ss:$12 sps:$4 sm:$0xff]  }
 0x192   : > { %3733 = vmatprep.subr.bf16.mxu0 %v4428_v3  ;;  %v5145_v5 = vpop.permute.xlu1 %558 }
 0x193   : > { %3734 = vmatpush1.bf16.msra.mxu0 %v4426_v2  ;;  %4300 = vmatmul.mubr.msk.bf16.vlgmr.msra.gmra.mxu1 %vm606_vm11, %v5037_v48  ;;  %v5149_v7 = vpop.permute.xlu0 %553  ;;  %v701_v8 = vadd.f32 %v700_v35, %v5145_v5 }
 0x194   : > { %v698_v9 = vadd.f32 %v5121_v26, %v5149_v7 }
 0x195   : > { %v1156_v50 = vpop.f32.mrf.mxu1  ;;  %v709_v10 = vmax.f32 %v701_v8, 0.0 }
 0x196   : > { %v1157_v11 = vadd.f32 %v1156_v50, %v5149_v7  ;;  %4186 = vmatmul.mubr.msk.bf16.vlgmr.msra.gmra.mxu0 %vm606_vm11, %v5037_v48  ;;  %v706_v16 = vmax.f32 %v698_v9, 0.0  ;;  %v5157_v53 = vpop.permute.xlu1 %712 }
 0x197   : > { %v4241_v14 = vpop.f32.mrf.mxu1  ;;  %v5159_v55 = vpop.permute.xlu0 %717 }
 0x198   : > { %v1165_v19 = vmax.f32 %v1157_v11, 0.0  ;;  %v722_v22 = vmul.f32 %v5157_v53, %v706_v16  ;;  %v725_v25 = vmul.f32 %v5159_v55, %v709_v10 }
 0x199   : > { %v1159_v20 = vpop.f32.mrf.mxu1 }
 0x19a   : > { %v1160_v26 = vadd.f32 %v1159_v20, %v5145_v5  ;;  %v740_v28 = vadd.f32 %v725_v25, %v722_v22  ;;  %v1171_v29 = vmul.f32 %v1165_v19, %v5157_v53  ;;  %v750_v37 = vpop.permute.xlu1 %749  ;;  %v654_v19 = vpop.f32.mrf.mxu0 }
 0x19b   : > { %v4242_v15 = vpop.f32.mrf.mxu1  ;;  %v5169_v39 = vrot.slane %v750_v37, %v754_v18 }
 0x19c   : > { %v1168_v54 = vmax.f32 %v1160_v26, 0.0  ;;  %v741_v48 = vrot.slane %v740_v28, 4  ;;  %v656_v25 = vpop.f32.mrf.mxu0 }
 0x19e   : > { %v1174_v30 = vmul.f32 %v1168_v54, %v5159_v55  ;;  %v742_v31 = vadd.f32 %v741_v48, %v740_v28  ;;  %v658_v28 = vpop.f32.mrf.mxu0 }
 0x1a0   : > { %v1189_v12 = vadd.f32 %v1174_v30, %v1171_v29  ;;  %v743_v32 = vrot.slane %v742_v31, 2  ;;  %v660_v48 = vpop.f32.mrf.mxu0 }
 0x1a2   : > { %v1190_v33 = vrot.slane %v1189_v12, 4  ;;  %v744_v17 = vadd.f32 %v743_v32, %v742_v31 }
 0x1a4   : > { %v1191_v34 = vadd.f32 %v1190_v33, %v1189_v12  ;;  %v745_v35 = vrot.slane %v744_v17, 1  ;;  %v1113_v12 = vpop.f32.mrf.mxu0 }
 0x1a6   : > { %v1192_v36 = vrot.slane %v1191_v34, 2  ;;  %v746_v38 = vadd.f32 %v745_v35, %v744_v17  ;;  %v1115_v17 = vpop.f32.mrf.mxu0 }
 0x1a8   : > { %v1193_v40 = vadd.f32 %v1192_v36, %v1191_v34  ;;  %v758_v42 = vadd.f32 %v5169_v39, %v746_v38  ;;  %v1117_v34 = vpop.f32.mrf.mxu0 }
 0x1aa   : > { %v1194_v41 = vrot.slane %v1193_v40, 1 }
 0x1ac   : > { %v1195_v21 = vadd.f32 %v1194_v41, %v1193_v40  ;;  %v1119_v40 = vpop.f32.mrf.mxu0 }
 0x1ae   : > { %v1198_v43 = vadd.f32 %v1195_v21, %v5169_v39 }
 0x1b0   : > { %v3842_v44 = vsel %vm3839_vm12, %v758_v42, %v1198_v43 }
 0x1b4   : > { %v1596_v45 = vpop.f32.mrf.mxu1 }
 0x1b5   : > { %v1597_v24 = vadd.f32 %v1596_v45, %v5149_v7 }
 0x1b6   : > { %v4251_v6 = vpop.f32.mrf.mxu1 }
 0x1b7   : > { %v1605_v23 = vmax.f32 %v1597_v24, 0.0 }
 0x1b8   : > { %v1599_v46 = vpop.f32.mrf.mxu1  ;;  %v1553_v45 = vpop.f32.mrf.mxu0 }
 0x1b9   : > { %v1600_v49 = vadd.f32 %v1599_v46, %v5145_v5  ;;  %v1611_v56 = vmul.f32 %v1605_v23, %v5157_v53  ;;  %v4476_v23 = vmov -inf  }
 0x1ba   : > { %v4252_v51 = vpop.f32.mrf.mxu1  ;;  %262 = vst.msk [vmem:[#allocation2] sm:$0x7] %vm5191_vm14, %v4476_v23 }
 0x1bb   : > { %v1608_v52 = vmax.f32 %v1600_v49, 0.0  ;;  %v5200_v49 = vpop.f32.mrf.mxu0 }
 0x1bd   : > { %v1614_v27 = vmul.f32 %v1608_v52, %v5159_v55 }
 0x1bf   : > { %v1629_v57 = vadd.f32 %v1614_v27, %v1611_v56  ;;  %v1557_v56 = vpop.f32.mrf.mxu0 }
 0x1c1   : > { %v1630_v58 = vrot.slane %v1629_v57, 4  ;;  %v5202_v1 = vpop.f32.mrf.mxu0 }
 0x1c3   : > { %v1631_v59 = vadd.f32 %v1630_v58, %v1629_v57 }
 0x1c5   : > { %v1632_v60 = vrot.slane %v1631_v59, 2 }
 0x1c7   : > { %v1633_v61 = vadd.f32 %v1632_v60, %v1631_v59 }
 0x1c9   : > { %v1634_v47 = vrot.slane %v1633_v61, 1 }
 0x1cb   : > { %v1635_v62 = vadd.f32 %v1634_v47, %v1633_v61 }
 0x1cd   : > { %v1638_v63 = vadd.f32 %v1635_v62, %v5169_v39 }
 0x1cf   : > { %v3845_v0 = vsel %vm610_vm6, %v3842_v44, %v1638_v63 }
 0x1d3   : > { %v2036_v2 = vpop.f32.mrf.mxu1 }
 0x1d4   : > { %v2037_v3 = vadd.f32 %v2036_v2, %v5149_v7 }
 0x1d5   : > { %v4261_v8 = vpop.f32.mrf.mxu1  ;;  %v5204_v60 = vpop.f32.mrf.mxu0 }
 0x1d6   : > { %v2045_v50 = vmax.f32 %v2037_v3, 0.0 }
 0x1d7   : > { %v2039_v9 = vpop.f32.mrf.mxu1  ;;  %v5210_v13 = vpop.f32.mrf.mxu0 }
 0x1d8   : > { %v2040_v10 = vadd.f32 %v2039_v9, %v5145_v5  ;;  %v2051_v16 = vmul.f32 %v2045_v50, %v5157_v53 }
 0x1d9   : > { %v4262_v11 = vpop.f32.mrf.mxu1  ;;  %v5212_v62 = vpop.f32.mrf.mxu0 }
 0x1da   : > { %v2048_v14 = vmax.f32 %v2040_v10, 0.0  ;;  %v659_v10 = vadd.f32 %v658_v28, %v5145_v5 }
 0x1db   : > { %v5215_v8 = vpop.f32.mrf.mxu0 }
 0x1dc   : > { %v2054_v20 = vmul.f32 %v2048_v14, %v5159_v55 }
 0x1de   : > { %v2069_v22 = vadd.f32 %v2054_v20, %v2051_v16  ;;  %v655_v20 = vadd.f32 %v654_v19, %v5149_v7 }
 0x1e0   : > { %v2070_v26 = vrot.slane %v2069_v22, 4  ;;  %v704_v28 = vmax.f32 %v655_v20, 0.0 }
 0x1e2   : > { %v2071_v15 = vadd.f32 %v2070_v26, %v2069_v22  ;;  %v657_v22 = vadd.f32 %v656_v25, %v5149_v7  ;;  %v1116_v25 = vadd.f32 %v1115_v17, %v5149_v7 }
 0x1e4   : > { %v2072_v54 = vrot.slane %v2071_v15, 2  ;;  %v1164_v23 = vmax.f32 %v1116_v25, 0.0 }
 0x1e6   : > { %v2073_v29 = vadd.f32 %v2072_v54, %v2071_v15  ;;  %v1114_v15 = vadd.f32 %v1113_v12, %v5149_v7  ;;  %v1118_v54 = vadd.f32 %v1117_v34, %v5145_v5  ;;  %v1120_v12 = vadd.f32 %v1119_v40, %v5145_v5 }
 0x1e7   : > { %v720_v34 = vmul.f32 %v5157_v53, %v704_v28  ;;  %v1558_v40 = vadd.f32 %v1557_v56, %v5145_v5  ;;  %v1560_v56 = vadd.f32 %v5202_v1, %v5145_v5 }
 0x1e8   : > { %v2074_v30 = vrot.slane %v2073_v29, 1  ;;  %v1166_v19 = vmax.f32 %v1118_v54, 0.0 }
 0x1ea   : > { %v2075_v31 = vadd.f32 %v2074_v30, %v2073_v29  ;;  %v661_v29 = vadd.f32 %v660_v48, %v5145_v5 }
 0x1ec   : > { %v2078_v32 = vadd.f32 %v2075_v31, %v5169_v39 }
 0x1ee   : > { %v3849_v33 = vsel %vm3846_vm13, %v3845_v0, %v2078_v32  ;;  %v707_v32 = vmax.f32 %v659_v10, 0.0 }
 0x1f0   : > { %v723_v48 = vmul.f32 %v5159_v55, %v707_v32 }
 0x1f3   : > { %v2476_v35 = vpop.f32.mrf.mxu1 }
 0x1f4   : > { %v2477_v36 = vadd.f32 %v2476_v35, %v5149_v7 }
 0x1f5   : > { %v4271_v37 = vpop.f32.mrf.mxu1 }
 0x1f6   : > { %v2485_v38 = vmax.f32 %v2477_v36, 0.0  ;;  %v1163_v36 = vmax.f32 %v1114_v15, 0.0  ;;  %v708_v37 = vmax.f32 %v661_v29, 0.0 }
 0x1f7   : > { %v2479_v41 = vpop.f32.mrf.mxu1  ;;  %v5222_v26 = vpop.f32.mrf.mxu0 }
 0x1f8   : > { %v2480_v42 = vadd.f32 %v2479_v41, %v5145_v5  ;;  %v2491_v44 = vmul.f32 %v2485_v38, %v5157_v53 }
 0x1f9   : > { %v4272_v21 = vpop.f32.mrf.mxu1  ;;  %v5228_v35 = vpop.f32.mrf.mxu0 }
 0x1fa   : > { %v2488_v43 = vmax.f32 %v2480_v42, 0.0 }
 0x1fb   : > { %v5235_v21 = vpop.f32.mrf.mxu0 }
 0x1fc   : > { %v2494_v24 = vmul.f32 %v2488_v43, %v5159_v55  ;;  %v1169_v43 = vmul.f32 %v1163_v36, %v5157_v53 }
 0x1fe   : > { %v2509_v46 = vadd.f32 %v2494_v24, %v2491_v44  ;;  %v1172_v44 = vmul.f32 %v1166_v19, %v5159_v55  ;;  %v724_v24 = vmul.f32 %v5159_v55, %v708_v37 }
 0x200   : > { %v2510_v51 = vrot.slane %v2509_v46, 4 }
 0x202   : > { %v2511_v52 = vadd.f32 %v2510_v51, %v2509_v46  ;;  %v1554_v46 = vadd.f32 %v1553_v45, %v5149_v7  ;;  %v1167_v51 = vmax.f32 %v1120_v12, 0.0  ;;  %v1556_v45 = vadd.f32 %v5200_v49, %v5149_v7 }
 0x204   : > { %v2512_v27 = vrot.slane %v2511_v52, 2  ;;  %v1604_v49 = vmax.f32 %v1556_v45, 0.0 }
 0x206   : > { %v2513_v57 = vadd.f32 %v2512_v27, %v2511_v52  ;;  %v5242_v27 = vpop.f32.mrf.mxu0  ;;  %v1610_v19 = vmul.f32 %v1604_v49, %v5157_v53 }
 0x208   : > { %v2514_v58 = vrot.slane %v2513_v57, 1 }
 0x20a   : > { %v2515_v59 = vadd.f32 %v2514_v58, %v2513_v57  ;;  %v726_v57 = vadd.f32 %v723_v48, %v720_v34  ;;  %v1175_v58 = vadd.f32 %v1172_v44, %v1169_v43 }
 0x20c   : > { %v2518_v61 = vadd.f32 %v2515_v59, %v5169_v39  ;;  %v727_v10 = vrot.slane %v726_v57, 4 }
 0x20e   : > { %v5208_v47 = vsel %vm315_vm1, %v3849_v33, %v2518_v61  ;;  %v705_v33 = vmax.f32 %v657_v22, 0.0  ;;  %v1170_v61 = vmul.f32 %v1164_v23, %v5157_v53  ;;  %v728_v1 = vadd.f32 %v727_v10, %v726_v57 }
 0x20f   : > { %v1998_v57 = vadd.f32 %v5212_v62, %v5145_v5 }
 0x210   : > { %v721_v42 = vmul.f32 %v5157_v53, %v705_v33  ;;  %v729_v25 = vrot.slane %v728_v1, 2 }
 0x211   : > { %v2046_v10 = vmax.f32 %v1998_v57, 0.0 }
 0x212   : > { %v733_v59 = vadd.f32 %v724_v24, %v721_v42  ;;  %v730_v44 = vadd.f32 %v729_v25, %v728_v1 }
 0x213   : > { %v2916_v63 = vpop.f32.mrf.mxu1 }
 0x214   : > { %v2917_v0 = vadd.f32 %v2916_v63, %v5149_v7 }
 0x215   : > { %v4281_v2 = vpop.f32.mrf.mxu1 }
 0x216   : > { %v2925_v3 = vmax.f32 %v2917_v0, 0.0  ;;  %v1603_v0 = vmax.f32 %v1554_v46, 0.0  ;;  %v1606_v2 = vmax.f32 %v1558_v40, 0.0 }
 0x217   : > { %v2919_v50 = vpop.f32.mrf.mxu1 }
 0x218   : > { %v2920_v9 = vadd.f32 %v2919_v50, %v5145_v5  ;;  %v2931_v14 = vmul.f32 %v2925_v3, %v5157_v53  ;;  %v1173_v3 = vmul.f32 %v1167_v51, %v5159_v55  ;;  %v5246_v50 = vpop.f32.mrf.mxu0  ;;  %v1609_v20 = vmul.f32 %v1603_v0, %v5157_v53 }
 0x219   : > { %v4282_v11 = vpop.f32.mrf.mxu1  ;;  %v1612_v22 = vmul.f32 %v1606_v2, %v5159_v55  ;;  %v1994_v51 = vadd.f32 %v5204_v60, %v5149_v7  ;;  %v2000_v60 = vadd.f32 %v5215_v8, %v5145_v5  ;;  %v2874_v25 = vadd.f32 %v5246_v50, %v5149_v7 }
 0x21a   : > { %v2928_v16 = vmax.f32 %v2920_v9, 0.0  ;;  %v1176_v11 = vrot.slane %v1175_v58, 4  ;;  %v1182_v15 = vadd.f32 %v1173_v3, %v1170_v61  ;;  %v5255_v54 = vpop.f32.mrf.mxu0  ;;  %v1996_v61 = vadd.f32 %v5210_v13, %v5149_v7 }
 0x21b   : > { %v1615_v32 = vadd.f32 %v1612_v22, %v1609_v20  ;;  %v2043_v45 = vmax.f32 %v1994_v51, 0.0  ;;  %v2047_v1 = vmax.f32 %v2000_v60, 0.0 }
 0x21c   : > { %v2934_v30 = vmul.f32 %v2928_v16, %v5159_v55  ;;  %v1177_v28 = vadd.f32 %v1176_v11, %v1175_v58  ;;  %v1183_v33 = vrot.slane %v1182_v15, 4  ;;  %v2877_v36 = vpop.f32.mrf.mxu0  ;;  %v2044_v62 = vmax.f32 %v1996_v61, 0.0 }
 0x21d   : > { %v1616_v34 = vrot.slane %v1615_v32, 4 }
 0x21e   : > { %v2949_v31 = vadd.f32 %v2934_v30, %v2931_v14  ;;  %v734_v14 = vrot.slane %v733_v59, 4  ;;  %v1607_v30 = vmax.f32 %v1560_v56, 0.0  ;;  %v1184_v48 = vadd.f32 %v1183_v33, %v1182_v15 }
 0x21f   : > { %v1617_v40 = vadd.f32 %v1616_v34, %v1615_v32  ;;  %v2049_v15 = vmul.f32 %v2043_v45, %v5157_v53  ;;  %v2434_v32 = vadd.f32 %v5222_v26, %v5149_v7 }
 0x220   : > { %v2950_v38 = vrot.slane %v2949_v31, 4  ;;  %v1613_v37 = vmul.f32 %v1607_v30, %v5159_v55  ;;  %v2052_v30 = vmul.f32 %v2046_v10, %v5159_v55 }
 0x222   : > { %v2951_v41 = vadd.f32 %v2950_v38, %v2949_v31  ;;  %v735_v31 = vadd.f32 %v734_v14, %v733_v59  ;;  %v1622_v43 = vadd.f32 %v1613_v37, %v1610_v19  ;;  %v2050_v19 = vmul.f32 %v2044_v62, %v5157_v53 }
 0x223   : > { %v2440_v37 = vadd.f32 %v5242_v27, %v5145_v5  ;;  %v2053_v27 = vmul.f32 %v2047_v1, %v5159_v55 }
 0x224   : > { %v2952_v17 = vrot.slane %v2951_v41, 2  ;;  %v736_v38 = vrot.slane %v735_v31, 2  ;;  %v1623_v59 = vrot.slane %v1622_v43, 4 }
 0x226   : > { %v2953_v52 = vadd.f32 %v2952_v17, %v2951_v41  ;;  %v1178_v41 = vrot.slane %v1177_v28, 2  ;;  %v737_v24 = vadd.f32 %v736_v38, %v735_v31  ;;  %v5273_v11 = vadd.f32 %v1623_v59, %v1622_v43 }
 0x227   : > { %v2878_v38 = vadd.f32 %v2877_v36, %v5145_v5  ;;  %v2483_v36 = vmax.f32 %v2434_v32, 0.0 }
 0x228   : > { %v2954_v63 = vrot.slane %v2953_v52, 1  ;;  %v1179_v46 = vadd.f32 %v1178_v41, %v1177_v28  ;;  %v738_v0 = vrot.slane %v737_v24, 1  ;;  %v2438_v28 = vadd.f32 %v5235_v21, %v5145_v5 }
 0x229   : > { %v1625_v33 = vrot.slane %v5273_v11, 2  ;;  %v2876_v21 = vadd.f32 %v5255_v54, %v5149_v7  ;;  %v2926_v54 = vmax.f32 %v2878_v38, 0.0 }
 0x22a   : > { %v2955_v9 = vadd.f32 %v2954_v63, %v2953_v52  ;;  %v1185_v52 = vrot.slane %v1184_v48, 2  ;;  %v731_v63 = vrot.slane %v730_v44, 1  ;;  %v1180_v3 = vrot.slane %v1179_v46, 1 }
 0x22b   : > { %v2932_v45 = vmul.f32 %v2926_v54, %v5159_v55 }
 0x22c   : > { %v2958_v16 = vadd.f32 %v2955_v9, %v5169_v39  ;;  %v1618_v9 = vrot.slane %v1617_v40, 2  ;;  %v5269_v56 = vadd.f32 %v1185_v52, %v1184_v48  ;;  %v5275_v14 = vadd.f32 %v731_v63, %v730_v44 }
 0x22d   : > { %v5279_v20 = vadd.f32 %v1180_v3, %v1179_v46  ;;  %v2486_v44 = vmax.f32 %v2438_v28, 0.0  ;;  %v2923_v46 = vmax.f32 %v2874_v25, 0.0  ;;  %v2489_v63 = vmul.f32 %v2483_v36, %v5157_v53 }
 0x22e   : > { %v5259_v29 = vsel %vm3854_vm15, %v5208_v47, %v2958_v16  ;;  %v2879_v47 = vpop.f32.mrf.mxu0  ;;  %v5277_v16 = vadd.f32 %v738_v0, %v737_v24  ;;  %v5281_v22 = vadd.f32 %v1618_v9, %v1617_v40  ;;  %v1187_v49 = vrot.slane %v5269_v56, 1 }
 0x22f   : > { %v2880_v26 = vadd.f32 %v2879_v47, %v5145_v5  ;;  %v2924_v47 = vmax.f32 %v2876_v21, 0.0  ;;  %v2492_v0 = vmul.f32 %v2486_v44, %v5159_v55  ;;  %v2929_v9 = vmul.f32 %v2923_v46, %v5157_v53 }
 0x230   : > { %v1620_v1 = vrot.slane %v5281_v22, 1  ;;  %v756_v21 = vadd.f32 %v5169_v39, %v5275_v14 }
 0x231   : > { %v2927_v51 = vmax.f32 %v2880_v26, 0.0  ;;  %v2930_v62 = vmul.f32 %v2924_v47, %v5157_v53  ;;  %v2495_v32 = vadd.f32 %v2492_v0, %v2489_v63  ;;  %v2935_v38 = vadd.f32 %v2932_v45, %v2929_v9 }
 0x232   : > { %v757_v26 = vadd.f32 %v5169_v39, %v5277_v16 }
 0x233   : > { %v3356_v12 = vpop.f32.mrf.mxu1  ;;  %v2936_v44 = vrot.slane %v2935_v38, 4 }
 0x234   : > { %v3357_v8 = vadd.f32 %v3356_v12, %v5149_v7  ;;  %v2436_v12 = vadd.f32 %v5228_v35, %v5149_v7 }
 0x235   : > { %v4291_v42 = vpop.f32.mrf.mxu1 }
 0x236   : > { %v2055_v42 = vadd.f32 %v2052_v30, %v2049_v15  ;;  %v3365_v43 = vmax.f32 %v3357_v8, 0.0  ;;  %v2484_v40 = vmax.f32 %v2436_v12, 0.0  ;;  %v1626_v12 = vadd.f32 %v1625_v33, %v5273_v11 }
 0x237   : > { %v3313_v23 = vpop.f32.mrf.mxu0  ;;  %v3359_v17 = vpop.f32.mrf.mxu1 }
 0x238   : > { %v3360_v31 = vadd.f32 %v3359_v17, %v5145_v5  ;;  %v3314_v34 = vadd.f32 %v3313_v23, %v5149_v7  ;;  %v2487_v17 = vmax.f32 %v2440_v37, 0.0  ;;  %v2056_v57 = vrot.slane %v2055_v42, 4 }
 0x239   : > { %v4292_v58 = vpop.f32.mrf.mxu1  ;;  %v3315_v2 = vpop.f32.mrf.mxu0  ;;  %v3371_v59 = vmul.f32 %v3365_v43, %v5157_v53  ;;  %v2490_v10 = vmul.f32 %v2484_v40, %v5157_v53  ;;  %v2496_v43 = vrot.slane %v2495_v32, 4  ;;  %v1627_v36 = vrot.slane %v1626_v12, 1 }
 0x23a   : > { %v3368_v50 = vmax.f32 %v3360_v31, 0.0  ;;  %v3316_v24 = vadd.f32 %v3315_v2, %v5149_v7  ;;  %v3363_v23 = vmax.f32 %v3314_v34, 0.0  ;;  %v2062_v58 = vadd.f32 %v2053_v27, %v2050_v19 }
 0x23b   : > { %v3317_v13 = vpop.f32.mrf.mxu0  ;;  %v2493_v60 = vmul.f32 %v2487_v17, %v5159_v55  ;;  %v2057_v8 = vadd.f32 %v2056_v57, %v2055_v42  ;;  %v1188_v31 = vadd.f32 %v1187_v49, %v5269_v56  ;;  %v1196_v56 = vadd.f32 %v5279_v20, %v5169_v39 }
 0x23c   : > { %v3318_v48 = vadd.f32 %v3317_v13, %v5145_v5  ;;  %v3374_v61 = vmul.f32 %v3368_v50, %v5159_v55  ;;  %v3364_v2 = vmax.f32 %v3316_v24, 0.0  ;;  %v2933_v13 = vmul.f32 %v2927_v51, %v5159_v55 }
 0x23d   : > { %v3319_v41 = vpop.f32.mrf.mxu0  ;;  %v3369_v15 = vmul.f32 %v3363_v23, %v5157_v53  ;;  %v2063_v19 = vrot.slane %v2062_v58, 4  ;;  %v1621_v49 = vadd.f32 %v1620_v1, %v5281_v22  ;;  %v2058_v42 = vrot.slane %v2057_v8, 2 }
 0x23e   : > { %v3320_v35 = vadd.f32 %v3319_v41, %v5145_v5  ;;  %v3366_v52 = vmax.f32 %v3318_v48, 0.0  ;;  %v3389_v28 = vadd.f32 %v3374_v61, %v3371_v59  ;;  %v3370_v37 = vmul.f32 %v3364_v2, %v5157_v53 }
 0x23f   : > { %v2502_v41 = vadd.f32 %v2493_v60, %v2490_v10  ;;  %v2942_v34 = vadd.f32 %v2933_v13, %v2930_v62  ;;  %v1197_v50 = vadd.f32 %v1188_v31, %v5169_v39  ;;  %v2064_v11 = vadd.f32 %v2063_v19, %v2062_v58 }
 0x240   : > { %v3367_v3 = vmax.f32 %v3320_v35, 0.0  ;;  %v3372_v30 = vmul.f32 %v3366_v52, %v5159_v55  ;;  %v3390_v27 = vrot.slane %v3389_v28, 4  ;;  %v1636_v46 = vadd.f32 %v1621_v49, %v5169_v39 }
 0x241   : > { %v2503_v14 = vrot.slane %v2502_v41, 4  ;;  %v2943_v35 = vrot.slane %v2942_v34, 4  ;;  %v5336_v20 = vadd.f32 %v2058_v42, %v2057_v8  ;;  %v3840_v22 = vsel %vm3839_vm12, %v756_v21, %v1196_v56 }
 0x242   : > { %v3373_v25 = vmul.f32 %v3367_v3, %v5159_v55  ;;  %v3375_v48 = vadd.f32 %v3372_v30, %v3369_v15  ;;  %v3391_v54 = vadd.f32 %v3390_v27, %v3389_v28  ;;  %v2497_v47 = vadd.f32 %v2496_v43, %v2495_v32 }
 0x243   : > { %v2065_v51 = vrot.slane %v2064_v11, 2  ;;  %v5340_v23 = vsel %vm3839_vm12, %v757_v26, %v1197_v50  ;;  %v2937_v58 = vadd.f32 %v2936_v44, %v2935_v38  ;;  %v1628_v59 = vadd.f32 %v1627_v36, %v1626_v12 }
 0x244   : > { %v3382_v33 = vadd.f32 %v3373_v25, %v3370_v37  ;;  %v3376_v16 = vrot.slane %v3375_v48, 4  ;;  %v2504_v61 = vadd.f32 %v2503_v14, %v2502_v41  ;;  %v2944_v2 = vadd.f32 %v2943_v35, %v2942_v34 }
 0x245   : > { %v2060_v60 = vrot.slane %v5336_v20, 1  ;;  %v5346_v62 = vsel %vm610_vm6, %v3840_v22, %v1636_v46  ;;  %v3392_v13 = vrot.slane %v3391_v54, 2  ;;  %v2498_v1 = vrot.slane %v2497_v47, 2 }
 0x246   : > { %v3383_v52 = vrot.slane %v3382_v33, 4  ;;  %v3377_v3 = vadd.f32 %v3376_v16, %v3375_v48  ;;  %v2066_v8 = vadd.f32 %v2065_v51, %v2064_v11  ;;  %v2938_v19 = vrot.slane %v2937_v58, 2 }
 0x247   : > { %v2505_v37 = vrot.slane %v2504_v61, 2  ;;  %v2945_v12 = vrot.slane %v2944_v2, 2  ;;  %v3393_v48 = vadd.f32 %v3392_v13, %v3391_v54  ;;  %v2499_v42 = vadd.f32 %v2498_v1, %v2497_v47 }
 0x248   : > { %v3384_v31 = vadd.f32 %v3383_v52, %v3382_v33  ;;  %v3378_v41 = vrot.slane %v3377_v3, 2  ;;  %v2067_v27 = vrot.slane %v2066_v8, 1  ;;  %v2939_v11 = vadd.f32 %v2938_v19, %v2937_v58 }
 0x249   : > { %v2506_v14 = vadd.f32 %v2505_v37, %v2504_v61  ;;  %v2500_v54 = vrot.slane %v2499_v42, 1  ;;  %v2061_v52 = vadd.f32 %v2060_v60, %v5336_v20 }
 0x24a   : > { %v3385_v43 = vrot.slane %v3384_v31, 2  ;;  %v3379_v35 = vadd.f32 %v3378_v41, %v3377_v3 }
 0x24c   : > { %v3386_v47 = vadd.f32 %v3385_v43, %v3384_v31 }
 0x24e   : > { %v3387_v13 = vrot.slane %v3386_v47, 1 }
 0x253   : > { %v3796_v24 = vpop.f32.mrf.mxu1 }
 0x254   : > { %v3797_v17 = vadd.f32 %v3796_v24, %v5149_v7  ;;  %v2946_v24 = vadd.f32 %v2945_v12, %v2944_v2  ;;  %v3380_v2 = vrot.slane %v3379_v35, 1 }
 0x255   : > { %v4301_v40 = vpop.f32.mrf.mxu1 }
 0x256   : > { %v3753_v57 = vpop.f32.mrf.mxu0  ;;  %v3805_v9 = vmax.f32 %v3797_v17, 0.0  ;;  %v3394_v17 = vrot.slane %v3393_v48, 1  ;;  %v1637_v40 = vadd.f32 %v1628_v59, %v5169_v39 }
 0x257   : > { %v3754_v63 = vadd.f32 %v3753_v57, %v5149_v7  ;;  %v3799_v0 = vpop.f32.mrf.mxu1  ;;  %v2940_v57 = vrot.slane %v2939_v11, 1 }
 0x258   : > { %v3755_v45 = vpop.f32.mrf.mxu0  ;;  %v3800_v10 = vadd.f32 %v3799_v0, %v5145_v5  ;;  %v3811_v21 = vmul.f32 %v3805_v9, %v5157_v53  ;;  %v2507_v0 = vrot.slane %v2506_v14, 1  ;;  %v2947_v9 = vrot.slane %v2946_v24, 1 }
 0x259   : > { %v3756_v15 = vadd.f32 %v3755_v45, %v5149_v7  ;;  %v4302_v30 = vpop.f32.mrf.mxu1  ;;  %v3803_v25 = vmax.f32 %v3754_v63, 0.0  ;;  %v2068_v63 = vadd.f32 %v2067_v27, %v2066_v8  ;;  %v3844_v59 = vsel %vm610_vm6, %v5340_v23, %v1637_v40 }
 0x25a   : > { %v3808_v28 = vmax.f32 %v3800_v10, 0.0  ;;  %v3757_v32 = vpop.f32.mrf.mxu0  ;;  %v2076_v30 = vadd.f32 %v2061_v52, %v5169_v39  ;;  %v2941_v20 = vadd.f32 %v2940_v57, %v2939_v11  ;;  %v2508_v31 = vadd.f32 %v2507_v0, %v2506_v14 }
 0x25b   : > { %v3758_v38 = vadd.f32 %v3757_v32, %v5145_v5  ;;  %v3804_v7 = vmax.f32 %v3756_v15, 0.0  ;;  %v3809_v33 = vmul.f32 %v3803_v25, %v5157_v53  ;;  %v2077_v8 = vadd.f32 %v2068_v63, %v5169_v39 }
 0x25c   : > { %v3814_v26 = vmul.f32 %v3808_v28, %v5159_v55  ;;  %v3759_v34 = vpop.f32.mrf.mxu0  ;;  %v3381_v28 = vadd.f32 %v3380_v2, %v3379_v35  ;;  %v2948_v19 = vadd.f32 %v2947_v9, %v2946_v24  ;;  %v3388_v23 = vadd.f32 %v3387_v13, %v3386_v47 }
 0x25d   : > { %v3806_v56 = vmax.f32 %v3758_v38, 0.0  ;;  %v3760_v49 = vadd.f32 %v3759_v34, %v5145_v5  ;;  %v3810_v46 = vmul.f32 %v3804_v7, %v5157_v53  ;;  %v3395_v53 = vadd.f32 %v3394_v17, %v3393_v48 }
 0x25e   : > { %v3829_v50 = vadd.f32 %v3814_v26, %v3811_v21  ;;  %v2956_v21 = vadd.f32 %v2941_v20, %v5169_v39  ;;  %v3847_v26 = vsel %vm3846_vm13, %v5346_v62, %v2076_v30  ;;  %v2517_v7 = vadd.f32 %v2508_v31, %v5169_v39  ;;  %v3866_v31 = vld [vmem:[#allocation2] sm:$0x7] }
 0x25f   : > { %v3812_v44 = vmul.f32 %v3806_v56, %v5159_v55  ;;  %v3807_v36 = vmax.f32 %v3760_v49, 0.0  ;;  %v3398_v37 = vadd.f32 %v3395_v53, %v5169_v39  ;;  %v3848_v56 = vsel %vm3846_vm13, %v3844_v59, %v2077_v8 }
 0x260   : > { %v3830_v16 = vrot.slane %v3829_v50, 4  ;;  %v3396_v49 = vadd.f32 %v3381_v28, %v5169_v39  ;;  %v2957_v27 = vadd.f32 %v2948_v19, %v5169_v39  ;;  %v3397_v62 = vadd.f32 %v3388_v23, %v5169_v39 }
 0x261   : > { %v3815_v22 = vadd.f32 %v3812_v44, %v3809_v33  ;;  %v3813_v5 = vmul.f32 %v3807_v36, %v5159_v55  ;;  %v2501_v55 = vadd.f32 %v2500_v54, %v2499_v42  ;;  %v3861_v43 = vsel %vm3858_vm0, %v5259_v29, %v3398_v37 }
 0x262   : > { %v3831_v51 = vadd.f32 %v3830_v16, %v3829_v50  ;;  %v3852_v16 = vsel %vm315_vm1, %v3848_v56, %v2517_v7  ;;  %v3925_v19 = vsub.s32 2, %v4532_v4 }
 0x263   : > { %v3816_v58 = vrot.slane %v3815_v22, 4  ;;  %v3822_v61 = vadd.f32 %v3813_v5, %v3810_v46  ;;  %v2516_v12 = vadd.f32 %v2501_v55, %v5169_v39  ;;  %v3856_v29 = vsel %vm3854_vm15, %v3852_v16, %v2957_v27 }
 0x264   : > { %v3832_v3 = vrot.slane %v3831_v51, 2  ;;  %v3860_v54 = vsel %vm3858_vm0, %v3856_v29, %v3397_v62 }
 0x265   : > { %v3817_v45 = vadd.f32 %v3816_v58, %v3815_v22  ;;  %v3823_v10 = vrot.slane %v3822_v61, 4  ;;  %v3851_v33 = vsel %vm315_vm1, %v3847_v26, %v2516_v12 }
 0x266   : > { %v3833_v15 = vadd.f32 %v3832_v3, %v3831_v51  ;;  %v3855_v36 = vsel %vm3854_vm15, %v3851_v33, %v2956_v21 }
 0x267   : > { %v3818_v60 = vrot.slane %v3817_v45, 2  ;;  %v3824_v1 = vadd.f32 %v3823_v10, %v3822_v61  ;;  %v3859_v17 = vsel %vm3858_vm0, %v3855_v36, %v3396_v49  ;;  %v4477_v61 = vmov 1966171168  }
 0x268   : > { %v3834_v32 = vrot.slane %v3833_v15, 1  ;;  %v3891_v63 = vunpack.c.l.s4 %v4477_v61 }
 0x269   : > { %v3819_v25 = vadd.f32 %v3818_v60, %v3817_v45  ;;  %v3825_v38 = vrot.slane %v3824_v1, 2 }
 0x26a   : > { %v3835_v41 = vadd.f32 %v3834_v32, %v3833_v15  ;;  %v3892_v45 = vunpack.c.0.s8 %v3891_v63  ;;  %v3921_v32 = vsub.s32 1, %v4532_v4 }
 0x26b   : > { %v3820_v34 = vrot.slane %v3819_v25, 1  ;;  %v3826_v48 = vadd.f32 %v3825_v38, %v3824_v1 }
 0x26c   : > { %v3838_v42 = vadd.f32 %v3835_v41, %v5169_v39  ;;  %v3895_v13 = vsub.s32 %v3892_v45, %v4532_v4 }
 0x26d   : > { %v3821_v50 = vadd.f32 %v3820_v34, %v3819_v25  ;;  %v3827_v11 = vrot.slane %v3826_v48, 1 }
 0x26e   : > { %v3865_v44 = vsel %vm3862_vm2, %v3861_v43, %v3838_v42 }
 0x26f   : > { %v3880_v14 = vrot.slane %v3865_v44, 4  ;;  %v3836_v24 = vadd.f32 %v3821_v50, %v5169_v39  ;;  %v3828_v35 = vadd.f32 %v3827_v11, %v3826_v48 }
 0x271   : > { %v3881_v46 = vmax.f32 %v3865_v44, %v3880_v14  ;;  %v3863_v22 = vsel %vm3862_vm2, %v3859_v17, %v3836_v24  ;;  %v3837_v5 = vadd.f32 %v3828_v35, %v5169_v39 }
 0x272   : > { %v3868_v40 = vrot.slane %v3863_v22, 4 }
 0x273   : > { %v3882_v47 = vrot.slane %v3881_v46, 2  ;;  %v3864_v51 = vsel %vm3862_vm2, %v3860_v54, %v3837_v5 }
 0x274   : > { %v3869_v52 = vmax.f32 %v3863_v22, %v3868_v40  ;;  %v3874_v57 = vrot.slane %v3864_v51, 4 }
 0x275   : > { %v3883_v58 = vmax.f32 %v3881_v46, %v3882_v47 }
 0x276   : > { %v3870_v0 = vrot.slane %v3869_v52, 2  ;;  %v3875_v2 = vmax.f32 %v3864_v51, %v3874_v57 }
 0x277   : > { %v3884_v53 = vrot.slane %v3883_v58, 1 }
 0x278   : > { %v3871_v3 = vmax.f32 %v3869_v52, %v3870_v0  ;;  %v3876_v9 = vrot.slane %v3875_v2, 2  ;;  %v3867_v52 = vld [vmem:[#allocation3] sm:$0x7] }
 0x279   : > { %v3885_v59 = vmax.f32 %v3883_v58, %v3884_v53 }
 0x27a   : > { %v3872_v10 = vrot.slane %v3871_v3, 1  ;;  %v3877_v55 = vmax.f32 %v3875_v2, %v3876_v9 }
 0x27b   : > { %v3903_v60 = vrot.slane %v3885_v59, %v3895_v13 }
 0x27c   : > { %v3878_v39 = vrot.slane %v3877_v55, 1  ;;  %v3873_v15 = vmax.f32 %v3871_v3, %v3872_v10 }
 0x27e   : > { %v3879_v30 = vmax.f32 %v3877_v55, %v3878_v39 }
 0x280   : > { %v3889_v20 = vcombine.low %v3873_v15, %v3879_v30 }
 0x282   : > { %v3896_v1 = vrot.slane %v3889_v20, %v3895_v13 }
 0x284   : > { %v3904_v8 = vcombine.low %v3896_v1, %v3903_v60 }
 0x286   : > { %v3911_v28 = vrot.slane %v3904_v8, %v3895_v13 }
 0x288   : > { %v3913_v37 = vmax.f32 %v3866_v31, %v3911_v28 }
 0x28a   : > { %v3918_v25 = vrot.slane %v3913_v37, %v754_v18  ;;  %v3922_v38 = vrot.slane %v3913_v37, %v3921_v32  ;;  %v3926_v12 = vrot.slane %v3913_v37, %v3925_v19  ;;  %3994 = vst.msk [vmem:[#allocation2] sm:$0x7] %vm5191_vm14, %v3913_v37  ;;  %v3957_v7 = vsub.f32 %v3866_v31, %v3913_v37 }
 0x28c   : > { %v3930_v23 = vsub.f32 %v3863_v22, %v3918_v25  ;;  %v3931_v41 = vsub.f32 %v3864_v51, %v3922_v38  ;;  %v3932_v21 = vsub.f32 %v3865_v44, %v3926_v12  ;;  %v3958_v49 = vmul.f32 1.442695, %v3957_v7 }
 0x28e   : > { %v3933_v26 = vmul.f32 1.442695, %v3930_v23  ;;  %v3935_v34 = vmul.f32 1.442695, %v3931_v41  ;;  %v3937_v48 = vmul.f32 1.442695, %v3932_v21 }
 0x290   : > { %4429 = vpow2.f32 %v3933_v26 }
 0x291   : > { %4431 = vpow2.f32 %v3935_v34 }
 0x292   : > { %4433 = vpow2.f32 %v3937_v48 }
 0x293   : > { %4435 = vpow2.f32 %v3958_v49 }
 0x29d   : > { %v4430_v56 = vpop.eup %4429 }
 0x29e   : > { %v4432_v42 = vpop.eup %4431  ;;  %v3939_v4 = vrot.slane %v4430_v56, 4 }
 0x29f   : > { %v4434_v18 = vpop.eup %4433  ;;  %v3945_v27 = vrot.slane %v4432_v42, 4 }
 0x2a0   : > { %v3940_v43 = vadd.f32 %v4430_v56, %v3939_v4  ;;  %v3951_v50 = vrot.slane %v4434_v18, 4  ;;  %v4436_v51 = vpop.eup %4435 }
 0x2a1   : > { %v3946_v11 = vadd.f32 %v4432_v42, %v3945_v27  ;;  %v3960_v58 = vmul.f32 %v4436_v51, %v3867_v52 }
 0x2a2   : > { %v3941_v33 = vrot.slane %v3940_v43, 2  ;;  %v3952_v62 = vadd.f32 %v4434_v18, %v3951_v50 }
 0x2a3   : > { %v3947_v44 = vrot.slane %v3946_v11, 2 }
 0x2a4   : > { %v3942_v36 = vadd.f32 %v3941_v33, %v3940_v43  ;;  %v3953_v14 = vrot.slane %v3952_v62, 2 }
 0x2a5   : > { %v3948_v24 = vadd.f32 %v3947_v44, %v3946_v11 }
 0x2a6   : > { %v3943_v35 = vrot.slane %v3942_v36, 1  ;;  %v3954_v16 = vadd.f32 %v3953_v14, %v3952_v62 }
 0x2a7   : > { %v3949_v17 = vrot.slane %v3948_v24, 1 }
 0x2a8   : > { %v3944_v29 = vadd.f32 %v3943_v35, %v3942_v36  ;;  %v3955_v46 = vrot.slane %v3954_v16, 1 }
 0x2a9   : > { %v3950_v22 = vadd.f32 %v3949_v17, %v3948_v24 }
 0x2aa   : > { %v3956_v5 = vadd.f32 %v3955_v46, %v3954_v16 }
 0x2ab   : > { %v3964_v54 = vcombine.low %v3944_v29, %v3950_v22 }
 0x2ac   : > { %v3978_v47 = vrot.slane %v3956_v5, %v3895_v13 }
 0x2ad   : > { %v3971_v40 = vrot.slane %v3964_v54, %v3895_v13 }
 0x2af   : > { %v3979_v57 = vcombine.low %v3971_v40, %v3978_v47 }
 0x2b1   : > { %v3986_v61 = vrot.slane %v3979_v57, %v3895_v13 }
 0x2b3   : > { %v3988_v63 = vadd.f32 %v3986_v61, %v3960_v58 }
 0x2b5   : > { %3993 = vst.msk [vmem:[#allocation3] sm:$0x7] %vm5191_vm14, %v3988_v63 }
 0x2bc   : > { %v3998_v0 = vld [vmem:[#allocation3] sm:$0x7] }
 0x2bd   : > { %4437 = vrcp.f32 %v3998_v0 }
 0x2ca   : > { %v4438_v2 = vpop.eup %4437 }
 0x2cb   : > { %4000 = vst.msk [vmem:[%s252_s28] sm:$0x7] %vm5191_vm14, %v4438_v2 }
 0x2cc PF: > { %s17_s22 = sadd.s32 1, %s4462_s22   ;;  %s5419_s20 = smov %s4458_s21 }
 0x2cd   : > { %p14_p5 = scmp.ge.s32.totalorder %s17_s22, 4   ;;  %s5420_s21 = smov %s5422_s4 }
 0x2cf   :  { %16 = sbr.rel (!%p14_p5) target bundleno = 3 (0x3), region = 78 }

</bundles_post_ra>
